<compile_context>
chip_gen: v7x
topology: tpu7x:2x2x1
jax: 0.10.0
libtpu: 0.0.40
codegen_flags: <defaults>
</compile_context>

<pallas_src>
import jax
import jax.numpy as jnp
from jax import lax
from jax.experimental import pallas as pl
from jax.experimental.pallas import tpu as pltpu

F32 = jnp.float32
BF16 = jnp.bfloat16
NEG_BIAS = -1e9                       # large-but-finite additive mask

# -------------------- scaled-down T5 config (synthetic) --------------------
VOCAB = 64
D_MODEL = 32
NUM_HEADS = 4
D_KV = 8
INNER = NUM_HEADS * D_KV              # 32
D_FF = 64
CTRL = 48                             # ctrl_embed_dim (768 in the original)
NUM_BUCKETS = 8
MAX_DIST = 16
EPS = 1e-6


# ============================ in-kernel helpers ============================

def _rmsnorm(x, w):
    # T5LayerNorm: no mean subtraction, no bias (f32 elementwise).
    var = jnp.mean(x * x, axis=-1, keepdims=True)
    return x * lax.rsqrt(var + EPS) * w


def _softmax_rows(s):
    s = s - jnp.max(s, axis=-1, keepdims=True)
    e = jnp.exp(s)
    return e * pl.reciprocal(jnp.sum(e, axis=-1, keepdims=True), approx=True)


def _dot_bf(a, w_bf):
    # Activation cast to bf16 at the MXU boundary; weight already bf16; f32 accumulate.
    return jnp.dot(a.astype(BF16), w_bf, preferred_element_type=F32)


def _gather_rows(table_ref, ids_ref, start, n):
    # SMEM scalar ids -> dynamic single-row loads from the VMEM embedding table.
    rows = [table_ref[pl.ds(ids_ref[start + i], 1), :] for i in range(n)]
    return jnp.concatenate(rows, axis=0)                            # (n, D) f32


def _mha(q_all, k_all, v_all, wo_bf, pos_bias=None, mask_bias=None):
    """All-heads attention + output projection.

    Scores / attn*V keep the per-head loop (block-diagonal structure), but the
    output projection is a single (Sq, INNER) @ (INNER, D) matmul (head outputs
    lane-concatenated).  T5 style: no 1/sqrt(d) score scaling.
    """
    q_bf, k_bf, v_bf = q_all.astype(BF16), k_all.astype(BF16), v_all.astype(BF16)
    head_outs = []
    for h in range(NUM_HEADS):
        sl = slice(h * D_KV, (h + 1) * D_KV)
        s = lax.dot_general(q_bf[:, sl], k_bf[:, sl],
                            (((1,), (1,)), ((), ())),               # contract Dh, no .T
                            preferred_element_type=F32)             # (Sq, Sk) f32
        if pos_bias is not None:
            s = s + pos_bias[h]                                     # (Sq, Sk)
        if mask_bias is not None:
            s = s + mask_bias                                       # (1, Sk) broadcast
        p = _softmax_rows(s)
        head_outs.append(jnp.dot(p.astype(BF16), v_bf[:, sl],
                                 preferred_element_type=F32))       # (Sq, Dh)
    o_all = jnp.concatenate(head_outs, axis=-1)                     # (Sq, INNER)
    return _dot_bf(o_all, wo_bf)                                    # (Sq, D)


# ============================ fully fused kernel ============================

def tinystyler_kernel(
        enc_ids_ref, dec_ids_ref, labels_ref,                       # SMEM int32
        mask_ref, style_ref, shared_ref, projw_ref, projb_ref, enc_bias_ref,
        e_ln1_ref, e_wqkv_ref, e_wo_ref, e_ln2_ref, e_wi_ref, e_wff_ref, e_lnf_ref,
        dec_bias_ref,
        d_ln1_ref, d_wqkv_ref, d_wos_ref, d_ln2_ref, d_wqc_ref, d_wkvc_ref,
        d_woc_ref, d_ln3_ref, d_wi_ref, d_wff_ref, d_lnf_ref,
        logits_ref, loss_ref):
    B, Se = mask_ref.shape
    S = Se - 1
    Sd = dec_bias_ref.shape[1]

    # ---- load weights once; cast MXU operands to bf16 once (reused for all b) ----
    projw = projw_ref[...].astype(BF16)
    projb = projb_ref[...]
    enc_bias = enc_bias_ref[...]                                     # (H, Se, Se) f32
    dec_bias = dec_bias_ref[...]                                     # (H, Sd, Sd) f32
    shared_bf = shared_ref[...].astype(BF16)                         # (V, D) lm head
    e_ln1, e_ln2, e_lnf = e_ln1_ref[...], e_ln2_ref[...], e_lnf_ref[...]
    e_wqkv, e_wo = e_wqkv_ref[...].astype(BF16), e_wo_ref[...].astype(BF16)
    e_wi, e_wff = e_wi_ref[...].astype(BF16), e_wff_ref[...].astype(BF16)
    d_ln1, d_ln2 = d_ln1_ref[...], d_ln2_ref[...]
    d_ln3, d_lnf = d_ln3_ref[...], d_lnf_ref[...]
    d_wqkv, d_wos = d_wqkv_ref[...].astype(BF16), d_wos_ref[...].astype(BF16)
    d_wqc, d_wkvc = d_wqc_ref[...].astype(BF16), d_wkvc_ref[...].astype(BF16)
    d_woc = d_woc_ref[...].astype(BF16)
    d_wi, d_wff = d_wi_ref[...].astype(BF16), d_wff_ref[...].astype(BF16)

    num = jnp.zeros((), F32)
    den = jnp.zeros((), F32)

    for b in range(B):                                               # tiny static unroll
        # ---------------- encoder: style prepend + embed + 1 layer + final norm ----
        style_e = _dot_bf(style_ref[pl.ds(b, 1), :], projw) + projb  # (1, D)
        tok_e = _gather_rows(shared_ref, enc_ids_ref, b * S, S)      # (S, D)
        h = jnp.concatenate([style_e, tok_e], axis=0)                # (Se, D), in regs
        mask_bias = (1.0 - mask_ref[pl.ds(b, 1), :]) * NEG_BIAS      # (1, Se)

        hn = _rmsnorm(h, e_ln1)
        qkv = _dot_bf(hn, e_wqkv)                                    # (Se, 3*INNER)
        h = h + _mha(qkv[:, :INNER], qkv[:, INNER:2 * INNER], qkv[:, 2 * INNER:],
                     e_wo, enc_bias, mask_bias)
        hn = _rmsnorm(h, e_ln2)
        h = h + _dot_bf(jnp.maximum(_dot_bf(hn, e_wi), 0.0), e_wff)
        enc_h = _rmsnorm(h, e_lnf)                                   # (Se, D)

        # ---------------- decoder: embed + self-attn + cross-attn + FFN + norm ----
        d = _gather_rows(shared_ref, dec_ids_ref, b * Sd, Sd)        # (Sd, D)
        hn = _rmsnorm(d, d_ln1)
        qkv = _dot_bf(hn, d_wqkv)                                    # (Sd, 3*INNER)
        d = d + _mha(qkv[:, :INNER], qkv[:, INNER:2 * INNER], qkv[:, 2 * INNER:],
                     d_wos, dec_bias, None)                          # causal in dec_bias
        hn = _rmsnorm(d, d_ln2)
        q = _dot_bf(hn, d_wqc)                                       # (Sd, INNER)
        kv = _dot_bf(enc_h, d_wkvc)                                  # (Se, 2*INNER)
        d = d + _mha(q, kv[:, :INNER], kv[:, INNER:], d_woc, None, mask_bias)
        hn = _rmsnorm(d, d_ln3)
        d = d + _dot_bf(jnp.maximum(_dot_bf(hn, d_wi), 0.0), d_wff)
        dec_h = _rmsnorm(d, d_lnf)                                   # (Sd, D)

        # ---------------- tied lm head (+ d_model**-0.5) + CE(ignore=-100) ----------
        x = (dec_h * (D_MODEL ** -0.5)).astype(BF16)
        logits_b = lax.dot_general(x, shared_bf, (((1,), (1,)), ((), ())),
                                   preferred_element_type=F32)       # (Sd, V), no .T
        logits_ref[b, :, :] = logits_b

        m = jnp.max(logits_b, axis=-1, keepdims=True)
        lse = jnp.log(jnp.sum(jnp.exp(logits_b - m), axis=-1, keepdims=True)) + m
        onehot = jnp.concatenate(
            [(lax.broadcasted_iota(jnp.int32, (1, VOCAB), 1)
              == labels_ref[b * Sd + t]).astype(F32) for t in range(Sd)], axis=0)
        valid = jnp.sum(onehot, axis=-1, keepdims=True)              # 0 where label==-100
        tgt = jnp.sum(onehot * logits_b, axis=-1, keepdims=True)     # 0 where label==-100
        num = num + jnp.sum(lse * valid - tgt)
        den = den + jnp.sum(valid)

    loss_ref[0] = num / jnp.maximum(den, 1.0)                        # scalar -> SMEM


# ============================ T5 glue (plain JAX, tiny) ============================

def _relative_position_bucket(rel_pos, bidirectional, num_buckets, max_distance):
    ret = jnp.zeros_like(rel_pos)
    if bidirectional:
        num_buckets //= 2
        ret = ret + (rel_pos > 0).astype(jnp.int32) * num_buckets
        rel_pos = jnp.abs(rel_pos)
    else:
        rel_pos = -jnp.minimum(rel_pos, 0)
    max_exact = num_buckets // 2
    is_small = rel_pos < max_exact
    rp_f = jnp.maximum(rel_pos, 1).astype(F32)
    large = max_exact + (
        jnp.log(rp_f / max_exact) / jnp.log(max_distance / max_exact)
        * (num_buckets - max_exact)).astype(jnp.int32)
    large = jnp.minimum(large, num_buckets - 1)
    return ret + jnp.where(is_small, rel_pos, large)


def compute_position_bias(table, q_len, k_len, bidirectional):
    ctx = jnp.arange(q_len)[:, None]
    mem = jnp.arange(k_len)[None, :]
    buckets = _relative_position_bucket(mem - ctx, bidirectional,
                                        NUM_BUCKETS, MAX_DIST)       # (q, k)
    bias = table[buckets]                                            # (q, k, H)
    return jnp.transpose(bias, (2, 0, 1))                            # (H, q, k)


def shift_right(labels):
    B = labels.shape[0]
    start = jnp.zeros((B, 1), labels.dtype)       # decoder_start_token_id = pad = 0
    shifted = jnp.concatenate([start, labels[:, :-1]], axis=1)
    return jnp.where(shifted == -100, 0, shifted)


def tinystyler_forward(params, input_ids, attention_mask, labels, style):
    """TinyStyler.forward with use_style=True. Returns (loss, lm_logits)."""
    B, S = input_ids.shape
    Se = S + 1
    Sd = labels.shape[1]

    # batch-independent glue: mask with prepended style token, tiny rel-pos biases
    enc_mask = jnp.concatenate(
        [jnp.ones((B, 1), F32), attention_mask.astype(F32)], axis=1)          # (B, Se)
    enc_pos_bias = compute_position_bias(params["enc_rel_bias"], Se, Se, True)
    causal = (jnp.arange(Sd)[None, :] <= jnp.arange(Sd)[:, None]).astype(F32)
    dec_self_bias = (compute_position_bias(params["dec_rel_bias"], Sd, Sd, False)
                     + (1.0 - causal)[None] * NEG_BIAS)                       # (H,Sd,Sd)

    enc_ids = input_ids.astype(jnp.int32).reshape(B * S)
    dec_ids = shift_right(labels).astype(jnp.int32).reshape(B * Sd)
    labels_flat = labels.astype(jnp.int32).reshape(B * Sd)

    ep, dp = params["enc_layer"], params["dec_layer"]
    vmem_args = (enc_mask, style.astype(F32), params["shared"], params["proj_w"],
                 params["proj_b"], enc_pos_bias,
                 ep["ln1"], ep["wqkv"], ep["wo_attn"], ep["ln2"], ep["wi"], ep["wo_ff"],
                 params["enc_final_ln"], dec_self_bias,
                 dp["ln1"], dp["wqkv_self"], dp["wo_self"], dp["ln2"],
                 dp["wq_cross"], dp["wkv_cross"], dp["wo_cross"], dp["ln3"],
                 dp["wi"], dp["wo_ff"], params["dec_final_ln"])

    smem_spec = pl.BlockSpec(memory_space=pltpu.MemorySpace.SMEM)
    vmem_spec = pl.BlockSpec(memory_space=pltpu.MemorySpace.VMEM)

    logits, loss = pl.pallas_call(
        tinystyler_kernel,
        in_specs=[smem_spec] * 3 + [vmem_spec] * len(vmem_args),
        out_specs=(vmem_spec, smem_spec),
        out_shape=(jax.ShapeDtypeStruct((B, Sd, VOCAB), F32),
                   jax.ShapeDtypeStruct((1,), F32)),
    )(enc_ids, dec_ids, labels_flat, *vmem_args)
    return loss[0], logits


# ============================ parameter init ============================

def init_params(key):
    keys = iter(jax.random.split(key, 64))

    def nrm(shape, scale=0.05):
        return jax.random.normal(next(keys), shape, F32) * scale

    ones_row = lambda: jnp.ones((1, D_MODEL), F32)

    # TODO(synk): stack depth = 1; deeper stacks would loop the fused layer body
    #             inside the same kernel (weights stacked along a leading layer dim).
    return dict(
        shared=nrm((VOCAB, D_MODEL), 1.0),
        proj_w=nrm((CTRL, D_MODEL)),
        proj_b=nrm((1, D_MODEL)),
        enc_rel_bias=nrm((NUM_BUCKETS, NUM_HEADS)),
        dec_rel_bias=nrm((NUM_BUCKETS, NUM_HEADS)),
        enc_layer=dict(ln1=ones_row(),
                       wqkv=nrm((D_MODEL, 3 * INNER)),       # fused [wq|wk|wv]
                       wo_attn=nrm((INNER, D_MODEL)),
                       ln2=ones_row(),
                       wi=nrm((D_MODEL, D_FF)),
                       wo_ff=nrm((D_FF, D_MODEL))),
        enc_final_ln=ones_row(),
        dec_layer=dict(ln1=ones_row(),
                       wqkv_self=nrm((D_MODEL, 3 * INNER)),  # fused [wq|wk|wv]
                       wo_self=nrm((INNER, D_MODEL)),
                       ln2=ones_row(),
                       wq_cross=nrm((D_MODEL, INNER)),
                       wkv_cross=nrm((D_MODEL, 2 * INNER)),  # fused [wk|wv]
                       wo_cross=nrm((INNER, D_MODEL)),
                       ln3=ones_row(),
                       wi=nrm((D_MODEL, D_FF)),
                       wo_ff=nrm((D_FF, D_MODEL))),
        dec_final_ln=ones_row(),
    )


# ============================ main ============================

if __name__ == "__main__":
    key = jax.random.PRNGKey(0)
    kp, ki, kl, ks = jax.random.split(key, 4)
    params = init_params(kp)

    B, S = 2, 8
    input_ids = jax.random.randint(ki, (B, S), 0, VOCAB, dtype=jnp.int32)
    attention_mask = jnp.ones((B, S), F32).at[0, -2:].set(0.0)      # some padding
    labels = jax.random.randint(kl, (B, S), 0, VOCAB, dtype=jnp.int32)
    labels = labels.at[1, -2:].set(-100)                            # ignore_index
    style = jax.random.normal(ks, (B, CTRL), F32)

    fwd = jax.jit(tinystyler_forward)
    loss, logits = fwd(params, input_ids, attention_mask, labels, style)
    jax.block_until_ready((loss, logits))

    assert logits.shape == (B, S, VOCAB)
    assert bool(jnp.isfinite(loss))
    print("KERNEL_OK")
</pallas_src>

<mosaic_0001>
module attributes {stable_mosaic.version = 11 : i64} {
  func.func @tinystyler_kernel(%arg0: memref<16xi32, #tpu.memory_space<smem>>, %arg1: memref<16xi32, #tpu.memory_space<smem>>, %arg2: memref<16xi32, #tpu.memory_space<smem>>, %arg3: memref<2x9xf32, #tpu.memory_space<vmem>>, %arg4: memref<2x48xf32, #tpu.memory_space<vmem>>, %arg5: memref<64x32xf32, #tpu.memory_space<vmem>>, %arg6: memref<48x32xf32, #tpu.memory_space<vmem>>, %arg7: memref<1x32xf32, #tpu.memory_space<vmem>>, %arg8: memref<4x9x9xf32, #tpu.memory_space<vmem>>, %arg9: memref<1x32xf32, #tpu.memory_space<vmem>>, %arg10: memref<32x96xf32, #tpu.memory_space<vmem>>, %arg11: memref<32x32xf32, #tpu.memory_space<vmem>>, %arg12: memref<1x32xf32, #tpu.memory_space<vmem>>, %arg13: memref<32x64xf32, #tpu.memory_space<vmem>>, %arg14: memref<64x32xf32, #tpu.memory_space<vmem>>, %arg15: memref<1x32xf32, #tpu.memory_space<vmem>>, %arg16: memref<4x8x8xf32, #tpu.memory_space<vmem>>, %arg17: memref<1x32xf32, #tpu.memory_space<vmem>>, %arg18: memref<32x96xf32, #tpu.memory_space<vmem>>, %arg19: memref<32x32xf32, #tpu.memory_space<vmem>>, %arg20: memref<1x32xf32, #tpu.memory_space<vmem>>, %arg21: memref<32x32xf32, #tpu.memory_space<vmem>>, %arg22: memref<32x64xf32, #tpu.memory_space<vmem>>, %arg23: memref<32x32xf32, #tpu.memory_space<vmem>>, %arg24: memref<1x32xf32, #tpu.memory_space<vmem>>, %arg25: memref<32x64xf32, #tpu.memory_space<vmem>>, %arg26: memref<64x32xf32, #tpu.memory_space<vmem>>, %arg27: memref<1x32xf32, #tpu.memory_space<vmem>>, %arg28: memref<2x8x64xf32, #tpu.memory_space<vmem>>, %arg29: memref<1xf32, #tpu.memory_space<smem>>) attributes {dimension_semantics = [], scalar_prefetch = 0 : i64, scratch_operands = 0 : i64, tpu.core_type = #tpu.core_type<tc>} {
    %c0 = arith.constant 0 : index
    %c0_0 = arith.constant 0 : index
    %0 = vector.load %arg6[%c0, %c0_0] : memref<48x32xf32, #tpu.memory_space<vmem>>, vector<48x32xf32>
    %1 = arith.truncf %0 : vector<48x32xf32> to vector<48x32xbf16>
    %c0_1 = arith.constant 0 : index
    %c0_2 = arith.constant 0 : index
    %2 = vector.load %arg7[%c0_1, %c0_2] : memref<1x32xf32, #tpu.memory_space<vmem>>, vector<1x32xf32>
    %c0_3 = arith.constant 0 : index
    %c0_4 = arith.constant 0 : index
    %c0_5 = arith.constant 0 : index
    %3 = vector.load %arg8[%c0_3, %c0_4, %c0_5] : memref<4x9x9xf32, #tpu.memory_space<vmem>>, vector<4x9x9xf32>
    %c0_6 = arith.constant 0 : index
    %c0_7 = arith.constant 0 : index
    %c0_8 = arith.constant 0 : index
    %4 = vector.load %arg16[%c0_6, %c0_7, %c0_8] : memref<4x8x8xf32, #tpu.memory_space<vmem>>, vector<4x8x8xf32>
    %c0_9 = arith.constant 0 : index
    %c0_10 = arith.constant 0 : index
    %5 = vector.load %arg5[%c0_9, %c0_10] : memref<64x32xf32, #tpu.memory_space<vmem>>, vector<64x32xf32>
    %6 = arith.truncf %5 : vector<64x32xf32> to vector<64x32xbf16>
    %c0_11 = arith.constant 0 : index
    %c0_12 = arith.constant 0 : index
    %7 = vector.load %arg9[%c0_11, %c0_12] : memref<1x32xf32, #tpu.memory_space<vmem>>, vector<1x32xf32>
    %c0_13 = arith.constant 0 : index
    %c0_14 = arith.constant 0 : index
    %8 = vector.load %arg12[%c0_13, %c0_14] : memref<1x32xf32, #tpu.memory_space<vmem>>, vector<1x32xf32>
    %c0_15 = arith.constant 0 : index
    %c0_16 = arith.constant 0 : index
    %9 = vector.load %arg15[%c0_15, %c0_16] : memref<1x32xf32, #tpu.memory_space<vmem>>, vector<1x32xf32>
    %c0_17 = arith.constant 0 : index
    %c0_18 = arith.constant 0 : index
    %10 = vector.load %arg10[%c0_17, %c0_18] : memref<32x96xf32, #tpu.memory_space<vmem>>, vector<32x96xf32>
    %11 = arith.truncf %10 : vector<32x96xf32> to vector<32x96xbf16>
    %c0_19 = arith.constant 0 : index
    %c0_20 = arith.constant 0 : index
    %12 = vector.load %arg11[%c0_19, %c0_20] : memref<32x32xf32, #tpu.memory_space<vmem>>, vector<32x32xf32>
    %13 = arith.truncf %12 : vector<32x32xf32> to vector<32x32xbf16>
    %c0_21 = arith.constant 0 : index
    %c0_22 = arith.constant 0 : index
    %14 = vector.load %arg13[%c0_21, %c0_22] : memref<32x64xf32, #tpu.memory_space<vmem>>, vector<32x64xf32>
    %15 = arith.truncf %14 : vector<32x64xf32> to vector<32x64xbf16>
    %c0_23 = arith.constant 0 : index
    %c0_24 = arith.constant 0 : index
    %16 = vector.load %arg14[%c0_23, %c0_24] : memref<64x32xf32, #tpu.memory_space<vmem>>, vector<64x32xf32>
    %17 = arith.truncf %16 : vector<64x32xf32> to vector<64x32xbf16>
    %c0_25 = arith.constant 0 : index
    %c0_26 = arith.constant 0 : index
    %18 = vector.load %arg17[%c0_25, %c0_26] : memref<1x32xf32, #tpu.memory_space<vmem>>, vector<1x32xf32>
    %c0_27 = arith.constant 0 : index
    %c0_28 = arith.constant 0 : index
    %19 = vector.load %arg20[%c0_27, %c0_28] : memref<1x32xf32, #tpu.memory_space<vmem>>, vector<1x32xf32>
    %c0_29 = arith.constant 0 : index
    %c0_30 = arith.constant 0 : index
    %20 = vector.load %arg24[%c0_29, %c0_30] : memref<1x32xf32, #tpu.memory_space<vmem>>, vector<1x32xf32>
    %c0_31 = arith.constant 0 : index
    %c0_32 = arith.constant 0 : index
    %21 = vector.load %arg27[%c0_31, %c0_32] : memref<1x32xf32, #tpu.memory_space<vmem>>, vector<1x32xf32>
    %c0_33 = arith.constant 0 : index
    %c0_34 = arith.constant 0 : index
    %22 = vector.load %arg18[%c0_33, %c0_34] : memref<32x96xf32, #tpu.memory_space<vmem>>, vector<32x96xf32>
    %23 = arith.truncf %22 : vector<32x96xf32> to vector<32x96xbf16>
    %c0_35 = arith.constant 0 : index
    %c0_36 = arith.constant 0 : index
    %24 = vector.load %arg19[%c0_35, %c0_36] : memref<32x32xf32, #tpu.memory_space<vmem>>, vector<32x32xf32>
    %25 = arith.truncf %24 : vector<32x32xf32> to vector<32x32xbf16>
    %c0_37 = arith.constant 0 : index
    %c0_38 = arith.constant 0 : index
    %26 = vector.load %arg21[%c0_37, %c0_38] : memref<32x32xf32, #tpu.memory_space<vmem>>, vector<32x32xf32>
    %27 = arith.truncf %26 : vector<32x32xf32> to vector<32x32xbf16>
    %c0_39 = arith.constant 0 : index
    %c0_40 = arith.constant 0 : index
    %28 = vector.load %arg22[%c0_39, %c0_40] : memref<32x64xf32, #tpu.memory_space<vmem>>, vector<32x64xf32>
    %29 = arith.truncf %28 : vector<32x64xf32> to vector<32x64xbf16>
    %c0_41 = arith.constant 0 : index
    %c0_42 = arith.constant 0 : index
    %30 = vector.load %arg23[%c0_41, %c0_42] : memref<32x32xf32, #tpu.memory_space<vmem>>, vector<32x32xf32>
    %31 = arith.truncf %30 : vector<32x32xf32> to vector<32x32xbf16>
    %c0_43 = arith.constant 0 : index
    %c0_44 = arith.constant 0 : index
    %32 = vector.load %arg25[%c0_43, %c0_44] : memref<32x64xf32, #tpu.memory_space<vmem>>, vector<32x64xf32>
    %33 = arith.truncf %32 : vector<32x64xf32> to vector<32x64xbf16>
    %c0_45 = arith.constant 0 : index
    %c0_46 = arith.constant 0 : index
    %34 = vector.load %arg26[%c0_45, %c0_46] : memref<64x32xf32, #tpu.memory_space<vmem>>, vector<64x32xf32>
    %35 = arith.truncf %34 : vector<64x32xf32> to vector<64x32xbf16>
    %c0_47 = arith.constant 0 : index
    %c0_48 = arith.constant 0 : index
    %36 = vector.load %arg4[%c0_47, %c0_48] : memref<2x48xf32, #tpu.memory_space<vmem>>, vector<1x48xf32>
    %37 = arith.truncf %36 : vector<1x48xf32> to vector<1x48xbf16>
    %cst = arith.constant dense<0.000000e+00> : vector<1x32xf32>
    %38 = tpu.matmul %37, %1, %cst {dimension_numbers = #tpu.dot_dimension_numbers<[1], [0], [0], [1], [0, 0, 1, 1], [], []>} : vector<1x48xbf16>, vector<48x32xbf16>, vector<1x32xf32> -> vector<1x32xf32>
    %39 = arith.addf %38, %2 : vector<1x32xf32>
    %c0_49 = arith.constant 0 : index
    %40 = memref.load %arg0[%c0_49] : memref<16xi32, #tpu.memory_space<smem>>
    %41 = arith.index_cast %40 : i32 to index
    %c0_50 = arith.constant 0 : index
    %42 = vector.load %arg5[%41, %c0_50] : memref<64x32xf32, #tpu.memory_space<vmem>>, vector<1x32xf32>
    %c1 = arith.constant 1 : index
    %43 = memref.load %arg0[%c1] : memref<16xi32, #tpu.memory_space<smem>>
    %44 = arith.index_cast %43 : i32 to index
    %c0_51 = arith.constant 0 : index
    %45 = vector.load %arg5[%44, %c0_51] : memref<64x32xf32, #tpu.memory_space<vmem>>, vector<1x32xf32>
    %c2 = arith.constant 2 : index
    %46 = memref.load %arg0[%c2] : memref<16xi32, #tpu.memory_space<smem>>
    %47 = arith.index_cast %46 : i32 to index
    %c0_52 = arith.constant 0 : index
    %48 = vector.load %arg5[%47, %c0_52] : memref<64x32xf32, #tpu.memory_space<vmem>>, vector<1x32xf32>
    %c3 = arith.constant 3 : index
    %49 = memref.load %arg0[%c3] : memref<16xi32, #tpu.memory_space<smem>>
    %50 = arith.index_cast %49 : i32 to index
    %c0_53 = arith.constant 0 : index
    %51 = vector.load %arg5[%50, %c0_53] : memref<64x32xf32, #tpu.memory_space<vmem>>, vector<1x32xf32>
    %c4 = arith.constant 4 : index
    %52 = memref.load %arg0[%c4] : memref<16xi32, #tpu.memory_space<smem>>
    %53 = arith.index_cast %52 : i32 to index
    %c0_54 = arith.constant 0 : index
    %54 = vector.load %arg5[%53, %c0_54] : memref<64x32xf32, #tpu.memory_space<vmem>>, vector<1x32xf32>
    %c5 = arith.constant 5 : index
    %55 = memref.load %arg0[%c5] : memref<16xi32, #tpu.memory_space<smem>>
    %56 = arith.index_cast %55 : i32 to index
    %c0_55 = arith.constant 0 : index
    %57 = vector.load %arg5[%56, %c0_55] : memref<64x32xf32, #tpu.memory_space<vmem>>, vector<1x32xf32>
    %c6 = arith.constant 6 : index
    %58 = memref.load %arg0[%c6] : memref<16xi32, #tpu.memory_space<smem>>
    %59 = arith.index_cast %58 : i32 to index
    %c0_56 = arith.constant 0 : index
    %60 = vector.load %arg5[%59, %c0_56] : memref<64x32xf32, #tpu.memory_space<vmem>>, vector<1x32xf32>
    %c7 = arith.constant 7 : index
    %61 = memref.load %arg0[%c7] : memref<16xi32, #tpu.memory_space<smem>>
    %62 = arith.index_cast %61 : i32 to index
    %c0_57 = arith.constant 0 : index
    %63 = vector.load %arg5[%62, %c0_57] : memref<64x32xf32, #tpu.memory_space<vmem>>, vector<1x32xf32>
    %64 = tpu.concatenate %42, %45, %48, %51, %54, %57, %60, %63 in 0 : vector<1x32xf32>, vector<1x32xf32>, vector<1x32xf32>, vector<1x32xf32>, vector<1x32xf32>, vector<1x32xf32>, vector<1x32xf32>, vector<1x32xf32> -> vector<8x32xf32>
    %65 = tpu.concatenate %39, %64 in 0 : vector<1x32xf32>, vector<8x32xf32> -> vector<9x32xf32>
    %c0_58 = arith.constant 0 : index
    %c0_59 = arith.constant 0 : index
    %66 = vector.load %arg3[%c0_58, %c0_59] : memref<2x9xf32, #tpu.memory_space<vmem>>, vector<1x9xf32>
    %cst_60 = arith.constant 1.000000e+00 : f32
    %67 = vector.broadcast %cst_60 : f32 to vector<1x9xf32>
    %68 = arith.subf %67, %66 : vector<1x9xf32>
    %cst_61 = arith.constant -1.000000e+09 : f32
    %69 = vector.broadcast %cst_61 : f32 to vector<1x9xf32>
    %70 = arith.mulf %68, %69 : vector<1x9xf32>
    %71 = arith.mulf %65, %65 : vector<9x32xf32>
    %cst_62 = arith.constant dense<0.000000e+00> : vector<9xf32>
    %72 = vector.multi_reduction <add>, %71, %cst_62 [1] : vector<9x32xf32> to vector<9xf32>
    %73 = vector.shape_cast %72 : vector<9xf32> to vector<9x1xf32>
    %cst_63 = arith.constant 3.200000e+01 : f32
    %74 = vector.broadcast %cst_63 : f32 to vector<9x1xf32>
    %75 = arith.divf %73, %74 : vector<9x1xf32>
    %cst_64 = arith.constant 9.99999997E-7 : f32
    %76 = vector.broadcast %cst_64 : f32 to vector<9x1xf32>
    %77 = arith.addf %75, %76 : vector<9x1xf32>
    %78 = math.rsqrt %77 : vector<9x1xf32>
    %79 = vector.broadcast %78 : vector<9x1xf32> to vector<9x32xf32>
    %80 = arith.mulf %65, %79 : vector<9x32xf32>
    %81 = vector.broadcast %7 : vector<1x32xf32> to vector<9x32xf32>
    %82 = arith.mulf %80, %81 : vector<9x32xf32>
    %83 = arith.truncf %82 : vector<9x32xf32> to vector<9x32xbf16>
    %cst_65 = arith.constant dense<0.000000e+00> : vector<9x96xf32>
    %84 = tpu.matmul %83, %11, %cst_65 {dimension_numbers = #tpu.dot_dimension_numbers<[1], [0], [0], [1], [0, 0, 1, 1], [], []>} : vector<9x32xbf16>, vector<32x96xbf16>, vector<9x96xf32> -> vector<9x96xf32>
    %85 = vector.extract_strided_slice %84 {offsets = [0, 0], sizes = [9, 32], strides = [1, 1]} : vector<9x96xf32> to vector<9x32xf32>
    %86 = vector.extract_strided_slice %84 {offsets = [0, 32], sizes = [9, 32], strides = [1, 1]} : vector<9x96xf32> to vector<9x32xf32>
    %87 = vector.extract_strided_slice %84 {offsets = [0, 64], sizes = [9, 32], strides = [1, 1]} : vector<9x96xf32> to vector<9x32xf32>
    %88 = arith.truncf %85 : vector<9x32xf32> to vector<9x32xbf16>
    %89 = arith.truncf %86 : vector<9x32xf32> to vector<9x32xbf16>
    %90 = arith.truncf %87 : vector<9x32xf32> to vector<9x32xbf16>
    %91 = vector.extract_strided_slice %88 {offsets = [0, 0], sizes = [9, 8], strides = [1, 1]} : vector<9x32xbf16> to vector<9x8xbf16>
    %92 = vector.extract_strided_slice %89 {offsets = [0, 0], sizes = [9, 8], strides = [1, 1]} : vector<9x32xbf16> to vector<9x8xbf16>
    %cst_66 = arith.constant dense<0.000000e+00> : vector<9x9xf32>
    %93 = tpu.matmul %91, %92, %cst_66 {dimension_numbers = #tpu.dot_dimension_numbers<[1], [1], [0], [0], [0, 0, 1, 0], [], []>} : vector<9x8xbf16>, vector<9x8xbf16>, vector<9x9xf32> -> vector<9x9xf32>
    %94 = vector.extract_strided_slice %3 {offsets = [0, 0, 0], sizes = [1, 9, 9], strides = [1, 1, 1]} : vector<4x9x9xf32> to vector<1x9x9xf32>
    %95 = vector.shape_cast %94 : vector<1x9x9xf32> to vector<9x9xf32>
    %96 = arith.addf %93, %95 : vector<9x9xf32>
    %97 = vector.broadcast %70 : vector<1x9xf32> to vector<9x9xf32>
    %98 = arith.addf %96, %97 : vector<9x9xf32>
    %cst_67 = arith.constant dense<0xFF800000> : vector<9xf32>
    %99 = vector.multi_reduction <maximumf>, %98, %cst_67 [1] : vector<9x9xf32> to vector<9xf32>
    %100 = vector.shape_cast %99 : vector<9xf32> to vector<9x1xf32>
    %101 = vector.broadcast %100 : vector<9x1xf32> to vector<9x9xf32>
    %102 = arith.subf %98, %101 : vector<9x9xf32>
    %103 = math.exp %102 : vector<9x9xf32>
    %cst_68 = arith.constant dense<0.000000e+00> : vector<9xf32>
    %104 = vector.multi_reduction <add>, %103, %cst_68 [1] : vector<9x9xf32> to vector<9xf32>
    %105 = vector.shape_cast %104 : vector<9xf32> to vector<9x1xf32>
    %106 = tpu.reciprocal %105 {approx = true} : vector<9x1xf32> -> vector<9x1xf32>
    %107 = vector.broadcast %106 : vector<9x1xf32> to vector<9x9xf32>
    %108 = arith.mulf %103, %107 : vector<9x9xf32>
    %109 = arith.truncf %108 : vector<9x9xf32> to vector<9x9xbf16>
    %110 = vector.extract_strided_slice %90 {offsets = [0, 0], sizes = [9, 8], strides = [1, 1]} : vector<9x32xbf16> to vector<9x8xbf16>
    %cst_69 = arith.constant dense<0.000000e+00> : vector<9x8xf32>
    %111 = tpu.matmul %109, %110, %cst_69 {dimension_numbers = #tpu.dot_dimension_numbers<[1], [0], [0], [1], [0, 0, 1, 1], [], []>} : vector<9x9xbf16>, vector<9x8xbf16>, vector<9x8xf32> -> vector<9x8xf32>
    %112 = vector.extract_strided_slice %88 {offsets = [0, 8], sizes = [9, 8], strides = [1, 1]} : vector<9x32xbf16> to vector<9x8xbf16>
    %113 = vector.extract_strided_slice %89 {offsets = [0, 8], sizes = [9, 8], strides = [1, 1]} : vector<9x32xbf16> to vector<9x8xbf16>
    %cst_70 = arith.constant dense<0.000000e+00> : vector<9x9xf32>
    %114 = tpu.matmul %112, %113, %cst_70 {dimension_numbers = #tpu.dot_dimension_numbers<[1], [1], [0], [0], [0, 0, 1, 0], [], []>} : vector<9x8xbf16>, vector<9x8xbf16>, vector<9x9xf32> -> vector<9x9xf32>
    %115 = vector.extract_strided_slice %3 {offsets = [1, 0, 0], sizes = [1, 9, 9], strides = [1, 1, 1]} : vector<4x9x9xf32> to vector<1x9x9xf32>
    %116 = vector.shape_cast %115 : vector<1x9x9xf32> to vector<9x9xf32>
    %117 = arith.addf %114, %116 : vector<9x9xf32>
    %118 = vector.broadcast %70 : vector<1x9xf32> to vector<9x9xf32>
    %119 = arith.addf %117, %118 : vector<9x9xf32>
    %cst_71 = arith.constant dense<0xFF800000> : vector<9xf32>
    %120 = vector.multi_reduction <maximumf>, %119, %cst_71 [1] : vector<9x9xf32> to vector<9xf32>
    %121 = vector.shape_cast %120 : vector<9xf32> to vector<9x1xf32>
    %122 = vector.broadcast %121 : vector<9x1xf32> to vector<9x9xf32>
    %123 = arith.subf %119, %122 : vector<9x9xf32>
    %124 = math.exp %123 : vector<9x9xf32>
    %cst_72 = arith.constant dense<0.000000e+00> : vector<9xf32>
    %125 = vector.multi_reduction <add>, %124, %cst_72 [1] : vector<9x9xf32> to vector<9xf32>
    %126 = vector.shape_cast %125 : vector<9xf32> to vector<9x1xf32>
    %127 = tpu.reciprocal %126 {approx = true} : vector<9x1xf32> -> vector<9x1xf32>
    %128 = vector.broadcast %127 : vector<9x1xf32> to vector<9x9xf32>
    %129 = arith.mulf %124, %128 : vector<9x9xf32>
    %130 = arith.truncf %129 : vector<9x9xf32> to vector<9x9xbf16>
    %131 = vector.extract_strided_slice %90 {offsets = [0, 8], sizes = [9, 8], strides = [1, 1]} : vector<9x32xbf16> to vector<9x8xbf16>
    %cst_73 = arith.constant dense<0.000000e+00> : vector<9x8xf32>
    %132 = tpu.matmul %130, %131, %cst_73 {dimension_numbers = #tpu.dot_dimension_numbers<[1], [0], [0], [1], [0, 0, 1, 1], [], []>} : vector<9x9xbf16>, vector<9x8xbf16>, vector<9x8xf32> -> vector<9x8xf32>
    %133 = vector.extract_strided_slice %88 {offsets = [0, 16], sizes = [9, 8], strides = [1, 1]} : vector<9x32xbf16> to vector<9x8xbf16>
    %134 = vector.extract_strided_slice %89 {offsets = [0, 16], sizes = [9, 8], strides = [1, 1]} : vector<9x32xbf16> to vector<9x8xbf16>
    %cst_74 = arith.constant dense<0.000000e+00> : vector<9x9xf32>
    %135 = tpu.matmul %133, %134, %cst_74 {dimension_numbers = #tpu.dot_dimension_numbers<[1], [1], [0], [0], [0, 0, 1, 0], [], []>} : vector<9x8xbf16>, vector<9x8xbf16>, vector<9x9xf32> -> vector<9x9xf32>
    %136 = vector.extract_strided_slice %3 {offsets = [2, 0, 0], sizes = [1, 9, 9], strides = [1, 1, 1]} : vector<4x9x9xf32> to vector<1x9x9xf32>
    %137 = vector.shape_cast %136 : vector<1x9x9xf32> to vector<9x9xf32>
    %138 = arith.addf %135, %137 : vector<9x9xf32>
    %139 = vector.broadcast %70 : vector<1x9xf32> to vector<9x9xf32>
    %140 = arith.addf %138, %139 : vector<9x9xf32>
    %cst_75 = arith.constant dense<0xFF800000> : vector<9xf32>
    %141 = vector.multi_reduction <maximumf>, %140, %cst_75 [1] : vector<9x9xf32> to vector<9xf32>
    %142 = vector.shape_cast %141 : vector<9xf32> to vector<9x1xf32>
    %143 = vector.broadcast %142 : vector<9x1xf32> to vector<9x9xf32>
    %144 = arith.subf %140, %143 : vector<9x9xf32>
    %145 = math.exp %144 : vector<9x9xf32>
    %cst_76 = arith.constant dense<0.000000e+00> : vector<9xf32>
    %146 = vector.multi_reduction <add>, %145, %cst_76 [1] : vector<9x9xf32> to vector<9xf32>
    %147 = vector.shape_cast %146 : vector<9xf32> to vector<9x1xf32>
    %148 = tpu.reciprocal %147 {approx = true} : vector<9x1xf32> -> vector<9x1xf32>
    %149 = vector.broadcast %148 : vector<9x1xf32> to vector<9x9xf32>
    %150 = arith.mulf %145, %149 : vector<9x9xf32>
    %151 = arith.truncf %150 : vector<9x9xf32> to vector<9x9xbf16>
    %152 = vector.extract_strided_slice %90 {offsets = [0, 16], sizes = [9, 8], strides = [1, 1]} : vector<9x32xbf16> to vector<9x8xbf16>
    %cst_77 = arith.constant dense<0.000000e+00> : vector<9x8xf32>
    %153 = tpu.matmul %151, %152, %cst_77 {dimension_numbers = #tpu.dot_dimension_numbers<[1], [0], [0], [1], [0, 0, 1, 1], [], []>} : vector<9x9xbf16>, vector<9x8xbf16>, vector<9x8xf32> -> vector<9x8xf32>
    %154 = vector.extract_strided_slice %88 {offsets = [0, 24], sizes = [9, 8], strides = [1, 1]} : vector<9x32xbf16> to vector<9x8xbf16>
    %155 = vector.extract_strided_slice %89 {offsets = [0, 24], sizes = [9, 8], strides = [1, 1]} : vector<9x32xbf16> to vector<9x8xbf16>
    %cst_78 = arith.constant dense<0.000000e+00> : vector<9x9xf32>
    %156 = tpu.matmul %154, %155, %cst_78 {dimension_numbers = #tpu.dot_dimension_numbers<[1], [1], [0], [0], [0, 0, 1, 0], [], []>} : vector<9x8xbf16>, vector<9x8xbf16>, vector<9x9xf32> -> vector<9x9xf32>
    %157 = vector.extract_strided_slice %3 {offsets = [3, 0, 0], sizes = [1, 9, 9], strides = [1, 1, 1]} : vector<4x9x9xf32> to vector<1x9x9xf32>
    %158 = vector.shape_cast %157 : vector<1x9x9xf32> to vector<9x9xf32>
    %159 = arith.addf %156, %158 : vector<9x9xf32>
    %160 = vector.broadcast %70 : vector<1x9xf32> to vector<9x9xf32>
    %161 = arith.addf %159, %160 : vector<9x9xf32>
    %cst_79 = arith.constant dense<0xFF800000> : vector<9xf32>
    %162 = vector.multi_reduction <maximumf>, %161, %cst_79 [1] : vector<9x9xf32> to vector<9xf32>
    %163 = vector.shape_cast %162 : vector<9xf32> to vector<9x1xf32>
    %164 = vector.broadcast %163 : vector<9x1xf32> to vector<9x9xf32>
    %165 = arith.subf %161, %164 : vector<9x9xf32>
    %166 = math.exp %165 : vector<9x9xf32>
    %cst_80 = arith.constant dense<0.000000e+00> : vector<9xf32>
    %167 = vector.multi_reduction <add>, %166, %cst_80 [1] : vector<9x9xf32> to vector<9xf32>
    %168 = vector.shape_cast %167 : vector<9xf32> to vector<9x1xf32>
    %169 = tpu.reciprocal %168 {approx = true} : vector<9x1xf32> -> vector<9x1xf32>
    %170 = vector.broadcast %169 : vector<9x1xf32> to vector<9x9xf32>
    %171 = arith.mulf %166, %170 : vector<9x9xf32>
    %172 = arith.truncf %171 : vector<9x9xf32> to vector<9x9xbf16>
    %173 = vector.extract_strided_slice %90 {offsets = [0, 24], sizes = [9, 8], strides = [1, 1]} : vector<9x32xbf16> to vector<9x8xbf16>
    %cst_81 = arith.constant dense<0.000000e+00> : vector<9x8xf32>
    %174 = tpu.matmul %172, %173, %cst_81 {dimension_numbers = #tpu.dot_dimension_numbers<[1], [0], [0], [1], [0, 0, 1, 1], [], []>} : vector<9x9xbf16>, vector<9x8xbf16>, vector<9x8xf32> -> vector<9x8xf32>
    %175 = tpu.concatenate %111, %132, %153, %174 in 1 : vector<9x8xf32>, vector<9x8xf32>, vector<9x8xf32>, vector<9x8xf32> -> vector<9x32xf32>
    %176 = arith.truncf %175 : vector<9x32xf32> to vector<9x32xbf16>
    %cst_82 = arith.constant dense<0.000000e+00> : vector<9x32xf32>
    %177 = tpu.matmul %176, %13, %cst_82 {dimension_numbers = #tpu.dot_dimension_numbers<[1], [0], [0], [1], [0, 0, 1, 1], [], []>} : vector<9x32xbf16>, vector<32x32xbf16>, vector<9x32xf32> -> vector<9x32xf32>
    %178 = arith.addf %65, %177 : vector<9x32xf32>
    %179 = arith.mulf %178, %178 : vector<9x32xf32>
    %cst_83 = arith.constant dense<0.000000e+00> : vector<9xf32>
    %180 = vector.multi_reduction <add>, %179, %cst_83 [1] : vector<9x32xf32> to vector<9xf32>
    %181 = vector.shape_cast %180 : vector<9xf32> to vector<9x1xf32>
    %cst_84 = arith.constant 3.200000e+01 : f32
    %182 = vector.broadcast %cst_84 : f32 to vector<9x1xf32>
    %183 = arith.divf %181, %182 : vector<9x1xf32>
    %cst_85 = arith.constant 9.99999997E-7 : f32
    %184 = vector.broadcast %cst_85 : f32 to vector<9x1xf32>
    %185 = arith.addf %183, %184 : vector<9x1xf32>
    %186 = math.rsqrt %185 : vector<9x1xf32>
    %187 = vector.broadcast %186 : vector<9x1xf32> to vector<9x32xf32>
    %188 = arith.mulf %178, %187 : vector<9x32xf32>
    %189 = vector.broadcast %8 : vector<1x32xf32> to vector<9x32xf32>
    %190 = arith.mulf %188, %189 : vector<9x32xf32>
    %191 = arith.truncf %190 : vector<9x32xf32> to vector<9x32xbf16>
    %cst_86 = arith.constant dense<0.000000e+00> : vector<9x64xf32>
    %192 = tpu.matmul %191, %15, %cst_86 {dimension_numbers = #tpu.dot_dimension_numbers<[1], [0], [0], [1], [0, 0, 1, 1], [], []>} : vector<9x32xbf16>, vector<32x64xbf16>, vector<9x64xf32> -> vector<9x64xf32>
    %cst_87 = arith.constant 0.000000e+00 : f32
    %193 = vector.broadcast %cst_87 : f32 to vector<9x64xf32>
    %194 = arith.maximumf %192, %193 : vector<9x64xf32>
    %195 = arith.truncf %194 : vector<9x64xf32> to vector<9x64xbf16>
    %cst_88 = arith.constant dense<0.000000e+00> : vector<9x32xf32>
    %196 = tpu.matmul %195, %17, %cst_88 {dimension_numbers = #tpu.dot_dimension_numbers<[1], [0], [0], [1], [0, 0, 1, 1], [], []>} : vector<9x64xbf16>, vector<64x32xbf16>, vector<9x32xf32> -> vector<9x32xf32>
    %197 = arith.addf %178, %196 : vector<9x32xf32>
    %198 = arith.mulf %197, %197 : vector<9x32xf32>
    %cst_89 = arith.constant dense<0.000000e+00> : vector<9xf32>
    %199 = vector.multi_reduction <add>, %198, %cst_89 [1] : vector<9x32xf32> to vector<9xf32>
    %200 = vector.shape_cast %199 : vector<9xf32> to vector<9x1xf32>
    %cst_90 = arith.constant 3.200000e+01 : f32
    %201 = vector.broadcast %cst_90 : f32 to vector<9x1xf32>
    %202 = arith.divf %200, %201 : vector<9x1xf32>
    %cst_91 = arith.constant 9.99999997E-7 : f32
    %203 = vector.broadcast %cst_91 : f32 to vector<9x1xf32>
    %204 = arith.addf %202, %203 : vector<9x1xf32>
    %205 = math.rsqrt %204 : vector<9x1xf32>
    %206 = vector.broadcast %205 : vector<9x1xf32> to vector<9x32xf32>
    %207 = arith.mulf %197, %206 : vector<9x32xf32>
    %208 = vector.broadcast %9 : vector<1x32xf32> to vector<9x32xf32>
    %209 = arith.mulf %207, %208 : vector<9x32xf32>
    %c0_92 = arith.constant 0 : index
    %210 = memref.load %arg1[%c0_92] : memref<16xi32, #tpu.memory_space<smem>>
    %211 = arith.index_cast %210 : i32 to index
    %c0_93 = arith.constant 0 : index
    %212 = vector.load %arg5[%211, %c0_93] : memref<64x32xf32, #tpu.memory_space<vmem>>, vector<1x32xf32>
    %c1_94 = arith.constant 1 : index
    %213 = memref.load %arg1[%c1_94] : memref<16xi32, #tpu.memory_space<smem>>
    %214 = arith.index_cast %213 : i32 to index
    %c0_95 = arith.constant 0 : index
    %215 = vector.load %arg5[%214, %c0_95] : memref<64x32xf32, #tpu.memory_space<vmem>>, vector<1x32xf32>
    %c2_96 = arith.constant 2 : index
    %216 = memref.load %arg1[%c2_96] : memref<16xi32, #tpu.memory_space<smem>>
    %217 = arith.index_cast %216 : i32 to index
    %c0_97 = arith.constant 0 : index
    %218 = vector.load %arg5[%217, %c0_97] : memref<64x32xf32, #tpu.memory_space<vmem>>, vector<1x32xf32>
    %c3_98 = arith.constant 3 : index
    %219 = memref.load %arg1[%c3_98] : memref<16xi32, #tpu.memory_space<smem>>
    %220 = arith.index_cast %219 : i32 to index
    %c0_99 = arith.constant 0 : index
    %221 = vector.load %arg5[%220, %c0_99] : memref<64x32xf32, #tpu.memory_space<vmem>>, vector<1x32xf32>
    %c4_100 = arith.constant 4 : index
    %222 = memref.load %arg1[%c4_100] : memref<16xi32, #tpu.memory_space<smem>>
    %223 = arith.index_cast %222 : i32 to index
    %c0_101 = arith.constant 0 : index
    %224 = vector.load %arg5[%223, %c0_101] : memref<64x32xf32, #tpu.memory_space<vmem>>, vector<1x32xf32>
    %c5_102 = arith.constant 5 : index
    %225 = memref.load %arg1[%c5_102] : memref<16xi32, #tpu.memory_space<smem>>
    %226 = arith.index_cast %225 : i32 to index
    %c0_103 = arith.constant 0 : index
    %227 = vector.load %arg5[%226, %c0_103] : memref<64x32xf32, #tpu.memory_space<vmem>>, vector<1x32xf32>
    %c6_104 = arith.constant 6 : index
    %228 = memref.load %arg1[%c6_104] : memref<16xi32, #tpu.memory_space<smem>>
    %229 = arith.index_cast %228 : i32 to index
    %c0_105 = arith.constant 0 : index
    %230 = vector.load %arg5[%229, %c0_105] : memref<64x32xf32, #tpu.memory_space<vmem>>, vector<1x32xf32>
    %c7_106 = arith.constant 7 : index
    %231 = memref.load %arg1[%c7_106] : memref<16xi32, #tpu.memory_space<smem>>
    %232 = arith.index_cast %231 : i32 to index
    %c0_107 = arith.constant 0 : index
    %233 = vector.load %arg5[%232, %c0_107] : memref<64x32xf32, #tpu.memory_space<vmem>>, vector<1x32xf32>
    %234 = tpu.concatenate %212, %215, %218, %221, %224, %227, %230, %233 in 0 : vector<1x32xf32>, vector<1x32xf32>, vector<1x32xf32>, vector<1x32xf32>, vector<1x32xf32>, vector<1x32xf32>, vector<1x32xf32>, vector<1x32xf32> -> vector<8x32xf32>
    %235 = arith.mulf %234, %234 : vector<8x32xf32>
    %cst_108 = arith.constant dense<0.000000e+00> : vector<8xf32>
    %236 = vector.multi_reduction <add>, %235, %cst_108 [1] : vector<8x32xf32> to vector<8xf32>
    %237 = vector.shape_cast %236 : vector<8xf32> to vector<8x1xf32>
    %cst_109 = arith.constant 3.200000e+01 : f32
    %238 = vector.broadcast %cst_109 : f32 to vector<8x1xf32>
    %239 = arith.divf %237, %238 : vector<8x1xf32>
    %cst_110 = arith.constant 9.99999997E-7 : f32
    %240 = vector.broadcast %cst_110 : f32 to vector<8x1xf32>
    %241 = arith.addf %239, %240 : vector<8x1xf32>
    %242 = math.rsqrt %241 : vector<8x1xf32>
    %243 = vector.broadcast %242 : vector<8x1xf32> to vector<8x32xf32>
    %244 = arith.mulf %234, %243 : vector<8x32xf32>
    %245 = vector.broadcast %18 : vector<1x32xf32> to vector<8x32xf32>
    %246 = arith.mulf %244, %245 : vector<8x32xf32>
    %247 = arith.truncf %246 : vector<8x32xf32> to vector<8x32xbf16>
    %cst_111 = arith.constant dense<0.000000e+00> : vector<8x96xf32>
    %248 = tpu.matmul %247, %23, %cst_111 {dimension_numbers = #tpu.dot_dimension_numbers<[1], [0], [0], [1], [0, 0, 1, 1], [], []>} : vector<8x32xbf16>, vector<32x96xbf16>, vector<8x96xf32> -> vector<8x96xf32>
    %249 = vector.extract_strided_slice %248 {offsets = [0, 0], sizes = [8, 32], strides = [1, 1]} : vector<8x96xf32> to vector<8x32xf32>
    %250 = vector.extract_strided_slice %248 {offsets = [0, 32], sizes = [8, 32], strides = [1, 1]} : vector<8x96xf32> to vector<8x32xf32>
    %251 = vector.extract_strided_slice %248 {offsets = [0, 64], sizes = [8, 32], strides = [1, 1]} : vector<8x96xf32> to vector<8x32xf32>
    %252 = arith.truncf %249 : vector<8x32xf32> to vector<8x32xbf16>
    %253 = arith.truncf %250 : vector<8x32xf32> to vector<8x32xbf16>
    %254 = arith.truncf %251 : vector<8x32xf32> to vector<8x32xbf16>
    %255 = vector.extract_strided_slice %252 {offsets = [0, 0], sizes = [8, 8], strides = [1, 1]} : vector<8x32xbf16> to vector<8x8xbf16>
    %256 = vector.extract_strided_slice %253 {offsets = [0, 0], sizes = [8, 8], strides = [1, 1]} : vector<8x32xbf16> to vector<8x8xbf16>
    %cst_112 = arith.constant dense<0.000000e+00> : vector<8x8xf32>
    %257 = tpu.matmul %255, %256, %cst_112 {dimension_numbers = #tpu.dot_dimension_numbers<[1], [1], [0], [0], [0, 0, 1, 0], [], []>} : vector<8x8xbf16>, vector<8x8xbf16>, vector<8x8xf32> -> vector<8x8xf32>
    %258 = vector.extract_strided_slice %4 {offsets = [0, 0, 0], sizes = [1, 8, 8], strides = [1, 1, 1]} : vector<4x8x8xf32> to vector<1x8x8xf32>
    %259 = vector.shape_cast %258 : vector<1x8x8xf32> to vector<8x8xf32>
    %260 = arith.addf %257, %259 : vector<8x8xf32>
    %cst_113 = arith.constant dense<0xFF800000> : vector<8xf32>
    %261 = vector.multi_reduction <maximumf>, %260, %cst_113 [1] : vector<8x8xf32> to vector<8xf32>
    %262 = vector.shape_cast %261 : vector<8xf32> to vector<8x1xf32>
    %263 = vector.broadcast %262 : vector<8x1xf32> to vector<8x8xf32>
    %264 = arith.subf %260, %263 : vector<8x8xf32>
    %265 = math.exp %264 : vector<8x8xf32>
    %cst_114 = arith.constant dense<0.000000e+00> : vector<8xf32>
    %266 = vector.multi_reduction <add>, %265, %cst_114 [1] : vector<8x8xf32> to vector<8xf32>
    %267 = vector.shape_cast %266 : vector<8xf32> to vector<8x1xf32>
    %268 = tpu.reciprocal %267 {approx = true} : vector<8x1xf32> -> vector<8x1xf32>
    %269 = vector.broadcast %268 : vector<8x1xf32> to vector<8x8xf32>
    %270 = arith.mulf %265, %269 : vector<8x8xf32>
    %271 = arith.truncf %270 : vector<8x8xf32> to vector<8x8xbf16>
    %272 = vector.extract_strided_slice %254 {offsets = [0, 0], sizes = [8, 8], strides = [1, 1]} : vector<8x32xbf16> to vector<8x8xbf16>
    %cst_115 = arith.constant dense<0.000000e+00> : vector<8x8xf32>
    %273 = tpu.matmul %271, %272, %cst_115 {dimension_numbers = #tpu.dot_dimension_numbers<[1], [0], [0], [1], [0, 0, 1, 1], [], []>} : vector<8x8xbf16>, vector<8x8xbf16>, vector<8x8xf32> -> vector<8x8xf32>
    %274 = vector.extract_strided_slice %252 {offsets = [0, 8], sizes = [8, 8], strides = [1, 1]} : vector<8x32xbf16> to vector<8x8xbf16>
    %275 = vector.extract_strided_slice %253 {offsets = [0, 8], sizes = [8, 8], strides = [1, 1]} : vector<8x32xbf16> to vector<8x8xbf16>
    %cst_116 = arith.constant dense<0.000000e+00> : vector<8x8xf32>
    %276 = tpu.matmul %274, %275, %cst_116 {dimension_numbers = #tpu.dot_dimension_numbers<[1], [1], [0], [0], [0, 0, 1, 0], [], []>} : vector<8x8xbf16>, vector<8x8xbf16>, vector<8x8xf32> -> vector<8x8xf32>
    %277 = vector.extract_strided_slice %4 {offsets = [1, 0, 0], sizes = [1, 8, 8], strides = [1, 1, 1]} : vector<4x8x8xf32> to vector<1x8x8xf32>
    %278 = vector.shape_cast %277 : vector<1x8x8xf32> to vector<8x8xf32>
    %279 = arith.addf %276, %278 : vector<8x8xf32>
    %cst_117 = arith.constant dense<0xFF800000> : vector<8xf32>
    %280 = vector.multi_reduction <maximumf>, %279, %cst_117 [1] : vector<8x8xf32> to vector<8xf32>
    %281 = vector.shape_cast %280 : vector<8xf32> to vector<8x1xf32>
    %282 = vector.broadcast %281 : vector<8x1xf32> to vector<8x8xf32>
    %283 = arith.subf %279, %282 : vector<8x8xf32>
    %284 = math.exp %283 : vector<8x8xf32>
    %cst_118 = arith.constant dense<0.000000e+00> : vector<8xf32>
    %285 = vector.multi_reduction <add>, %284, %cst_118 [1] : vector<8x8xf32> to vector<8xf32>
    %286 = vector.shape_cast %285 : vector<8xf32> to vector<8x1xf32>
    %287 = tpu.reciprocal %286 {approx = true} : vector<8x1xf32> -> vector<8x1xf32>
    %288 = vector.broadcast %287 : vector<8x1xf32> to vector<8x8xf32>
    %289 = arith.mulf %284, %288 : vector<8x8xf32>
    %290 = arith.truncf %289 : vector<8x8xf32> to vector<8x8xbf16>
    %291 = vector.extract_strided_slice %254 {offsets = [0, 8], sizes = [8, 8], strides = [1, 1]} : vector<8x32xbf16> to vector<8x8xbf16>
    %cst_119 = arith.constant dense<0.000000e+00> : vector<8x8xf32>
    %292 = tpu.matmul %290, %291, %cst_119 {dimension_numbers = #tpu.dot_dimension_numbers<[1], [0], [0], [1], [0, 0, 1, 1], [], []>} : vector<8x8xbf16>, vector<8x8xbf16>, vector<8x8xf32> -> vector<8x8xf32>
    %293 = vector.extract_strided_slice %252 {offsets = [0, 16], sizes = [8, 8], strides = [1, 1]} : vector<8x32xbf16> to vector<8x8xbf16>
    %294 = vector.extract_strided_slice %253 {offsets = [0, 16], sizes = [8, 8], strides = [1, 1]} : vector<8x32xbf16> to vector<8x8xbf16>
    %cst_120 = arith.constant dense<0.000000e+00> : vector<8x8xf32>
    %295 = tpu.matmul %293, %294, %cst_120 {dimension_numbers = #tpu.dot_dimension_numbers<[1], [1], [0], [0], [0, 0, 1, 0], [], []>} : vector<8x8xbf16>, vector<8x8xbf16>, vector<8x8xf32> -> vector<8x8xf32>
    %296 = vector.extract_strided_slice %4 {offsets = [2, 0, 0], sizes = [1, 8, 8], strides = [1, 1, 1]} : vector<4x8x8xf32> to vector<1x8x8xf32>
    %297 = vector.shape_cast %296 : vector<1x8x8xf32> to vector<8x8xf32>
    %298 = arith.addf %295, %297 : vector<8x8xf32>
    %cst_121 = arith.constant dense<0xFF800000> : vector<8xf32>
    %299 = vector.multi_reduction <maximumf>, %298, %cst_121 [1] : vector<8x8xf32> to vector<8xf32>
    %300 = vector.shape_cast %299 : vector<8xf32> to vector<8x1xf32>
    %301 = vector.broadcast %300 : vector<8x1xf32> to vector<8x8xf32>
    %302 = arith.subf %298, %301 : vector<8x8xf32>
    %303 = math.exp %302 : vector<8x8xf32>
    %cst_122 = arith.constant dense<0.000000e+00> : vector<8xf32>
    %304 = vector.multi_reduction <add>, %303, %cst_122 [1] : vector<8x8xf32> to vector<8xf32>
    %305 = vector.shape_cast %304 : vector<8xf32> to vector<8x1xf32>
    %306 = tpu.reciprocal %305 {approx = true} : vector<8x1xf32> -> vector<8x1xf32>
    %307 = vector.broadcast %306 : vector<8x1xf32> to vector<8x8xf32>
    %308 = arith.mulf %303, %307 : vector<8x8xf32>
    %309 = arith.truncf %308 : vector<8x8xf32> to vector<8x8xbf16>
    %310 = vector.extract_strided_slice %254 {offsets = [0, 16], sizes = [8, 8], strides = [1, 1]} : vector<8x32xbf16> to vector<8x8xbf16>
    %cst_123 = arith.constant dense<0.000000e+00> : vector<8x8xf32>
    %311 = tpu.matmul %309, %310, %cst_123 {dimension_numbers = #tpu.dot_dimension_numbers<[1], [0], [0], [1], [0, 0, 1, 1], [], []>} : vector<8x8xbf16>, vector<8x8xbf16>, vector<8x8xf32> -> vector<8x8xf32>
    %312 = vector.extract_strided_slice %252 {offsets = [0, 24], sizes = [8, 8], strides = [1, 1]} : vector<8x32xbf16> to vector<8x8xbf16>
    %313 = vector.extract_strided_slice %253 {offsets = [0, 24], sizes = [8, 8], strides = [1, 1]} : vector<8x32xbf16> to vector<8x8xbf16>
    %cst_124 = arith.constant dense<0.000000e+00> : vector<8x8xf32>
    %314 = tpu.matmul %312, %313, %cst_124 {dimension_numbers = #tpu.dot_dimension_numbers<[1], [1], [0], [0], [0, 0, 1, 0], [], []>} : vector<8x8xbf16>, vector<8x8xbf16>, vector<8x8xf32> -> vector<8x8xf32>
    %315 = vector.extract_strided_slice %4 {offsets = [3, 0, 0], sizes = [1, 8, 8], strides = [1, 1, 1]} : vector<4x8x8xf32> to vector<1x8x8xf32>
    %316 = vector.shape_cast %315 : vector<1x8x8xf32> to vector<8x8xf32>
    %317 = arith.addf %314, %316 : vector<8x8xf32>
    %cst_125 = arith.constant dense<0xFF800000> : vector<8xf32>
    %318 = vector.multi_reduction <maximumf>, %317, %cst_125 [1] : vector<8x8xf32> to vector<8xf32>
    %319 = vector.shape_cast %318 : vector<8xf32> to vector<8x1xf32>
    %320 = vector.broadcast %319 : vector<8x1xf32> to vector<8x8xf32>
    %321 = arith.subf %317, %320 : vector<8x8xf32>
    %322 = math.exp %321 : vector<8x8xf32>
    %cst_126 = arith.constant dense<0.000000e+00> : vector<8xf32>
    %323 = vector.multi_reduction <add>, %322, %cst_126 [1] : vector<8x8xf32> to vector<8xf32>
    %324 = vector.shape_cast %323 : vector<8xf32> to vector<8x1xf32>
    %325 = tpu.reciprocal %324 {approx = true} : vector<8x1xf32> -> vector<8x1xf32>
    %326 = vector.broadcast %325 : vector<8x1xf32> to vector<8x8xf32>
    %327 = arith.mulf %322, %326 : vector<8x8xf32>
    %328 = arith.truncf %327 : vector<8x8xf32> to vector<8x8xbf16>
    %329 = vector.extract_strided_slice %254 {offsets = [0, 24], sizes = [8, 8], strides = [1, 1]} : vector<8x32xbf16> to vector<8x8xbf16>
    %cst_127 = arith.constant dense<0.000000e+00> : vector<8x8xf32>
    %330 = tpu.matmul %328, %329, %cst_127 {dimension_numbers = #tpu.dot_dimension_numbers<[1], [0], [0], [1], [0, 0, 1, 1], [], []>} : vector<8x8xbf16>, vector<8x8xbf16>, vector<8x8xf32> -> vector<8x8xf32>
    %331 = tpu.concatenate %273, %292, %311, %330 in 1 : vector<8x8xf32>, vector<8x8xf32>, vector<8x8xf32>, vector<8x8xf32> -> vector<8x32xf32>
    %332 = arith.truncf %331 : vector<8x32xf32> to vector<8x32xbf16>
    %cst_128 = arith.constant dense<0.000000e+00> : vector<8x32xf32>
    %333 = tpu.matmul %332, %25, %cst_128 {dimension_numbers = #tpu.dot_dimension_numbers<[1], [0], [0], [1], [0, 0, 1, 1], [], []>} : vector<8x32xbf16>, vector<32x32xbf16>, vector<8x32xf32> -> vector<8x32xf32>
    %334 = arith.addf %234, %333 : vector<8x32xf32>
    %335 = arith.mulf %334, %334 : vector<8x32xf32>
    %cst_129 = arith.constant dense<0.000000e+00> : vector<8xf32>
    %336 = vector.multi_reduction <add>, %335, %cst_129 [1] : vector<8x32xf32> to vector<8xf32>
    %337 = vector.shape_cast %336 : vector<8xf32> to vector<8x1xf32>
    %cst_130 = arith.constant 3.200000e+01 : f32
    %338 = vector.broadcast %cst_130 : f32 to vector<8x1xf32>
    %339 = arith.divf %337, %338 : vector<8x1xf32>
    %cst_131 = arith.constant 9.99999997E-7 : f32
    %340 = vector.broadcast %cst_131 : f32 to vector<8x1xf32>
    %341 = arith.addf %339, %340 : vector<8x1xf32>
    %342 = math.rsqrt %341 : vector<8x1xf32>
    %343 = vector.broadcast %342 : vector<8x1xf32> to vector<8x32xf32>
    %344 = arith.mulf %334, %343 : vector<8x32xf32>
    %345 = vector.broadcast %19 : vector<1x32xf32> to vector<8x32xf32>
    %346 = arith.mulf %344, %345 : vector<8x32xf32>
    %347 = arith.truncf %346 : vector<8x32xf32> to vector<8x32xbf16>
    %cst_132 = arith.constant dense<0.000000e+00> : vector<8x32xf32>
    %348 = tpu.matmul %347, %27, %cst_132 {dimension_numbers = #tpu.dot_dimension_numbers<[1], [0], [0], [1], [0, 0, 1, 1], [], []>} : vector<8x32xbf16>, vector<32x32xbf16>, vector<8x32xf32> -> vector<8x32xf32>
    %349 = arith.truncf %209 : vector<9x32xf32> to vector<9x32xbf16>
    %cst_133 = arith.constant dense<0.000000e+00> : vector<9x64xf32>
    %350 = tpu.matmul %349, %29, %cst_133 {dimension_numbers = #tpu.dot_dimension_numbers<[1], [0], [0], [1], [0, 0, 1, 1], [], []>} : vector<9x32xbf16>, vector<32x64xbf16>, vector<9x64xf32> -> vector<9x64xf32>
    %351 = vector.extract_strided_slice %350 {offsets = [0, 0], sizes = [9, 32], strides = [1, 1]} : vector<9x64xf32> to vector<9x32xf32>
    %352 = vector.extract_strided_slice %350 {offsets = [0, 32], sizes = [9, 32], strides = [1, 1]} : vector<9x64xf32> to vector<9x32xf32>
    %353 = arith.truncf %348 : vector<8x32xf32> to vector<8x32xbf16>
    %354 = arith.truncf %351 : vector<9x32xf32> to vector<9x32xbf16>
    %355 = arith.truncf %352 : vector<9x32xf32> to vector<9x32xbf16>
    %356 = vector.extract_strided_slice %353 {offsets = [0, 0], sizes = [8, 8], strides = [1, 1]} : vector<8x32xbf16> to vector<8x8xbf16>
    %357 = vector.extract_strided_slice %354 {offsets = [0, 0], sizes = [9, 8], strides = [1, 1]} : vector<9x32xbf16> to vector<9x8xbf16>
    %cst_134 = arith.constant dense<0.000000e+00> : vector<8x9xf32>
    %358 = tpu.matmul %356, %357, %cst_134 {dimension_numbers = #tpu.dot_dimension_numbers<[1], [1], [0], [0], [0, 0, 1, 0], [], []>} : vector<8x8xbf16>, vector<9x8xbf16>, vector<8x9xf32> -> vector<8x9xf32>
    %359 = vector.broadcast %70 : vector<1x9xf32> to vector<8x9xf32>
    %360 = arith.addf %358, %359 : vector<8x9xf32>
    %cst_135 = arith.constant dense<0xFF800000> : vector<8xf32>
    %361 = vector.multi_reduction <maximumf>, %360, %cst_135 [1] : vector<8x9xf32> to vector<8xf32>
    %362 = vector.shape_cast %361 : vector<8xf32> to vector<8x1xf32>
    %363 = vector.broadcast %362 : vector<8x1xf32> to vector<8x9xf32>
    %364 = arith.subf %360, %363 : vector<8x9xf32>
    %365 = math.exp %364 : vector<8x9xf32>
    %cst_136 = arith.constant dense<0.000000e+00> : vector<8xf32>
    %366 = vector.multi_reduction <add>, %365, %cst_136 [1] : vector<8x9xf32> to vector<8xf32>
    %367 = vector.shape_cast %366 : vector<8xf32> to vector<8x1xf32>
    %368 = tpu.reciprocal %367 {approx = true} : vector<8x1xf32> -> vector<8x1xf32>
    %369 = vector.broadcast %368 : vector<8x1xf32> to vector<8x9xf32>
    %370 = arith.mulf %365, %369 : vector<8x9xf32>
    %371 = arith.truncf %370 : vector<8x9xf32> to vector<8x9xbf16>
    %372 = vector.extract_strided_slice %355 {offsets = [0, 0], sizes = [9, 8], strides = [1, 1]} : vector<9x32xbf16> to vector<9x8xbf16>
    %cst_137 = arith.constant dense<0.000000e+00> : vector<8x8xf32>
    %373 = tpu.matmul %371, %372, %cst_137 {dimension_numbers = #tpu.dot_dimension_numbers<[1], [0], [0], [1], [0, 0, 1, 1], [], []>} : vector<8x9xbf16>, vector<9x8xbf16>, vector<8x8xf32> -> vector<8x8xf32>
    %374 = vector.extract_strided_slice %353 {offsets = [0, 8], sizes = [8, 8], strides = [1, 1]} : vector<8x32xbf16> to vector<8x8xbf16>
    %375 = vector.extract_strided_slice %354 {offsets = [0, 8], sizes = [9, 8], strides = [1, 1]} : vector<9x32xbf16> to vector<9x8xbf16>
    %cst_138 = arith.constant dense<0.000000e+00> : vector<8x9xf32>
    %376 = tpu.matmul %374, %375, %cst_138 {dimension_numbers = #tpu.dot_dimension_numbers<[1], [1], [0], [0], [0, 0, 1, 0], [], []>} : vector<8x8xbf16>, vector<9x8xbf16>, vector<8x9xf32> -> vector<8x9xf32>
    %377 = vector.broadcast %70 : vector<1x9xf32> to vector<8x9xf32>
    %378 = arith.addf %376, %377 : vector<8x9xf32>
    %cst_139 = arith.constant dense<0xFF800000> : vector<8xf32>
    %379 = vector.multi_reduction <maximumf>, %378, %cst_139 [1] : vector<8x9xf32> to vector<8xf32>
    %380 = vector.shape_cast %379 : vector<8xf32> to vector<8x1xf32>
    %381 = vector.broadcast %380 : vector<8x1xf32> to vector<8x9xf32>
    %382 = arith.subf %378, %381 : vector<8x9xf32>
    %383 = math.exp %382 : vector<8x9xf32>
    %cst_140 = arith.constant dense<0.000000e+00> : vector<8xf32>
    %384 = vector.multi_reduction <add>, %383, %cst_140 [1] : vector<8x9xf32> to vector<8xf32>
    %385 = vector.shape_cast %384 : vector<8xf32> to vector<8x1xf32>
    %386 = tpu.reciprocal %385 {approx = true} : vector<8x1xf32> -> vector<8x1xf32>
    %387 = vector.broadcast %386 : vector<8x1xf32> to vector<8x9xf32>
    %388 = arith.mulf %383, %387 : vector<8x9xf32>
    %389 = arith.truncf %388 : vector<8x9xf32> to vector<8x9xbf16>
    %390 = vector.extract_strided_slice %355 {offsets = [0, 8], sizes = [9, 8], strides = [1, 1]} : vector<9x32xbf16> to vector<9x8xbf16>
    %cst_141 = arith.constant dense<0.000000e+00> : vector<8x8xf32>
    %391 = tpu.matmul %389, %390, %cst_141 {dimension_numbers = #tpu.dot_dimension_numbers<[1], [0], [0], [1], [0, 0, 1, 1], [], []>} : vector<8x9xbf16>, vector<9x8xbf16>, vector<8x8xf32> -> vector<8x8xf32>
    %392 = vector.extract_strided_slice %353 {offsets = [0, 16], sizes = [8, 8], strides = [1, 1]} : vector<8x32xbf16> to vector<8x8xbf16>
    %393 = vector.extract_strided_slice %354 {offsets = [0, 16], sizes = [9, 8], strides = [1, 1]} : vector<9x32xbf16> to vector<9x8xbf16>
    %cst_142 = arith.constant dense<0.000000e+00> : vector<8x9xf32>
    %394 = tpu.matmul %392, %393, %cst_142 {dimension_numbers = #tpu.dot_dimension_numbers<[1], [1], [0], [0], [0, 0, 1, 0], [], []>} : vector<8x8xbf16>, vector<9x8xbf16>, vector<8x9xf32> -> vector<8x9xf32>
    %395 = vector.broadcast %70 : vector<1x9xf32> to vector<8x9xf32>
    %396 = arith.addf %394, %395 : vector<8x9xf32>
    %cst_143 = arith.constant dense<0xFF800000> : vector<8xf32>
    %397 = vector.multi_reduction <maximumf>, %396, %cst_143 [1] : vector<8x9xf32> to vector<8xf32>
    %398 = vector.shape_cast %397 : vector<8xf32> to vector<8x1xf32>
    %399 = vector.broadcast %398 : vector<8x1xf32> to vector<8x9xf32>
    %400 = arith.subf %396, %399 : vector<8x9xf32>
    %401 = math.exp %400 : vector<8x9xf32>
    %cst_144 = arith.constant dense<0.000000e+00> : vector<8xf32>
    %402 = vector.multi_reduction <add>, %401, %cst_144 [1] : vector<8x9xf32> to vector<8xf32>
    %403 = vector.shape_cast %402 : vector<8xf32> to vector<8x1xf32>
    %404 = tpu.reciprocal %403 {approx = true} : vector<8x1xf32> -> vector<8x1xf32>
    %405 = vector.broadcast %404 : vector<8x1xf32> to vector<8x9xf32>
    %406 = arith.mulf %401, %405 : vector<8x9xf32>
    %407 = arith.truncf %406 : vector<8x9xf32> to vector<8x9xbf16>
    %408 = vector.extract_strided_slice %355 {offsets = [0, 16], sizes = [9, 8], strides = [1, 1]} : vector<9x32xbf16> to vector<9x8xbf16>
    %cst_145 = arith.constant dense<0.000000e+00> : vector<8x8xf32>
    %409 = tpu.matmul %407, %408, %cst_145 {dimension_numbers = #tpu.dot_dimension_numbers<[1], [0], [0], [1], [0, 0, 1, 1], [], []>} : vector<8x9xbf16>, vector<9x8xbf16>, vector<8x8xf32> -> vector<8x8xf32>
    %410 = vector.extract_strided_slice %353 {offsets = [0, 24], sizes = [8, 8], strides = [1, 1]} : vector<8x32xbf16> to vector<8x8xbf16>
    %411 = vector.extract_strided_slice %354 {offsets = [0, 24], sizes = [9, 8], strides = [1, 1]} : vector<9x32xbf16> to vector<9x8xbf16>
    %cst_146 = arith.constant dense<0.000000e+00> : vector<8x9xf32>
    %412 = tpu.matmul %410, %411, %cst_146 {dimension_numbers = #tpu.dot_dimension_numbers<[1], [1], [0], [0], [0, 0, 1, 0], [], []>} : vector<8x8xbf16>, vector<9x8xbf16>, vector<8x9xf32> -> vector<8x9xf32>
    %413 = vector.broadcast %70 : vector<1x9xf32> to vector<8x9xf32>
    %414 = arith.addf %412, %413 : vector<8x9xf32>
    %cst_147 = arith.constant dense<0xFF800000> : vector<8xf32>
    %415 = vector.multi_reduction <maximumf>, %414, %cst_147 [1] : vector<8x9xf32> to vector<8xf32>
    %416 = vector.shape_cast %415 : vector<8xf32> to vector<8x1xf32>
    %417 = vector.broadcast %416 : vector<8x1xf32> to vector<8x9xf32>
    %418 = arith.subf %414, %417 : vector<8x9xf32>
    %419 = math.exp %418 : vector<8x9xf32>
    %cst_148 = arith.constant dense<0.000000e+00> : vector<8xf32>
    %420 = vector.multi_reduction <add>, %419, %cst_148 [1] : vector<8x9xf32> to vector<8xf32>
    %421 = vector.shape_cast %420 : vector<8xf32> to vector<8x1xf32>
    %422 = tpu.reciprocal %421 {approx = true} : vector<8x1xf32> -> vector<8x1xf32>
    %423 = vector.broadcast %422 : vector<8x1xf32> to vector<8x9xf32>
    %424 = arith.mulf %419, %423 : vector<8x9xf32>
    %425 = arith.truncf %424 : vector<8x9xf32> to vector<8x9xbf16>
    %426 = vector.extract_strided_slice %355 {offsets = [0, 24], sizes = [9, 8], strides = [1, 1]} : vector<9x32xbf16> to vector<9x8xbf16>
    %cst_149 = arith.constant dense<0.000000e+00> : vector<8x8xf32>
    %427 = tpu.matmul %425, %426, %cst_149 {dimension_numbers = #tpu.dot_dimension_numbers<[1], [0], [0], [1], [0, 0, 1, 1], [], []>} : vector<8x9xbf16>, vector<9x8xbf16>, vector<8x8xf32> -> vector<8x8xf32>
    %428 = tpu.concatenate %373, %391, %409, %427 in 1 : vector<8x8xf32>, vector<8x8xf32>, vector<8x8xf32>, vector<8x8xf32> -> vector<8x32xf32>
    %429 = arith.truncf %428 : vector<8x32xf32> to vector<8x32xbf16>
    %cst_150 = arith.constant dense<0.000000e+00> : vector<8x32xf32>
    %430 = tpu.matmul %429, %31, %cst_150 {dimension_numbers = #tpu.dot_dimension_numbers<[1], [0], [0], [1], [0, 0, 1, 1], [], []>} : vector<8x32xbf16>, vector<32x32xbf16>, vector<8x32xf32> -> vector<8x32xf32>
    %431 = arith.addf %334, %430 : vector<8x32xf32>
    %432 = arith.mulf %431, %431 : vector<8x32xf32>
    %cst_151 = arith.constant dense<0.000000e+00> : vector<8xf32>
    %433 = vector.multi_reduction <add>, %432, %cst_151 [1] : vector<8x32xf32> to vector<8xf32>
    %434 = vector.shape_cast %433 : vector<8xf32> to vector<8x1xf32>
    %cst_152 = arith.constant 3.200000e+01 : f32
    %435 = vector.broadcast %cst_152 : f32 to vector<8x1xf32>
    %436 = arith.divf %434, %435 : vector<8x1xf32>
    %cst_153 = arith.constant 9.99999997E-7 : f32
    %437 = vector.broadcast %cst_153 : f32 to vector<8x1xf32>
    %438 = arith.addf %436, %437 : vector<8x1xf32>
    %439 = math.rsqrt %438 : vector<8x1xf32>
    %440 = vector.broadcast %439 : vector<8x1xf32> to vector<8x32xf32>
    %441 = arith.mulf %431, %440 : vector<8x32xf32>
    %442 = vector.broadcast %20 : vector<1x32xf32> to vector<8x32xf32>
    %443 = arith.mulf %441, %442 : vector<8x32xf32>
    %444 = arith.truncf %443 : vector<8x32xf32> to vector<8x32xbf16>
    %cst_154 = arith.constant dense<0.000000e+00> : vector<8x64xf32>
    %445 = tpu.matmul %444, %33, %cst_154 {dimension_numbers = #tpu.dot_dimension_numbers<[1], [0], [0], [1], [0, 0, 1, 1], [], []>} : vector<8x32xbf16>, vector<32x64xbf16>, vector<8x64xf32> -> vector<8x64xf32>
    %cst_155 = arith.constant 0.000000e+00 : f32
    %446 = vector.broadcast %cst_155 : f32 to vector<8x64xf32>
    %447 = arith.maximumf %445, %446 : vector<8x64xf32>
    %448 = arith.truncf %447 : vector<8x64xf32> to vector<8x64xbf16>
    %cst_156 = arith.constant dense<0.000000e+00> : vector<8x32xf32>
    %449 = tpu.matmul %448, %35, %cst_156 {dimension_numbers = #tpu.dot_dimension_numbers<[1], [0], [0], [1], [0, 0, 1, 1], [], []>} : vector<8x64xbf16>, vector<64x32xbf16>, vector<8x32xf32> -> vector<8x32xf32>
    %450 = arith.addf %431, %449 : vector<8x32xf32>
    %451 = arith.mulf %450, %450 : vector<8x32xf32>
    %cst_157 = arith.constant dense<0.000000e+00> : vector<8xf32>
    %452 = vector.multi_reduction <add>, %451, %cst_157 [1] : vector<8x32xf32> to vector<8xf32>
    %453 = vector.shape_cast %452 : vector<8xf32> to vector<8x1xf32>
    %cst_158 = arith.constant 3.200000e+01 : f32
    %454 = vector.broadcast %cst_158 : f32 to vector<8x1xf32>
    %455 = arith.divf %453, %454 : vector<8x1xf32>
    %cst_159 = arith.constant 9.99999997E-7 : f32
    %456 = vector.broadcast %cst_159 : f32 to vector<8x1xf32>
    %457 = arith.addf %455, %456 : vector<8x1xf32>
    %458 = math.rsqrt %457 : vector<8x1xf32>
    %459 = vector.broadcast %458 : vector<8x1xf32> to vector<8x32xf32>
    %460 = arith.mulf %450, %459 : vector<8x32xf32>
    %461 = vector.broadcast %21 : vector<1x32xf32> to vector<8x32xf32>
    %462 = arith.mulf %460, %461 : vector<8x32xf32>
    %cst_160 = arith.constant 0.176776692 : f32
    %463 = vector.broadcast %cst_160 : f32 to vector<8x32xf32>
    %464 = arith.mulf %462, %463 : vector<8x32xf32>
    %465 = arith.truncf %464 : vector<8x32xf32> to vector<8x32xbf16>
    %cst_161 = arith.constant dense<0.000000e+00> : vector<8x64xf32>
    %466 = tpu.matmul %465, %6, %cst_161 {dimension_numbers = #tpu.dot_dimension_numbers<[1], [1], [0], [0], [0, 0, 1, 0], [], []>} : vector<8x32xbf16>, vector<64x32xbf16>, vector<8x64xf32> -> vector<8x64xf32>
    %c0_162 = arith.constant 0 : index
    %c0_163 = arith.constant 0 : index
    %c0_164 = arith.constant 0 : index
    %467 = vector.load %arg28[%c0_162, %c0_163, %c0_164] : memref<2x8x64xf32, #tpu.memory_space<vmem>>, vector<1x8x64xf32>
    %468 = vector.shape_cast %467 : vector<1x8x64xf32> to vector<8x64xf32>
    %469 = vector.shape_cast %466 : vector<8x64xf32> to vector<1x8x64xf32>
    tpu.vector_store %arg28[%c0_162, %c0_163, %c0_164], %469 {strides = array<i32>} : memref<2x8x64xf32, #tpu.memory_space<vmem>>, vector<1x8x64xf32>,
    %cst_165 = arith.constant dense<0xFF800000> : vector<8xf32>
    %470 = vector.multi_reduction <maximumf>, %466, %cst_165 [1] : vector<8x64xf32> to vector<8xf32>
    %471 = vector.shape_cast %470 : vector<8xf32> to vector<8x1xf32>
    %472 = vector.broadcast %471 : vector<8x1xf32> to vector<8x64xf32>
    %473 = arith.subf %466, %472 : vector<8x64xf32>
    %474 = math.exp %473 : vector<8x64xf32>
    %cst_166 = arith.constant dense<0.000000e+00> : vector<8xf32>
    %475 = vector.multi_reduction <add>, %474, %cst_166 [1] : vector<8x64xf32> to vector<8xf32>
    %476 = vector.shape_cast %475 : vector<8xf32> to vector<8x1xf32>
    %477 = math.log %476 : vector<8x1xf32>
    %478 = arith.addf %477, %471 : vector<8x1xf32>
    %479 = tpu.iota {dimensions = array<i32: 1>} : vector<1x64xi32>
    %c0_167 = arith.constant 0 : index
    %480 = memref.load %arg2[%c0_167] : memref<16xi32, #tpu.memory_space<smem>>
    %481 = vector.broadcast %480 : i32 to vector<1x64xi32>
    %482 = arith.cmpi eq, %479, %481 : vector<1x64xi32>
    %483 = arith.extui %482 : vector<1x64xi1> to vector<1x64xi32>
    %484 = arith.sitofp %483 : vector<1x64xi32> to vector<1x64xf32>
    %485 = tpu.iota {dimensions = array<i32: 1>} : vector<1x64xi32>
    %c1_168 = arith.constant 1 : index
    %486 = memref.load %arg2[%c1_168] : memref<16xi32, #tpu.memory_space<smem>>
    %487 = vector.broadcast %486 : i32 to vector<1x64xi32>
    %488 = arith.cmpi eq, %485, %487 : vector<1x64xi32>
    %489 = arith.extui %488 : vector<1x64xi1> to vector<1x64xi32>
    %490 = arith.sitofp %489 : vector<1x64xi32> to vector<1x64xf32>
    %491 = tpu.iota {dimensions = array<i32: 1>} : vector<1x64xi32>
    %c2_169 = arith.constant 2 : index
    %492 = memref.load %arg2[%c2_169] : memref<16xi32, #tpu.memory_space<smem>>
    %493 = vector.broadcast %492 : i32 to vector<1x64xi32>
    %494 = arith.cmpi eq, %491, %493 : vector<1x64xi32>
    %495 = arith.extui %494 : vector<1x64xi1> to vector<1x64xi32>
    %496 = arith.sitofp %495 : vector<1x64xi32> to vector<1x64xf32>
    %497 = tpu.iota {dimensions = array<i32: 1>} : vector<1x64xi32>
    %c3_170 = arith.constant 3 : index
    %498 = memref.load %arg2[%c3_170] : memref<16xi32, #tpu.memory_space<smem>>
    %499 = vector.broadcast %498 : i32 to vector<1x64xi32>
    %500 = arith.cmpi eq, %497, %499 : vector<1x64xi32>
    %501 = arith.extui %500 : vector<1x64xi1> to vector<1x64xi32>
    %502 = arith.sitofp %501 : vector<1x64xi32> to vector<1x64xf32>
    %503 = tpu.iota {dimensions = array<i32: 1>} : vector<1x64xi32>
    %c4_171 = arith.constant 4 : index
    %504 = memref.load %arg2[%c4_171] : memref<16xi32, #tpu.memory_space<smem>>
    %505 = vector.broadcast %504 : i32 to vector<1x64xi32>
    %506 = arith.cmpi eq, %503, %505 : vector<1x64xi32>
    %507 = arith.extui %506 : vector<1x64xi1> to vector<1x64xi32>
    %508 = arith.sitofp %507 : vector<1x64xi32> to vector<1x64xf32>
    %509 = tpu.iota {dimensions = array<i32: 1>} : vector<1x64xi32>
    %c5_172 = arith.constant 5 : index
    %510 = memref.load %arg2[%c5_172] : memref<16xi32, #tpu.memory_space<smem>>
    %511 = vector.broadcast %510 : i32 to vector<1x64xi32>
    %512 = arith.cmpi eq, %509, %511 : vector<1x64xi32>
    %513 = arith.extui %512 : vector<1x64xi1> to vector<1x64xi32>
    %514 = arith.sitofp %513 : vector<1x64xi32> to vector<1x64xf32>
    %515 = tpu.iota {dimensions = array<i32: 1>} : vector<1x64xi32>
    %c6_173 = arith.constant 6 : index
    %516 = memref.load %arg2[%c6_173] : memref<16xi32, #tpu.memory_space<smem>>
    %517 = vector.broadcast %516 : i32 to vector<1x64xi32>
    %518 = arith.cmpi eq, %515, %517 : vector<1x64xi32>
    %519 = arith.extui %518 : vector<1x64xi1> to vector<1x64xi32>
    %520 = arith.sitofp %519 : vector<1x64xi32> to vector<1x64xf32>
    %521 = tpu.iota {dimensions = array<i32: 1>} : vector<1x64xi32>
    %c7_174 = arith.constant 7 : index
    %522 = memref.load %arg2[%c7_174] : memref<16xi32, #tpu.memory_space<smem>>
    %523 = vector.broadcast %522 : i32 to vector<1x64xi32>
    %524 = arith.cmpi eq, %521, %523 : vector<1x64xi32>
    %525 = arith.extui %524 : vector<1x64xi1> to vector<1x64xi32>
    %526 = arith.sitofp %525 : vector<1x64xi32> to vector<1x64xf32>
    %527 = tpu.concatenate %484, %490, %496, %502, %508, %514, %520, %526 in 0 : vector<1x64xf32>, vector<1x64xf32>, vector<1x64xf32>, vector<1x64xf32>, vector<1x64xf32>, vector<1x64xf32>, vector<1x64xf32>, vector<1x64xf32> -> vector<8x64xf32>
    %cst_175 = arith.constant dense<0.000000e+00> : vector<8xf32>
    %528 = vector.multi_reduction <add>, %527, %cst_175 [1] : vector<8x64xf32> to vector<8xf32>
    %529 = vector.shape_cast %528 : vector<8xf32> to vector<8x1xf32>
    %530 = arith.mulf %527, %466 : vector<8x64xf32>
    %cst_176 = arith.constant dense<0.000000e+00> : vector<8xf32>
    %531 = vector.multi_reduction <add>, %530, %cst_176 [1] : vector<8x64xf32> to vector<8xf32>
    %532 = vector.shape_cast %531 : vector<8xf32> to vector<8x1xf32>
    %533 = arith.mulf %478, %529 : vector<8x1xf32>
    %534 = arith.subf %533, %532 : vector<8x1xf32>
    %535 = vector.shape_cast %534 : vector<8x1xf32> to vector<1x8x1xf32>
    %cst_177 = arith.constant dense<0.000000e+00> : vector<1xf32>
    %536 = vector.multi_reduction <add>, %535, %cst_177 [1, 2] : vector<1x8x1xf32> to vector<1xf32>
    %537 = vector.shape_cast %536 : vector<1xf32> to vector<1x1x1xf32>
    %538 = vector.extract %537[0, 0, 0] : f32 from vector<1x1x1xf32>
    %cst_178 = arith.constant 0.000000e+00 : f32
    %539 = arith.addf %cst_178, %538 : f32
    %540 = vector.shape_cast %529 : vector<8x1xf32> to vector<1x8x1xf32>
    %cst_179 = arith.constant dense<0.000000e+00> : vector<1xf32>
    %541 = vector.multi_reduction <add>, %540, %cst_179 [1, 2] : vector<1x8x1xf32> to vector<1xf32>
    %542 = vector.shape_cast %541 : vector<1xf32> to vector<1x1x1xf32>
    %543 = vector.extract %542[0, 0, 0] : f32 from vector<1x1x1xf32>
    %cst_180 = arith.constant 0.000000e+00 : f32
    %544 = arith.addf %cst_180, %543 : f32
    %c1_181 = arith.constant 1 : index
    %c0_182 = arith.constant 0 : index
    %545 = vector.load %arg4[%c1_181, %c0_182] : memref<2x48xf32, #tpu.memory_space<vmem>>, vector<1x48xf32>
    %546 = arith.truncf %545 : vector<1x48xf32> to vector<1x48xbf16>
    %cst_183 = arith.constant dense<0.000000e+00> : vector<1x32xf32>
    %547 = tpu.matmul %546, %1, %cst_183 {dimension_numbers = #tpu.dot_dimension_numbers<[1], [0], [0], [1], [0, 0, 1, 1], [], []>} : vector<1x48xbf16>, vector<48x32xbf16>, vector<1x32xf32> -> vector<1x32xf32>
    %548 = arith.addf %547, %2 : vector<1x32xf32>
    %c8 = arith.constant 8 : index
    %549 = memref.load %arg0[%c8] : memref<16xi32, #tpu.memory_space<smem>>
    %550 = arith.index_cast %549 : i32 to index
    %c0_184 = arith.constant 0 : index
    %551 = vector.load %arg5[%550, %c0_184] : memref<64x32xf32, #tpu.memory_space<vmem>>, vector<1x32xf32>
    %c9 = arith.constant 9 : index
    %552 = memref.load %arg0[%c9] : memref<16xi32, #tpu.memory_space<smem>>
    %553 = arith.index_cast %552 : i32 to index
    %c0_185 = arith.constant 0 : index
    %554 = vector.load %arg5[%553, %c0_185] : memref<64x32xf32, #tpu.memory_space<vmem>>, vector<1x32xf32>
    %c10 = arith.constant 10 : index
    %555 = memref.load %arg0[%c10] : memref<16xi32, #tpu.memory_space<smem>>
    %556 = arith.index_cast %555 : i32 to index
    %c0_186 = arith.constant 0 : index
    %557 = vector.load %arg5[%556, %c0_186] : memref<64x32xf32, #tpu.memory_space<vmem>>, vector<1x32xf32>
    %c11 = arith.constant 11 : index
    %558 = memref.load %arg0[%c11] : memref<16xi32, #tpu.memory_space<smem>>
    %559 = arith.index_cast %558 : i32 to index
    %c0_187 = arith.constant 0 : index
    %560 = vector.load %arg5[%559, %c0_187] : memref<64x32xf32, #tpu.memory_space<vmem>>, vector<1x32xf32>
    %c12 = arith.constant 12 : index
    %561 = memref.load %arg0[%c12] : memref<16xi32, #tpu.memory_space<smem>>
    %562 = arith.index_cast %561 : i32 to index
    %c0_188 = arith.constant 0 : index
    %563 = vector.load %arg5[%562, %c0_188] : memref<64x32xf32, #tpu.memory_space<vmem>>, vector<1x32xf32>
    %c13 = arith.constant 13 : index
    %564 = memref.load %arg0[%c13] : memref<16xi32, #tpu.memory_space<smem>>
    %565 = arith.index_cast %564 : i32 to index
    %c0_189 = arith.constant 0 : index
    %566 = vector.load %arg5[%565, %c0_189] : memref<64x32xf32, #tpu.memory_space<vmem>>, vector<1x32xf32>
    %c14 = arith.constant 14 : index
    %567 = memref.load %arg0[%c14] : memref<16xi32, #tpu.memory_space<smem>>
    %568 = arith.index_cast %567 : i32 to index
    %c0_190 = arith.constant 0 : index
    %569 = vector.load %arg5[%568, %c0_190] : memref<64x32xf32, #tpu.memory_space<vmem>>, vector<1x32xf32>
    %c15 = arith.constant 15 : index
    %570 = memref.load %arg0[%c15] : memref<16xi32, #tpu.memory_space<smem>>
    %571 = arith.index_cast %570 : i32 to index
    %c0_191 = arith.constant 0 : index
    %572 = vector.load %arg5[%571, %c0_191] : memref<64x32xf32, #tpu.memory_space<vmem>>, vector<1x32xf32>
    %573 = tpu.concatenate %551, %554, %557, %560, %563, %566, %569, %572 in 0 : vector<1x32xf32>, vector<1x32xf32>, vector<1x32xf32>, vector<1x32xf32>, vector<1x32xf32>, vector<1x32xf32>, vector<1x32xf32>, vector<1x32xf32> -> vector<8x32xf32>
    %574 = tpu.concatenate %548, %573 in 0 : vector<1x32xf32>, vector<8x32xf32> -> vector<9x32xf32>
    %c1_192 = arith.constant 1 : index
    %c0_193 = arith.constant 0 : index
    %575 = vector.load %arg3[%c1_192, %c0_193] : memref<2x9xf32, #tpu.memory_space<vmem>>, vector<1x9xf32>
    %cst_194 = arith.constant 1.000000e+00 : f32
    %576 = vector.broadcast %cst_194 : f32 to vector<1x9xf32>
    %577 = arith.subf %576, %575 : vector<1x9xf32>
    %cst_195 = arith.constant -1.000000e+09 : f32
    %578 = vector.broadcast %cst_195 : f32 to vector<1x9xf32>
    %579 = arith.mulf %577, %578 : vector<1x9xf32>
    %580 = arith.mulf %574, %574 : vector<9x32xf32>
    %cst_196 = arith.constant dense<0.000000e+00> : vector<9xf32>
    %581 = vector.multi_reduction <add>, %580, %cst_196 [1] : vector<9x32xf32> to vector<9xf32>
    %582 = vector.shape_cast %581 : vector<9xf32> to vector<9x1xf32>
    %cst_197 = arith.constant 3.200000e+01 : f32
    %583 = vector.broadcast %cst_197 : f32 to vector<9x1xf32>
    %584 = arith.divf %582, %583 : vector<9x1xf32>
    %cst_198 = arith.constant 9.99999997E-7 : f32
    %585 = vector.broadcast %cst_198 : f32 to vector<9x1xf32>
    %586 = arith.addf %584, %585 : vector<9x1xf32>
    %587 = math.rsqrt %586 : vector<9x1xf32>
    %588 = vector.broadcast %587 : vector<9x1xf32> to vector<9x32xf32>
    %589 = arith.mulf %574, %588 : vector<9x32xf32>
    %590 = vector.broadcast %7 : vector<1x32xf32> to vector<9x32xf32>
    %591 = arith.mulf %589, %590 : vector<9x32xf32>
    %592 = arith.truncf %591 : vector<9x32xf32> to vector<9x32xbf16>
    %cst_199 = arith.constant dense<0.000000e+00> : vector<9x96xf32>
    %593 = tpu.matmul %592, %11, %cst_199 {dimension_numbers = #tpu.dot_dimension_numbers<[1], [0], [0], [1], [0, 0, 1, 1], [], []>} : vector<9x32xbf16>, vector<32x96xbf16>, vector<9x96xf32> -> vector<9x96xf32>
    %594 = vector.extract_strided_slice %593 {offsets = [0, 0], sizes = [9, 32], strides = [1, 1]} : vector<9x96xf32> to vector<9x32xf32>
    %595 = vector.extract_strided_slice %593 {offsets = [0, 32], sizes = [9, 32], strides = [1, 1]} : vector<9x96xf32> to vector<9x32xf32>
    %596 = vector.extract_strided_slice %593 {offsets = [0, 64], sizes = [9, 32], strides = [1, 1]} : vector<9x96xf32> to vector<9x32xf32>
    %597 = arith.truncf %594 : vector<9x32xf32> to vector<9x32xbf16>
    %598 = arith.truncf %595 : vector<9x32xf32> to vector<9x32xbf16>
    %599 = arith.truncf %596 : vector<9x32xf32> to vector<9x32xbf16>
    %600 = vector.extract_strided_slice %597 {offsets = [0, 0], sizes = [9, 8], strides = [1, 1]} : vector<9x32xbf16> to vector<9x8xbf16>
    %601 = vector.extract_strided_slice %598 {offsets = [0, 0], sizes = [9, 8], strides = [1, 1]} : vector<9x32xbf16> to vector<9x8xbf16>
    %cst_200 = arith.constant dense<0.000000e+00> : vector<9x9xf32>
    %602 = tpu.matmul %600, %601, %cst_200 {dimension_numbers = #tpu.dot_dimension_numbers<[1], [1], [0], [0], [0, 0, 1, 0], [], []>} : vector<9x8xbf16>, vector<9x8xbf16>, vector<9x9xf32> -> vector<9x9xf32>
    %603 = vector.extract_strided_slice %3 {offsets = [0, 0, 0], sizes = [1, 9, 9], strides = [1, 1, 1]} : vector<4x9x9xf32> to vector<1x9x9xf32>
    %604 = vector.shape_cast %603 : vector<1x9x9xf32> to vector<9x9xf32>
    %605 = arith.addf %602, %604 : vector<9x9xf32>
    %606 = vector.broadcast %579 : vector<1x9xf32> to vector<9x9xf32>
    %607 = arith.addf %605, %606 : vector<9x9xf32>
    %cst_201 = arith.constant dense<0xFF800000> : vector<9xf32>
    %608 = vector.multi_reduction <maximumf>, %607, %cst_201 [1] : vector<9x9xf32> to vector<9xf32>
    %609 = vector.shape_cast %608 : vector<9xf32> to vector<9x1xf32>
    %610 = vector.broadcast %609 : vector<9x1xf32> to vector<9x9xf32>
    %611 = arith.subf %607, %610 : vector<9x9xf32>
    %612 = math.exp %611 : vector<9x9xf32>
    %cst_202 = arith.constant dense<0.000000e+00> : vector<9xf32>
    %613 = vector.multi_reduction <add>, %612, %cst_202 [1] : vector<9x9xf32> to vector<9xf32>
    %614 = vector.shape_cast %613 : vector<9xf32> to vector<9x1xf32>
    %615 = tpu.reciprocal %614 {approx = true} : vector<9x1xf32> -> vector<9x1xf32>
    %616 = vector.broadcast %615 : vector<9x1xf32> to vector<9x9xf32>
    %617 = arith.mulf %612, %616 : vector<9x9xf32>
    %618 = arith.truncf %617 : vector<9x9xf32> to vector<9x9xbf16>
    %619 = vector.extract_strided_slice %599 {offsets = [0, 0], sizes = [9, 8], strides = [1, 1]} : vector<9x32xbf16> to vector<9x8xbf16>
    %cst_203 = arith.constant dense<0.000000e+00> : vector<9x8xf32>
    %620 = tpu.matmul %618, %619, %cst_203 {dimension_numbers = #tpu.dot_dimension_numbers<[1], [0], [0], [1], [0, 0, 1, 1], [], []>} : vector<9x9xbf16>, vector<9x8xbf16>, vector<9x8xf32> -> vector<9x8xf32>
    %621 = vector.extract_strided_slice %597 {offsets = [0, 8], sizes = [9, 8], strides = [1, 1]} : vector<9x32xbf16> to vector<9x8xbf16>
    %622 = vector.extract_strided_slice %598 {offsets = [0, 8], sizes = [9, 8], strides = [1, 1]} : vector<9x32xbf16> to vector<9x8xbf16>
    %cst_204 = arith.constant dense<0.000000e+00> : vector<9x9xf32>
    %623 = tpu.matmul %621, %622, %cst_204 {dimension_numbers = #tpu.dot_dimension_numbers<[1], [1], [0], [0], [0, 0, 1, 0], [], []>} : vector<9x8xbf16>, vector<9x8xbf16>, vector<9x9xf32> -> vector<9x9xf32>
    %624 = vector.extract_strided_slice %3 {offsets = [1, 0, 0], sizes = [1, 9, 9], strides = [1, 1, 1]} : vector<4x9x9xf32> to vector<1x9x9xf32>
    %625 = vector.shape_cast %624 : vector<1x9x9xf32> to vector<9x9xf32>
    %626 = arith.addf %623, %625 : vector<9x9xf32>
    %627 = vector.broadcast %579 : vector<1x9xf32> to vector<9x9xf32>
    %628 = arith.addf %626, %627 : vector<9x9xf32>
    %cst_205 = arith.constant dense<0xFF800000> : vector<9xf32>
    %629 = vector.multi_reduction <maximumf>, %628, %cst_205 [1] : vector<9x9xf32> to vector<9xf32>
    %630 = vector.shape_cast %629 : vector<9xf32> to vector<9x1xf32>
    %631 = vector.broadcast %630 : vector<9x1xf32> to vector<9x9xf32>
    %632 = arith.subf %628, %631 : vector<9x9xf32>
    %633 = math.exp %632 : vector<9x9xf32>
    %cst_206 = arith.constant dense<0.000000e+00> : vector<9xf32>
    %634 = vector.multi_reduction <add>, %633, %cst_206 [1] : vector<9x9xf32> to vector<9xf32>
    %635 = vector.shape_cast %634 : vector<9xf32> to vector<9x1xf32>
    %636 = tpu.reciprocal %635 {approx = true} : vector<9x1xf32> -> vector<9x1xf32>
    %637 = vector.broadcast %636 : vector<9x1xf32> to vector<9x9xf32>
    %638 = arith.mulf %633, %637 : vector<9x9xf32>
    %639 = arith.truncf %638 : vector<9x9xf32> to vector<9x9xbf16>
    %640 = vector.extract_strided_slice %599 {offsets = [0, 8], sizes = [9, 8], strides = [1, 1]} : vector<9x32xbf16> to vector<9x8xbf16>
    %cst_207 = arith.constant dense<0.000000e+00> : vector<9x8xf32>
    %641 = tpu.matmul %639, %640, %cst_207 {dimension_numbers = #tpu.dot_dimension_numbers<[1], [0], [0], [1], [0, 0, 1, 1], [], []>} : vector<9x9xbf16>, vector<9x8xbf16>, vector<9x8xf32> -> vector<9x8xf32>
    %642 = vector.extract_strided_slice %597 {offsets = [0, 16], sizes = [9, 8], strides = [1, 1]} : vector<9x32xbf16> to vector<9x8xbf16>
    %643 = vector.extract_strided_slice %598 {offsets = [0, 16], sizes = [9, 8], strides = [1, 1]} : vector<9x32xbf16> to vector<9x8xbf16>
    %cst_208 = arith.constant dense<0.000000e+00> : vector<9x9xf32>
    %644 = tpu.matmul %642, %643, %cst_208 {dimension_numbers = #tpu.dot_dimension_numbers<[1], [1], [0], [0], [0, 0, 1, 0], [], []>} : vector<9x8xbf16>, vector<9x8xbf16>, vector<9x9xf32> -> vector<9x9xf32>
    %645 = vector.extract_strided_slice %3 {offsets = [2, 0, 0], sizes = [1, 9, 9], strides = [1, 1, 1]} : vector<4x9x9xf32> to vector<1x9x9xf32>
    %646 = vector.shape_cast %645 : vector<1x9x9xf32> to vector<9x9xf32>
    %647 = arith.addf %644, %646 : vector<9x9xf32>
    %648 = vector.broadcast %579 : vector<1x9xf32> to vector<9x9xf32>
    %649 = arith.addf %647, %648 : vector<9x9xf32>
    %cst_209 = arith.constant dense<0xFF800000> : vector<9xf32>
    %650 = vector.multi_reduction <maximumf>, %649, %cst_209 [1] : vector<9x9xf32> to vector<9xf32>
    %651 = vector.shape_cast %650 : vector<9xf32> to vector<9x1xf32>
    %652 = vector.broadcast %651 : vector<9x1xf32> to vector<9x9xf32>
    %653 = arith.subf %649, %652 : vector<9x9xf32>
    %654 = math.exp %653 : vector<9x9xf32>
    %cst_210 = arith.constant dense<0.000000e+00> : vector<9xf32>
    %655 = vector.multi_reduction <add>, %654, %cst_210 [1] : vector<9x9xf32> to vector<9xf32>
    %656 = vector.shape_cast %655 : vector<9xf32> to vector<9x1xf32>
    %657 = tpu.reciprocal %656 {approx = true} : vector<9x1xf32> -> vector<9x1xf32>
    %658 = vector.broadcast %657 : vector<9x1xf32> to vector<9x9xf32>
    %659 = arith.mulf %654, %658 : vector<9x9xf32>
    %660 = arith.truncf %659 : vector<9x9xf32> to vector<9x9xbf16>
    %661 = vector.extract_strided_slice %599 {offsets = [0, 16], sizes = [9, 8], strides = [1, 1]} : vector<9x32xbf16> to vector<9x8xbf16>
    %cst_211 = arith.constant dense<0.000000e+00> : vector<9x8xf32>
    %662 = tpu.matmul %660, %661, %cst_211 {dimension_numbers = #tpu.dot_dimension_numbers<[1], [0], [0], [1], [0, 0, 1, 1], [], []>} : vector<9x9xbf16>, vector<9x8xbf16>, vector<9x8xf32> -> vector<9x8xf32>
    %663 = vector.extract_strided_slice %597 {offsets = [0, 24], sizes = [9, 8], strides = [1, 1]} : vector<9x32xbf16> to vector<9x8xbf16>
    %664 = vector.extract_strided_slice %598 {offsets = [0, 24], sizes = [9, 8], strides = [1, 1]} : vector<9x32xbf16> to vector<9x8xbf16>
    %cst_212 = arith.constant dense<0.000000e+00> : vector<9x9xf32>
    %665 = tpu.matmul %663, %664, %cst_212 {dimension_numbers = #tpu.dot_dimension_numbers<[1], [1], [0], [0], [0, 0, 1, 0], [], []>} : vector<9x8xbf16>, vector<9x8xbf16>, vector<9x9xf32> -> vector<9x9xf32>
    %666 = vector.extract_strided_slice %3 {offsets = [3, 0, 0], sizes = [1, 9, 9], strides = [1, 1, 1]} : vector<4x9x9xf32> to vector<1x9x9xf32>
    %667 = vector.shape_cast %666 : vector<1x9x9xf32> to vector<9x9xf32>
    %668 = arith.addf %665, %667 : vector<9x9xf32>
    %669 = vector.broadcast %579 : vector<1x9xf32> to vector<9x9xf32>
    %670 = arith.addf %668, %669 : vector<9x9xf32>
    %cst_213 = arith.constant dense<0xFF800000> : vector<9xf32>
    %671 = vector.multi_reduction <maximumf>, %670, %cst_213 [1] : vector<9x9xf32> to vector<9xf32>
    %672 = vector.shape_cast %671 : vector<9xf32> to vector<9x1xf32>
    %673 = vector.broadcast %672 : vector<9x1xf32> to vector<9x9xf32>
    %674 = arith.subf %670, %673 : vector<9x9xf32>
    %675 = math.exp %674 : vector<9x9xf32>
    %cst_214 = arith.constant dense<0.000000e+00> : vector<9xf32>
    %676 = vector.multi_reduction <add>, %675, %cst_214 [1] : vector<9x9xf32> to vector<9xf32>
    %677 = vector.shape_cast %676 : vector<9xf32> to vector<9x1xf32>
    %678 = tpu.reciprocal %677 {approx = true} : vector<9x1xf32> -> vector<9x1xf32>
    %679 = vector.broadcast %678 : vector<9x1xf32> to vector<9x9xf32>
    %680 = arith.mulf %675, %679 : vector<9x9xf32>
    %681 = arith.truncf %680 : vector<9x9xf32> to vector<9x9xbf16>
    %682 = vector.extract_strided_slice %599 {offsets = [0, 24], sizes = [9, 8], strides = [1, 1]} : vector<9x32xbf16> to vector<9x8xbf16>
    %cst_215 = arith.constant dense<0.000000e+00> : vector<9x8xf32>
    %683 = tpu.matmul %681, %682, %cst_215 {dimension_numbers = #tpu.dot_dimension_numbers<[1], [0], [0], [1], [0, 0, 1, 1], [], []>} : vector<9x9xbf16>, vector<9x8xbf16>, vector<9x8xf32> -> vector<9x8xf32>
    %684 = tpu.concatenate %620, %641, %662, %683 in 1 : vector<9x8xf32>, vector<9x8xf32>, vector<9x8xf32>, vector<9x8xf32> -> vector<9x32xf32>
    %685 = arith.truncf %684 : vector<9x32xf32> to vector<9x32xbf16>
    %cst_216 = arith.constant dense<0.000000e+00> : vector<9x32xf32>
    %686 = tpu.matmul %685, %13, %cst_216 {dimension_numbers = #tpu.dot_dimension_numbers<[1], [0], [0], [1], [0, 0, 1, 1], [], []>} : vector<9x32xbf16>, vector<32x32xbf16>, vector<9x32xf32> -> vector<9x32xf32>
    %687 = arith.addf %574, %686 : vector<9x32xf32>
    %688 = arith.mulf %687, %687 : vector<9x32xf32>
    %cst_217 = arith.constant dense<0.000000e+00> : vector<9xf32>
    %689 = vector.multi_reduction <add>, %688, %cst_217 [1] : vector<9x32xf32> to vector<9xf32>
    %690 = vector.shape_cast %689 : vector<9xf32> to vector<9x1xf32>
    %cst_218 = arith.constant 3.200000e+01 : f32
    %691 = vector.broadcast %cst_218 : f32 to vector<9x1xf32>
    %692 = arith.divf %690, %691 : vector<9x1xf32>
    %cst_219 = arith.constant 9.99999997E-7 : f32
    %693 = vector.broadcast %cst_219 : f32 to vector<9x1xf32>
    %694 = arith.addf %692, %693 : vector<9x1xf32>
    %695 = math.rsqrt %694 : vector<9x1xf32>
    %696 = vector.broadcast %695 : vector<9x1xf32> to vector<9x32xf32>
    %697 = arith.mulf %687, %696 : vector<9x32xf32>
    %698 = vector.broadcast %8 : vector<1x32xf32> to vector<9x32xf32>
    %699 = arith.mulf %697, %698 : vector<9x32xf32>
    %700 = arith.truncf %699 : vector<9x32xf32> to vector<9x32xbf16>
    %cst_220 = arith.constant dense<0.000000e+00> : vector<9x64xf32>
    %701 = tpu.matmul %700, %15, %cst_220 {dimension_numbers = #tpu.dot_dimension_numbers<[1], [0], [0], [1], [0, 0, 1, 1], [], []>} : vector<9x32xbf16>, vector<32x64xbf16>, vector<9x64xf32> -> vector<9x64xf32>
    %cst_221 = arith.constant 0.000000e+00 : f32
    %702 = vector.broadcast %cst_221 : f32 to vector<9x64xf32>
    %703 = arith.maximumf %701, %702 : vector<9x64xf32>
    %704 = arith.truncf %703 : vector<9x64xf32> to vector<9x64xbf16>
    %cst_222 = arith.constant dense<0.000000e+00> : vector<9x32xf32>
    %705 = tpu.matmul %704, %17, %cst_222 {dimension_numbers = #tpu.dot_dimension_numbers<[1], [0], [0], [1], [0, 0, 1, 1], [], []>} : vector<9x64xbf16>, vector<64x32xbf16>, vector<9x32xf32> -> vector<9x32xf32>
    %706 = arith.addf %687, %705 : vector<9x32xf32>
    %707 = arith.mulf %706, %706 : vector<9x32xf32>
    %cst_223 = arith.constant dense<0.000000e+00> : vector<9xf32>
    %708 = vector.multi_reduction <add>, %707, %cst_223 [1] : vector<9x32xf32> to vector<9xf32>
    %709 = vector.shape_cast %708 : vector<9xf32> to vector<9x1xf32>
    %cst_224 = arith.constant 3.200000e+01 : f32
    %710 = vector.broadcast %cst_224 : f32 to vector<9x1xf32>
    %711 = arith.divf %709, %710 : vector<9x1xf32>
    %cst_225 = arith.constant 9.99999997E-7 : f32
    %712 = vector.broadcast %cst_225 : f32 to vector<9x1xf32>
    %713 = arith.addf %711, %712 : vector<9x1xf32>
    %714 = math.rsqrt %713 : vector<9x1xf32>
    %715 = vector.broadcast %714 : vector<9x1xf32> to vector<9x32xf32>
    %716 = arith.mulf %706, %715 : vector<9x32xf32>
    %717 = vector.broadcast %9 : vector<1x32xf32> to vector<9x32xf32>
    %718 = arith.mulf %716, %717 : vector<9x32xf32>
    %c8_226 = arith.constant 8 : index
    %719 = memref.load %arg1[%c8_226] : memref<16xi32, #tpu.memory_space<smem>>
    %720 = arith.index_cast %719 : i32 to index
    %c0_227 = arith.constant 0 : index
    %721 = vector.load %arg5[%720, %c0_227] : memref<64x32xf32, #tpu.memory_space<vmem>>, vector<1x32xf32>
    %c9_228 = arith.constant 9 : index
    %722 = memref.load %arg1[%c9_228] : memref<16xi32, #tpu.memory_space<smem>>
    %723 = arith.index_cast %722 : i32 to index
    %c0_229 = arith.constant 0 : index
    %724 = vector.load %arg5[%723, %c0_229] : memref<64x32xf32, #tpu.memory_space<vmem>>, vector<1x32xf32>
    %c10_230 = arith.constant 10 : index
    %725 = memref.load %arg1[%c10_230] : memref<16xi32, #tpu.memory_space<smem>>
    %726 = arith.index_cast %725 : i32 to index
    %c0_231 = arith.constant 0 : index
    %727 = vector.load %arg5[%726, %c0_231] : memref<64x32xf32, #tpu.memory_space<vmem>>, vector<1x32xf32>
    %c11_232 = arith.constant 11 : index
    %728 = memref.load %arg1[%c11_232] : memref<16xi32, #tpu.memory_space<smem>>
    %729 = arith.index_cast %728 : i32 to index
    %c0_233 = arith.constant 0 : index
    %730 = vector.load %arg5[%729, %c0_233] : memref<64x32xf32, #tpu.memory_space<vmem>>, vector<1x32xf32>
    %c12_234 = arith.constant 12 : index
    %731 = memref.load %arg1[%c12_234] : memref<16xi32, #tpu.memory_space<smem>>
    %732 = arith.index_cast %731 : i32 to index
    %c0_235 = arith.constant 0 : index
    %733 = vector.load %arg5[%732, %c0_235] : memref<64x32xf32, #tpu.memory_space<vmem>>, vector<1x32xf32>
    %c13_236 = arith.constant 13 : index
    %734 = memref.load %arg1[%c13_236] : memref<16xi32, #tpu.memory_space<smem>>
    %735 = arith.index_cast %734 : i32 to index
    %c0_237 = arith.constant 0 : index
    %736 = vector.load %arg5[%735, %c0_237] : memref<64x32xf32, #tpu.memory_space<vmem>>, vector<1x32xf32>
    %c14_238 = arith.constant 14 : index
    %737 = memref.load %arg1[%c14_238] : memref<16xi32, #tpu.memory_space<smem>>
    %738 = arith.index_cast %737 : i32 to index
    %c0_239 = arith.constant 0 : index
    %739 = vector.load %arg5[%738, %c0_239] : memref<64x32xf32, #tpu.memory_space<vmem>>, vector<1x32xf32>
    %c15_240 = arith.constant 15 : index
    %740 = memref.load %arg1[%c15_240] : memref<16xi32, #tpu.memory_space<smem>>
    %741 = arith.index_cast %740 : i32 to index
    %c0_241 = arith.constant 0 : index
    %742 = vector.load %arg5[%741, %c0_241] : memref<64x32xf32, #tpu.memory_space<vmem>>, vector<1x32xf32>
    %743 = tpu.concatenate %721, %724, %727, %730, %733, %736, %739, %742 in 0 : vector<1x32xf32>, vector<1x32xf32>, vector<1x32xf32>, vector<1x32xf32>, vector<1x32xf32>, vector<1x32xf32>, vector<1x32xf32>, vector<1x32xf32> -> vector<8x32xf32>
    %744 = arith.mulf %743, %743 : vector<8x32xf32>
    %cst_242 = arith.constant dense<0.000000e+00> : vector<8xf32>
    %745 = vector.multi_reduction <add>, %744, %cst_242 [1] : vector<8x32xf32> to vector<8xf32>
    %746 = vector.shape_cast %745 : vector<8xf32> to vector<8x1xf32>
    %cst_243 = arith.constant 3.200000e+01 : f32
    %747 = vector.broadcast %cst_243 : f32 to vector<8x1xf32>
    %748 = arith.divf %746, %747 : vector<8x1xf32>
    %cst_244 = arith.constant 9.99999997E-7 : f32
    %749 = vector.broadcast %cst_244 : f32 to vector<8x1xf32>
    %750 = arith.addf %748, %749 : vector<8x1xf32>
    %751 = math.rsqrt %750 : vector<8x1xf32>
    %752 = vector.broadcast %751 : vector<8x1xf32> to vector<8x32xf32>
    %753 = arith.mulf %743, %752 : vector<8x32xf32>
    %754 = vector.broadcast %18 : vector<1x32xf32> to vector<8x32xf32>
    %755 = arith.mulf %753, %754 : vector<8x32xf32>
    %756 = arith.truncf %755 : vector<8x32xf32> to vector<8x32xbf16>
    %cst_245 = arith.constant dense<0.000000e+00> : vector<8x96xf32>
    %757 = tpu.matmul %756, %23, %cst_245 {dimension_numbers = #tpu.dot_dimension_numbers<[1], [0], [0], [1], [0, 0, 1, 1], [], []>} : vector<8x32xbf16>, vector<32x96xbf16>, vector<8x96xf32> -> vector<8x96xf32>
    %758 = vector.extract_strided_slice %757 {offsets = [0, 0], sizes = [8, 32], strides = [1, 1]} : vector<8x96xf32> to vector<8x32xf32>
    %759 = vector.extract_strided_slice %757 {offsets = [0, 32], sizes = [8, 32], strides = [1, 1]} : vector<8x96xf32> to vector<8x32xf32>
    %760 = vector.extract_strided_slice %757 {offsets = [0, 64], sizes = [8, 32], strides = [1, 1]} : vector<8x96xf32> to vector<8x32xf32>
    %761 = arith.truncf %758 : vector<8x32xf32> to vector<8x32xbf16>
    %762 = arith.truncf %759 : vector<8x32xf32> to vector<8x32xbf16>
    %763 = arith.truncf %760 : vector<8x32xf32> to vector<8x32xbf16>
    %764 = vector.extract_strided_slice %761 {offsets = [0, 0], sizes = [8, 8], strides = [1, 1]} : vector<8x32xbf16> to vector<8x8xbf16>
    %765 = vector.extract_strided_slice %762 {offsets = [0, 0], sizes = [8, 8], strides = [1, 1]} : vector<8x32xbf16> to vector<8x8xbf16>
    %cst_246 = arith.constant dense<0.000000e+00> : vector<8x8xf32>
    %766 = tpu.matmul %764, %765, %cst_246 {dimension_numbers = #tpu.dot_dimension_numbers<[1], [1], [0], [0], [0, 0, 1, 0], [], []>} : vector<8x8xbf16>, vector<8x8xbf16>, vector<8x8xf32> -> vector<8x8xf32>
    %767 = vector.extract_strided_slice %4 {offsets = [0, 0, 0], sizes = [1, 8, 8], strides = [1, 1, 1]} : vector<4x8x8xf32> to vector<1x8x8xf32>
    %768 = vector.shape_cast %767 : vector<1x8x8xf32> to vector<8x8xf32>
    %769 = arith.addf %766, %768 : vector<8x8xf32>
    %cst_247 = arith.constant dense<0xFF800000> : vector<8xf32>
    %770 = vector.multi_reduction <maximumf>, %769, %cst_247 [1] : vector<8x8xf32> to vector<8xf32>
    %771 = vector.shape_cast %770 : vector<8xf32> to vector<8x1xf32>
    %772 = vector.broadcast %771 : vector<8x1xf32> to vector<8x8xf32>
    %773 = arith.subf %769, %772 : vector<8x8xf32>
    %774 = math.exp %773 : vector<8x8xf32>
    %cst_248 = arith.constant dense<0.000000e+00> : vector<8xf32>
    %775 = vector.multi_reduction <add>, %774, %cst_248 [1] : vector<8x8xf32> to vector<8xf32>
    %776 = vector.shape_cast %775 : vector<8xf32> to vector<8x1xf32>
    %777 = tpu.reciprocal %776 {approx = true} : vector<8x1xf32> -> vector<8x1xf32>
    %778 = vector.broadcast %777 : vector<8x1xf32> to vector<8x8xf32>
    %779 = arith.mulf %774, %778 : vector<8x8xf32>
    %780 = arith.truncf %779 : vector<8x8xf32> to vector<8x8xbf16>
    %781 = vector.extract_strided_slice %763 {offsets = [0, 0], sizes = [8, 8], strides = [1, 1]} : vector<8x32xbf16> to vector<8x8xbf16>
    %cst_249 = arith.constant dense<0.000000e+00> : vector<8x8xf32>
    %782 = tpu.matmul %780, %781, %cst_249 {dimension_numbers = #tpu.dot_dimension_numbers<[1], [0], [0], [1], [0, 0, 1, 1], [], []>} : vector<8x8xbf16>, vector<8x8xbf16>, vector<8x8xf32> -> vector<8x8xf32>
    %783 = vector.extract_strided_slice %761 {offsets = [0, 8], sizes = [8, 8], strides = [1, 1]} : vector<8x32xbf16> to vector<8x8xbf16>
    %784 = vector.extract_strided_slice %762 {offsets = [0, 8], sizes = [8, 8], strides = [1, 1]} : vector<8x32xbf16> to vector<8x8xbf16>
    %cst_250 = arith.constant dense<0.000000e+00> : vector<8x8xf32>
    %785 = tpu.matmul %783, %784, %cst_250 {dimension_numbers = #tpu.dot_dimension_numbers<[1], [1], [0], [0], [0, 0, 1, 0], [], []>} : vector<8x8xbf16>, vector<8x8xbf16>, vector<8x8xf32> -> vector<8x8xf32>
    %786 = vector.extract_strided_slice %4 {offsets = [1, 0, 0], sizes = [1, 8, 8], strides = [1, 1, 1]} : vector<4x8x8xf32> to vector<1x8x8xf32>
    %787 = vector.shape_cast %786 : vector<1x8x8xf32> to vector<8x8xf32>
    %788 = arith.addf %785, %787 : vector<8x8xf32>
    %cst_251 = arith.constant dense<0xFF800000> : vector<8xf32>
    %789 = vector.multi_reduction <maximumf>, %788, %cst_251 [1] : vector<8x8xf32> to vector<8xf32>
    %790 = vector.shape_cast %789 : vector<8xf32> to vector<8x1xf32>
    %791 = vector.broadcast %790 : vector<8x1xf32> to vector<8x8xf32>
    %792 = arith.subf %788, %791 : vector<8x8xf32>
    %793 = math.exp %792 : vector<8x8xf32>
    %cst_252 = arith.constant dense<0.000000e+00> : vector<8xf32>
    %794 = vector.multi_reduction <add>, %793, %cst_252 [1] : vector<8x8xf32> to vector<8xf32>
    %795 = vector.shape_cast %794 : vector<8xf32> to vector<8x1xf32>
    %796 = tpu.reciprocal %795 {approx = true} : vector<8x1xf32> -> vector<8x1xf32>
    %797 = vector.broadcast %796 : vector<8x1xf32> to vector<8x8xf32>
    %798 = arith.mulf %793, %797 : vector<8x8xf32>
    %799 = arith.truncf %798 : vector<8x8xf32> to vector<8x8xbf16>
    %800 = vector.extract_strided_slice %763 {offsets = [0, 8], sizes = [8, 8], strides = [1, 1]} : vector<8x32xbf16> to vector<8x8xbf16>
    %cst_253 = arith.constant dense<0.000000e+00> : vector<8x8xf32>
    %801 = tpu.matmul %799, %800, %cst_253 {dimension_numbers = #tpu.dot_dimension_numbers<[1], [0], [0], [1], [0, 0, 1, 1], [], []>} : vector<8x8xbf16>, vector<8x8xbf16>, vector<8x8xf32> -> vector<8x8xf32>
    %802 = vector.extract_strided_slice %761 {offsets = [0, 16], sizes = [8, 8], strides = [1, 1]} : vector<8x32xbf16> to vector<8x8xbf16>
    %803 = vector.extract_strided_slice %762 {offsets = [0, 16], sizes = [8, 8], strides = [1, 1]} : vector<8x32xbf16> to vector<8x8xbf16>
    %cst_254 = arith.constant dense<0.000000e+00> : vector<8x8xf32>
    %804 = tpu.matmul %802, %803, %cst_254 {dimension_numbers = #tpu.dot_dimension_numbers<[1], [1], [0], [0], [0, 0, 1, 0], [], []>} : vector<8x8xbf16>, vector<8x8xbf16>, vector<8x8xf32> -> vector<8x8xf32>
    %805 = vector.extract_strided_slice %4 {offsets = [2, 0, 0], sizes = [1, 8, 8], strides = [1, 1, 1]} : vector<4x8x8xf32> to vector<1x8x8xf32>
    %806 = vector.shape_cast %805 : vector<1x8x8xf32> to vector<8x8xf32>
    %807 = arith.addf %804, %806 : vector<8x8xf32>
    %cst_255 = arith.constant dense<0xFF800000> : vector<8xf32>
    %808 = vector.multi_reduction <maximumf>, %807, %cst_255 [1] : vector<8x8xf32> to vector<8xf32>
    %809 = vector.shape_cast %808 : vector<8xf32> to vector<8x1xf32>
    %810 = vector.broadcast %809 : vector<8x1xf32> to vector<8x8xf32>
    %811 = arith.subf %807, %810 : vector<8x8xf32>
    %812 = math.exp %811 : vector<8x8xf32>
    %cst_256 = arith.constant dense<0.000000e+00> : vector<8xf32>
    %813 = vector.multi_reduction <add>, %812, %cst_256 [1] : vector<8x8xf32> to vector<8xf32>
    %814 = vector.shape_cast %813 : vector<8xf32> to vector<8x1xf32>
    %815 = tpu.reciprocal %814 {approx = true} : vector<8x1xf32> -> vector<8x1xf32>
    %816 = vector.broadcast %815 : vector<8x1xf32> to vector<8x8xf32>
    %817 = arith.mulf %812, %816 : vector<8x8xf32>
    %818 = arith.truncf %817 : vector<8x8xf32> to vector<8x8xbf16>
    %819 = vector.extract_strided_slice %763 {offsets = [0, 16], sizes = [8, 8], strides = [1, 1]} : vector<8x32xbf16> to vector<8x8xbf16>
    %cst_257 = arith.constant dense<0.000000e+00> : vector<8x8xf32>
    %820 = tpu.matmul %818, %819, %cst_257 {dimension_numbers = #tpu.dot_dimension_numbers<[1], [0], [0], [1], [0, 0, 1, 1], [], []>} : vector<8x8xbf16>, vector<8x8xbf16>, vector<8x8xf32> -> vector<8x8xf32>
    %821 = vector.extract_strided_slice %761 {offsets = [0, 24], sizes = [8, 8], strides = [1, 1]} : vector<8x32xbf16> to vector<8x8xbf16>
    %822 = vector.extract_strided_slice %762 {offsets = [0, 24], sizes = [8, 8], strides = [1, 1]} : vector<8x32xbf16> to vector<8x8xbf16>
    %cst_258 = arith.constant dense<0.000000e+00> : vector<8x8xf32>
    %823 = tpu.matmul %821, %822, %cst_258 {dimension_numbers = #tpu.dot_dimension_numbers<[1], [1], [0], [0], [0, 0, 1, 0], [], []>} : vector<8x8xbf16>, vector<8x8xbf16>, vector<8x8xf32> -> vector<8x8xf32>
    %824 = vector.extract_strided_slice %4 {offsets = [3, 0, 0], sizes = [1, 8, 8], strides = [1, 1, 1]} : vector<4x8x8xf32> to vector<1x8x8xf32>
    %825 = vector.shape_cast %824 : vector<1x8x8xf32> to vector<8x8xf32>
    %826 = arith.addf %823, %825 : vector<8x8xf32>
    %cst_259 = arith.constant dense<0xFF800000> : vector<8xf32>
    %827 = vector.multi_reduction <maximumf>, %826, %cst_259 [1] : vector<8x8xf32> to vector<8xf32>
    %828 = vector.shape_cast %827 : vector<8xf32> to vector<8x1xf32>
    %829 = vector.broadcast %828 : vector<8x1xf32> to vector<8x8xf32>
    %830 = arith.subf %826, %829 : vector<8x8xf32>
    %831 = math.exp %830 : vector<8x8xf32>
    %cst_260 = arith.constant dense<0.000000e+00> : vector<8xf32>
    %832 = vector.multi_reduction <add>, %831, %cst_260 [1] : vector<8x8xf32> to vector<8xf32>
    %833 = vector.shape_cast %832 : vector<8xf32> to vector<8x1xf32>
    %834 = tpu.reciprocal %833 {approx = true} : vector<8x1xf32> -> vector<8x1xf32>
    %835 = vector.broadcast %834 : vector<8x1xf32> to vector<8x8xf32>
    %836 = arith.mulf %831, %835 : vector<8x8xf32>
    %837 = arith.truncf %836 : vector<8x8xf32> to vector<8x8xbf16>
    %838 = vector.extract_strided_slice %763 {offsets = [0, 24], sizes = [8, 8], strides = [1, 1]} : vector<8x32xbf16> to vector<8x8xbf16>
    %cst_261 = arith.constant dense<0.000000e+00> : vector<8x8xf32>
    %839 = tpu.matmul %837, %838, %cst_261 {dimension_numbers = #tpu.dot_dimension_numbers<[1], [0], [0], [1], [0, 0, 1, 1], [], []>} : vector<8x8xbf16>, vector<8x8xbf16>, vector<8x8xf32> -> vector<8x8xf32>
    %840 = tpu.concatenate %782, %801, %820, %839 in 1 : vector<8x8xf32>, vector<8x8xf32>, vector<8x8xf32>, vector<8x8xf32> -> vector<8x32xf32>
    %841 = arith.truncf %840 : vector<8x32xf32> to vector<8x32xbf16>
    %cst_262 = arith.constant dense<0.000000e+00> : vector<8x32xf32>
    %842 = tpu.matmul %841, %25, %cst_262 {dimension_numbers = #tpu.dot_dimension_numbers<[1], [0], [0], [1], [0, 0, 1, 1], [], []>} : vector<8x32xbf16>, vector<32x32xbf16>, vector<8x32xf32> -> vector<8x32xf32>
    %843 = arith.addf %743, %842 : vector<8x32xf32>
    %844 = arith.mulf %843, %843 : vector<8x32xf32>
    %cst_263 = arith.constant dense<0.000000e+00> : vector<8xf32>
    %845 = vector.multi_reduction <add>, %844, %cst_263 [1] : vector<8x32xf32> to vector<8xf32>
    %846 = vector.shape_cast %845 : vector<8xf32> to vector<8x1xf32>
    %cst_264 = arith.constant 3.200000e+01 : f32
    %847 = vector.broadcast %cst_264 : f32 to vector<8x1xf32>
    %848 = arith.divf %846, %847 : vector<8x1xf32>
    %cst_265 = arith.constant 9.99999997E-7 : f32
    %849 = vector.broadcast %cst_265 : f32 to vector<8x1xf32>
    %850 = arith.addf %848, %849 : vector<8x1xf32>
    %851 = math.rsqrt %850 : vector<8x1xf32>
    %852 = vector.broadcast %851 : vector<8x1xf32> to vector<8x32xf32>
    %853 = arith.mulf %843, %852 : vector<8x32xf32>
    %854 = vector.broadcast %19 : vector<1x32xf32> to vector<8x32xf32>
    %855 = arith.mulf %853, %854 : vector<8x32xf32>
    %856 = arith.truncf %855 : vector<8x32xf32> to vector<8x32xbf16>
    %cst_266 = arith.constant dense<0.000000e+00> : vector<8x32xf32>
    %857 = tpu.matmul %856, %27, %cst_266 {dimension_numbers = #tpu.dot_dimension_numbers<[1], [0], [0], [1], [0, 0, 1, 1], [], []>} : vector<8x32xbf16>, vector<32x32xbf16>, vector<8x32xf32> -> vector<8x32xf32>
    %858 = arith.truncf %718 : vector<9x32xf32> to vector<9x32xbf16>
    %cst_267 = arith.constant dense<0.000000e+00> : vector<9x64xf32>
    %859 = tpu.matmul %858, %29, %cst_267 {dimension_numbers = #tpu.dot_dimension_numbers<[1], [0], [0], [1], [0, 0, 1, 1], [], []>} : vector<9x32xbf16>, vector<32x64xbf16>, vector<9x64xf32> -> vector<9x64xf32>
    %860 = vector.extract_strided_slice %859 {offsets = [0, 0], sizes = [9, 32], strides = [1, 1]} : vector<9x64xf32> to vector<9x32xf32>
    %861 = vector.extract_strided_slice %859 {offsets = [0, 32], sizes = [9, 32], strides = [1, 1]} : vector<9x64xf32> to vector<9x32xf32>
    %862 = arith.truncf %857 : vector<8x32xf32> to vector<8x32xbf16>
    %863 = arith.truncf %860 : vector<9x32xf32> to vector<9x32xbf16>
    %864 = arith.truncf %861 : vector<9x32xf32> to vector<9x32xbf16>
    %865 = vector.extract_strided_slice %862 {offsets = [0, 0], sizes = [8, 8], strides = [1, 1]} : vector<8x32xbf16> to vector<8x8xbf16>
    %866 = vector.extract_strided_slice %863 {offsets = [0, 0], sizes = [9, 8], strides = [1, 1]} : vector<9x32xbf16> to vector<9x8xbf16>
    %cst_268 = arith.constant dense<0.000000e+00> : vector<8x9xf32>
    %867 = tpu.matmul %865, %866, %cst_268 {dimension_numbers = #tpu.dot_dimension_numbers<[1], [1], [0], [0], [0, 0, 1, 0], [], []>} : vector<8x8xbf16>, vector<9x8xbf16>, vector<8x9xf32> -> vector<8x9xf32>
    %868 = vector.broadcast %579 : vector<1x9xf32> to vector<8x9xf32>
    %869 = arith.addf %867, %868 : vector<8x9xf32>
    %cst_269 = arith.constant dense<0xFF800000> : vector<8xf32>
    %870 = vector.multi_reduction <maximumf>, %869, %cst_269 [1] : vector<8x9xf32> to vector<8xf32>
    %871 = vector.shape_cast %870 : vector<8xf32> to vector<8x1xf32>
    %872 = vector.broadcast %871 : vector<8x1xf32> to vector<8x9xf32>
    %873 = arith.subf %869, %872 : vector<8x9xf32>
    %874 = math.exp %873 : vector<8x9xf32>
    %cst_270 = arith.constant dense<0.000000e+00> : vector<8xf32>
    %875 = vector.multi_reduction <add>, %874, %cst_270 [1] : vector<8x9xf32> to vector<8xf32>
    %876 = vector.shape_cast %875 : vector<8xf32> to vector<8x1xf32>
    %877 = tpu.reciprocal %876 {approx = true} : vector<8x1xf32> -> vector<8x1xf32>
    %878 = vector.broadcast %877 : vector<8x1xf32> to vector<8x9xf32>
    %879 = arith.mulf %874, %878 : vector<8x9xf32>
    %880 = arith.truncf %879 : vector<8x9xf32> to vector<8x9xbf16>
    %881 = vector.extract_strided_slice %864 {offsets = [0, 0], sizes = [9, 8], strides = [1, 1]} : vector<9x32xbf16> to vector<9x8xbf16>
    %cst_271 = arith.constant dense<0.000000e+00> : vector<8x8xf32>
    %882 = tpu.matmul %880, %881, %cst_271 {dimension_numbers = #tpu.dot_dimension_numbers<[1], [0], [0], [1], [0, 0, 1, 1], [], []>} : vector<8x9xbf16>, vector<9x8xbf16>, vector<8x8xf32> -> vector<8x8xf32>
    %883 = vector.extract_strided_slice %862 {offsets = [0, 8], sizes = [8, 8], strides = [1, 1]} : vector<8x32xbf16> to vector<8x8xbf16>
    %884 = vector.extract_strided_slice %863 {offsets = [0, 8], sizes = [9, 8], strides = [1, 1]} : vector<9x32xbf16> to vector<9x8xbf16>
    %cst_272 = arith.constant dense<0.000000e+00> : vector<8x9xf32>
    %885 = tpu.matmul %883, %884, %cst_272 {dimension_numbers = #tpu.dot_dimension_numbers<[1], [1], [0], [0], [0, 0, 1, 0], [], []>} : vector<8x8xbf16>, vector<9x8xbf16>, vector<8x9xf32> -> vector<8x9xf32>
    %886 = vector.broadcast %579 : vector<1x9xf32> to vector<8x9xf32>
    %887 = arith.addf %885, %886 : vector<8x9xf32>
    %cst_273 = arith.constant dense<0xFF800000> : vector<8xf32>
    %888 = vector.multi_reduction <maximumf>, %887, %cst_273 [1] : vector<8x9xf32> to vector<8xf32>
    %889 = vector.shape_cast %888 : vector<8xf32> to vector<8x1xf32>
    %890 = vector.broadcast %889 : vector<8x1xf32> to vector<8x9xf32>
    %891 = arith.subf %887, %890 : vector<8x9xf32>
    %892 = math.exp %891 : vector<8x9xf32>
    %cst_274 = arith.constant dense<0.000000e+00> : vector<8xf32>
    %893 = vector.multi_reduction <add>, %892, %cst_274 [1] : vector<8x9xf32> to vector<8xf32>
    %894 = vector.shape_cast %893 : vector<8xf32> to vector<8x1xf32>
    %895 = tpu.reciprocal %894 {approx = true} : vector<8x1xf32> -> vector<8x1xf32>
    %896 = vector.broadcast %895 : vector<8x1xf32> to vector<8x9xf32>
    %897 = arith.mulf %892, %896 : vector<8x9xf32>
    %898 = arith.truncf %897 : vector<8x9xf32> to vector<8x9xbf16>
    %899 = vector.extract_strided_slice %864 {offsets = [0, 8], sizes = [9, 8], strides = [1, 1]} : vector<9x32xbf16> to vector<9x8xbf16>
    %cst_275 = arith.constant dense<0.000000e+00> : vector<8x8xf32>
    %900 = tpu.matmul %898, %899, %cst_275 {dimension_numbers = #tpu.dot_dimension_numbers<[1], [0], [0], [1], [0, 0, 1, 1], [], []>} : vector<8x9xbf16>, vector<9x8xbf16>, vector<8x8xf32> -> vector<8x8xf32>
    %901 = vector.extract_strided_slice %862 {offsets = [0, 16], sizes = [8, 8], strides = [1, 1]} : vector<8x32xbf16> to vector<8x8xbf16>
    %902 = vector.extract_strided_slice %863 {offsets = [0, 16], sizes = [9, 8], strides = [1, 1]} : vector<9x32xbf16> to vector<9x8xbf16>
    %cst_276 = arith.constant dense<0.000000e+00> : vector<8x9xf32>
    %903 = tpu.matmul %901, %902, %cst_276 {dimension_numbers = #tpu.dot_dimension_numbers<[1], [1], [0], [0], [0, 0, 1, 0], [], []>} : vector<8x8xbf16>, vector<9x8xbf16>, vector<8x9xf32> -> vector<8x9xf32>
    %904 = vector.broadcast %579 : vector<1x9xf32> to vector<8x9xf32>
    %905 = arith.addf %903, %904 : vector<8x9xf32>
    %cst_277 = arith.constant dense<0xFF800000> : vector<8xf32>
    %906 = vector.multi_reduction <maximumf>, %905, %cst_277 [1] : vector<8x9xf32> to vector<8xf32>
    %907 = vector.shape_cast %906 : vector<8xf32> to vector<8x1xf32>
    %908 = vector.broadcast %907 : vector<8x1xf32> to vector<8x9xf32>
    %909 = arith.subf %905, %908 : vector<8x9xf32>
    %910 = math.exp %909 : vector<8x9xf32>
    %cst_278 = arith.constant dense<0.000000e+00> : vector<8xf32>
    %911 = vector.multi_reduction <add>, %910, %cst_278 [1] : vector<8x9xf32> to vector<8xf32>
    %912 = vector.shape_cast %911 : vector<8xf32> to vector<8x1xf32>
    %913 = tpu.reciprocal %912 {approx = true} : vector<8x1xf32> -> vector<8x1xf32>
    %914 = vector.broadcast %913 : vector<8x1xf32> to vector<8x9xf32>
    %915 = arith.mulf %910, %914 : vector<8x9xf32>
    %916 = arith.truncf %915 : vector<8x9xf32> to vector<8x9xbf16>
    %917 = vector.extract_strided_slice %864 {offsets = [0, 16], sizes = [9, 8], strides = [1, 1]} : vector<9x32xbf16> to vector<9x8xbf16>
    %cst_279 = arith.constant dense<0.000000e+00> : vector<8x8xf32>
    %918 = tpu.matmul %916, %917, %cst_279 {dimension_numbers = #tpu.dot_dimension_numbers<[1], [0], [0], [1], [0, 0, 1, 1], [], []>} : vector<8x9xbf16>, vector<9x8xbf16>, vector<8x8xf32> -> vector<8x8xf32>
    %919 = vector.extract_strided_slice %862 {offsets = [0, 24], sizes = [8, 8], strides = [1, 1]} : vector<8x32xbf16> to vector<8x8xbf16>
    %920 = vector.extract_strided_slice %863 {offsets = [0, 24], sizes = [9, 8], strides = [1, 1]} : vector<9x32xbf16> to vector<9x8xbf16>
    %cst_280 = arith.constant dense<0.000000e+00> : vector<8x9xf32>
    %921 = tpu.matmul %919, %920, %cst_280 {dimension_numbers = #tpu.dot_dimension_numbers<[1], [1], [0], [0], [0, 0, 1, 0], [], []>} : vector<8x8xbf16>, vector<9x8xbf16>, vector<8x9xf32> -> vector<8x9xf32>
    %922 = vector.broadcast %579 : vector<1x9xf32> to vector<8x9xf32>
    %923 = arith.addf %921, %922 : vector<8x9xf32>
    %cst_281 = arith.constant dense<0xFF800000> : vector<8xf32>
    %924 = vector.multi_reduction <maximumf>, %923, %cst_281 [1] : vector<8x9xf32> to vector<8xf32>
    %925 = vector.shape_cast %924 : vector<8xf32> to vector<8x1xf32>
    %926 = vector.broadcast %925 : vector<8x1xf32> to vector<8x9xf32>
    %927 = arith.subf %923, %926 : vector<8x9xf32>
    %928 = math.exp %927 : vector<8x9xf32>
    %cst_282 = arith.constant dense<0.000000e+00> : vector<8xf32>
    %929 = vector.multi_reduction <add>, %928, %cst_282 [1] : vector<8x9xf32> to vector<8xf32>
    %930 = vector.shape_cast %929 : vector<8xf32> to vector<8x1xf32>
    %931 = tpu.reciprocal %930 {approx = true} : vector<8x1xf32> -> vector<8x1xf32>
    %932 = vector.broadcast %931 : vector<8x1xf32> to vector<8x9xf32>
    %933 = arith.mulf %928, %932 : vector<8x9xf32>
    %934 = arith.truncf %933 : vector<8x9xf32> to vector<8x9xbf16>
    %935 = vector.extract_strided_slice %864 {offsets = [0, 24], sizes = [9, 8], strides = [1, 1]} : vector<9x32xbf16> to vector<9x8xbf16>
    %cst_283 = arith.constant dense<0.000000e+00> : vector<8x8xf32>
    %936 = tpu.matmul %934, %935, %cst_283 {dimension_numbers = #tpu.dot_dimension_numbers<[1], [0], [0], [1], [0, 0, 1, 1], [], []>} : vector<8x9xbf16>, vector<9x8xbf16>, vector<8x8xf32> -> vector<8x8xf32>
    %937 = tpu.concatenate %882, %900, %918, %936 in 1 : vector<8x8xf32>, vector<8x8xf32>, vector<8x8xf32>, vector<8x8xf32> -> vector<8x32xf32>
    %938 = arith.truncf %937 : vector<8x32xf32> to vector<8x32xbf16>
    %cst_284 = arith.constant dense<0.000000e+00> : vector<8x32xf32>
    %939 = tpu.matmul %938, %31, %cst_284 {dimension_numbers = #tpu.dot_dimension_numbers<[1], [0], [0], [1], [0, 0, 1, 1], [], []>} : vector<8x32xbf16>, vector<32x32xbf16>, vector<8x32xf32> -> vector<8x32xf32>
    %940 = arith.addf %843, %939 : vector<8x32xf32>
    %941 = arith.mulf %940, %940 : vector<8x32xf32>
    %cst_285 = arith.constant dense<0.000000e+00> : vector<8xf32>
    %942 = vector.multi_reduction <add>, %941, %cst_285 [1] : vector<8x32xf32> to vector<8xf32>
    %943 = vector.shape_cast %942 : vector<8xf32> to vector<8x1xf32>
    %cst_286 = arith.constant 3.200000e+01 : f32
    %944 = vector.broadcast %cst_286 : f32 to vector<8x1xf32>
    %945 = arith.divf %943, %944 : vector<8x1xf32>
    %cst_287 = arith.constant 9.99999997E-7 : f32
    %946 = vector.broadcast %cst_287 : f32 to vector<8x1xf32>
    %947 = arith.addf %945, %946 : vector<8x1xf32>
    %948 = math.rsqrt %947 : vector<8x1xf32>
    %949 = vector.broadcast %948 : vector<8x1xf32> to vector<8x32xf32>
    %950 = arith.mulf %940, %949 : vector<8x32xf32>
    %951 = vector.broadcast %20 : vector<1x32xf32> to vector<8x32xf32>
    %952 = arith.mulf %950, %951 : vector<8x32xf32>
    %953 = arith.truncf %952 : vector<8x32xf32> to vector<8x32xbf16>
    %cst_288 = arith.constant dense<0.000000e+00> : vector<8x64xf32>
    %954 = tpu.matmul %953, %33, %cst_288 {dimension_numbers = #tpu.dot_dimension_numbers<[1], [0], [0], [1], [0, 0, 1, 1], [], []>} : vector<8x32xbf16>, vector<32x64xbf16>, vector<8x64xf32> -> vector<8x64xf32>
    %cst_289 = arith.constant 0.000000e+00 : f32
    %955 = vector.broadcast %cst_289 : f32 to vector<8x64xf32>
    %956 = arith.maximumf %954, %955 : vector<8x64xf32>
    %957 = arith.truncf %956 : vector<8x64xf32> to vector<8x64xbf16>
    %cst_290 = arith.constant dense<0.000000e+00> : vector<8x32xf32>
    %958 = tpu.matmul %957, %35, %cst_290 {dimension_numbers = #tpu.dot_dimension_numbers<[1], [0], [0], [1], [0, 0, 1, 1], [], []>} : vector<8x64xbf16>, vector<64x32xbf16>, vector<8x32xf32> -> vector<8x32xf32>
    %959 = arith.addf %940, %958 : vector<8x32xf32>
    %960 = arith.mulf %959, %959 : vector<8x32xf32>
    %cst_291 = arith.constant dense<0.000000e+00> : vector<8xf32>
    %961 = vector.multi_reduction <add>, %960, %cst_291 [1] : vector<8x32xf32> to vector<8xf32>
    %962 = vector.shape_cast %961 : vector<8xf32> to vector<8x1xf32>
    %cst_292 = arith.constant 3.200000e+01 : f32
    %963 = vector.broadcast %cst_292 : f32 to vector<8x1xf32>
    %964 = arith.divf %962, %963 : vector<8x1xf32>
    %cst_293 = arith.constant 9.99999997E-7 : f32
    %965 = vector.broadcast %cst_293 : f32 to vector<8x1xf32>
    %966 = arith.addf %964, %965 : vector<8x1xf32>
    %967 = math.rsqrt %966 : vector<8x1xf32>
    %968 = vector.broadcast %967 : vector<8x1xf32> to vector<8x32xf32>
    %969 = arith.mulf %959, %968 : vector<8x32xf32>
    %970 = vector.broadcast %21 : vector<1x32xf32> to vector<8x32xf32>
    %971 = arith.mulf %969, %970 : vector<8x32xf32>
    %cst_294 = arith.constant 0.176776692 : f32
    %972 = vector.broadcast %cst_294 : f32 to vector<8x32xf32>
    %973 = arith.mulf %971, %972 : vector<8x32xf32>
    %974 = arith.truncf %973 : vector<8x32xf32> to vector<8x32xbf16>
    %cst_295 = arith.constant dense<0.000000e+00> : vector<8x64xf32>
    %975 = tpu.matmul %974, %6, %cst_295 {dimension_numbers = #tpu.dot_dimension_numbers<[1], [1], [0], [0], [0, 0, 1, 0], [], []>} : vector<8x32xbf16>, vector<64x32xbf16>, vector<8x64xf32> -> vector<8x64xf32>
    %c1_296 = arith.constant 1 : index
    %c0_297 = arith.constant 0 : index
    %c0_298 = arith.constant 0 : index
    %976 = vector.load %arg28[%c1_296, %c0_297, %c0_298] : memref<2x8x64xf32, #tpu.memory_space<vmem>>, vector<1x8x64xf32>
    %977 = vector.shape_cast %976 : vector<1x8x64xf32> to vector<8x64xf32>
    %978 = vector.shape_cast %975 : vector<8x64xf32> to vector<1x8x64xf32>
    tpu.vector_store %arg28[%c1_296, %c0_297, %c0_298], %978 {strides = array<i32>} : memref<2x8x64xf32, #tpu.memory_space<vmem>>, vector<1x8x64xf32>,
    %cst_299 = arith.constant dense<0xFF800000> : vector<8xf32>
    %979 = vector.multi_reduction <maximumf>, %975, %cst_299 [1] : vector<8x64xf32> to vector<8xf32>
    %980 = vector.shape_cast %979 : vector<8xf32> to vector<8x1xf32>
    %981 = vector.broadcast %980 : vector<8x1xf32> to vector<8x64xf32>
    %982 = arith.subf %975, %981 : vector<8x64xf32>
    %983 = math.exp %982 : vector<8x64xf32>
    %cst_300 = arith.constant dense<0.000000e+00> : vector<8xf32>
    %984 = vector.multi_reduction <add>, %983, %cst_300 [1] : vector<8x64xf32> to vector<8xf32>
    %985 = vector.shape_cast %984 : vector<8xf32> to vector<8x1xf32>
    %986 = math.log %985 : vector<8x1xf32>
    %987 = arith.addf %986, %980 : vector<8x1xf32>
    %988 = tpu.iota {dimensions = array<i32: 1>} : vector<1x64xi32>
    %c8_301 = arith.constant 8 : index
    %989 = memref.load %arg2[%c8_301] : memref<16xi32, #tpu.memory_space<smem>>
    %990 = vector.broadcast %989 : i32 to vector<1x64xi32>
    %991 = arith.cmpi eq, %988, %990 : vector<1x64xi32>
    %992 = arith.extui %991 : vector<1x64xi1> to vector<1x64xi32>
    %993 = arith.sitofp %992 : vector<1x64xi32> to vector<1x64xf32>
    %994 = tpu.iota {dimensions = array<i32: 1>} : vector<1x64xi32>
    %c9_302 = arith.constant 9 : index
    %995 = memref.load %arg2[%c9_302] : memref<16xi32, #tpu.memory_space<smem>>
    %996 = vector.broadcast %995 : i32 to vector<1x64xi32>
    %997 = arith.cmpi eq, %994, %996 : vector<1x64xi32>
    %998 = arith.extui %997 : vector<1x64xi1> to vector<1x64xi32>
    %999 = arith.sitofp %998 : vector<1x64xi32> to vector<1x64xf32>
    %1000 = tpu.iota {dimensions = array<i32: 1>} : vector<1x64xi32>
    %c10_303 = arith.constant 10 : index
    %1001 = memref.load %arg2[%c10_303] : memref<16xi32, #tpu.memory_space<smem>>
    %1002 = vector.broadcast %1001 : i32 to vector<1x64xi32>
    %1003 = arith.cmpi eq, %1000, %1002 : vector<1x64xi32>
    %1004 = arith.extui %1003 : vector<1x64xi1> to vector<1x64xi32>
    %1005 = arith.sitofp %1004 : vector<1x64xi32> to vector<1x64xf32>
    %1006 = tpu.iota {dimensions = array<i32: 1>} : vector<1x64xi32>
    %c11_304 = arith.constant 11 : index
    %1007 = memref.load %arg2[%c11_304] : memref<16xi32, #tpu.memory_space<smem>>
    %1008 = vector.broadcast %1007 : i32 to vector<1x64xi32>
    %1009 = arith.cmpi eq, %1006, %1008 : vector<1x64xi32>
    %1010 = arith.extui %1009 : vector<1x64xi1> to vector<1x64xi32>
    %1011 = arith.sitofp %1010 : vector<1x64xi32> to vector<1x64xf32>
    %1012 = tpu.iota {dimensions = array<i32: 1>} : vector<1x64xi32>
    %c12_305 = arith.constant 12 : index
    %1013 = memref.load %arg2[%c12_305] : memref<16xi32, #tpu.memory_space<smem>>
    %1014 = vector.broadcast %1013 : i32 to vector<1x64xi32>
    %1015 = arith.cmpi eq, %1012, %1014 : vector<1x64xi32>
    %1016 = arith.extui %1015 : vector<1x64xi1> to vector<1x64xi32>
    %1017 = arith.sitofp %1016 : vector<1x64xi32> to vector<1x64xf32>
    %1018 = tpu.iota {dimensions = array<i32: 1>} : vector<1x64xi32>
    %c13_306 = arith.constant 13 : index
    %1019 = memref.load %arg2[%c13_306] : memref<16xi32, #tpu.memory_space<smem>>
    %1020 = vector.broadcast %1019 : i32 to vector<1x64xi32>
    %1021 = arith.cmpi eq, %1018, %1020 : vector<1x64xi32>
    %1022 = arith.extui %1021 : vector<1x64xi1> to vector<1x64xi32>
    %1023 = arith.sitofp %1022 : vector<1x64xi32> to vector<1x64xf32>
    %1024 = tpu.iota {dimensions = array<i32: 1>} : vector<1x64xi32>
    %c14_307 = arith.constant 14 : index
    %1025 = memref.load %arg2[%c14_307] : memref<16xi32, #tpu.memory_space<smem>>
    %1026 = vector.broadcast %1025 : i32 to vector<1x64xi32>
    %1027 = arith.cmpi eq, %1024, %1026 : vector<1x64xi32>
    %1028 = arith.extui %1027 : vector<1x64xi1> to vector<1x64xi32>
    %1029 = arith.sitofp %1028 : vector<1x64xi32> to vector<1x64xf32>
    %1030 = tpu.iota {dimensions = array<i32: 1>} : vector<1x64xi32>
    %c15_308 = arith.constant 15 : index
    %1031 = memref.load %arg2[%c15_308] : memref<16xi32, #tpu.memory_space<smem>>
    %1032 = vector.broadcast %1031 : i32 to vector<1x64xi32>
    %1033 = arith.cmpi eq, %1030, %1032 : vector<1x64xi32>
    %1034 = arith.extui %1033 : vector<1x64xi1> to vector<1x64xi32>
    %1035 = arith.sitofp %1034 : vector<1x64xi32> to vector<1x64xf32>
    %1036 = tpu.concatenate %993, %999, %1005, %1011, %1017, %1023, %1029, %1035 in 0 : vector<1x64xf32>, vector<1x64xf32>, vector<1x64xf32>, vector<1x64xf32>, vector<1x64xf32>, vector<1x64xf32>, vector<1x64xf32>, vector<1x64xf32> -> vector<8x64xf32>
    %cst_309 = arith.constant dense<0.000000e+00> : vector<8xf32>
    %1037 = vector.multi_reduction <add>, %1036, %cst_309 [1] : vector<8x64xf32> to vector<8xf32>
    %1038 = vector.shape_cast %1037 : vector<8xf32> to vector<8x1xf32>
    %1039 = arith.mulf %1036, %975 : vector<8x64xf32>
    %cst_310 = arith.constant dense<0.000000e+00> : vector<8xf32>
    %1040 = vector.multi_reduction <add>, %1039, %cst_310 [1] : vector<8x64xf32> to vector<8xf32>
    %1041 = vector.shape_cast %1040 : vector<8xf32> to vector<8x1xf32>
    %1042 = arith.mulf %987, %1038 : vector<8x1xf32>
    %1043 = arith.subf %1042, %1041 : vector<8x1xf32>
    %1044 = vector.shape_cast %1043 : vector<8x1xf32> to vector<1x8x1xf32>
    %cst_311 = arith.constant dense<0.000000e+00> : vector<1xf32>
    %1045 = vector.multi_reduction <add>, %1044, %cst_311 [1, 2] : vector<1x8x1xf32> to vector<1xf32>
    %1046 = vector.shape_cast %1045 : vector<1xf32> to vector<1x1x1xf32>
    %1047 = vector.extract %1046[0, 0, 0] : f32 from vector<1x1x1xf32>
    %1048 = arith.addf %539, %1047 : f32
    %1049 = vector.shape_cast %1038 : vector<8x1xf32> to vector<1x8x1xf32>
    %cst_312 = arith.constant dense<0.000000e+00> : vector<1xf32>
    %1050 = vector.multi_reduction <add>, %1049, %cst_312 [1, 2] : vector<1x8x1xf32> to vector<1xf32>
    %1051 = vector.shape_cast %1050 : vector<1xf32> to vector<1x1x1xf32>
    %1052 = vector.extract %1051[0, 0, 0] : f32 from vector<1x1x1xf32>
    %1053 = arith.addf %544, %1052 : f32
    %cst_313 = arith.constant 1.000000e+00 : f32
    %1054 = arith.maximumf %1053, %cst_313 : f32
    %1055 = arith.divf %1048, %1054 : f32
    %c0_314 = arith.constant 0 : index
    %1056 = memref.load %arg29[%c0_314] : memref<1xf32, #tpu.memory_space<smem>>
    memref.store %1055, %arg29[%c0_314] : memref<1xf32, #tpu.memory_space<smem>>
    return
  }
}

</mosaic_0001>

<bundles_post_ra>
// kernel: tinystyler_forward.1
= control target key start
LH: loop header
LB: loop body
LE: loop exit
PB: predicated region body
PF: predicated region fallthrough
CT: control target
= control target key end

     0   :  { %s6326_s6 = smov 1   ;;  %s6327_s10 = smov 2   ;;  %s7745_s0 = inlined_call_operand.smem [shape: u32[30], index: -1, kind: input, shape index: {}] }
   0x1   :  { %s6387_s5 = sld [smem:[%s7745_s0]]   ;;  %s6328_s14 = smov 3  }
   0x2   :  { %s6392_s9 = sld [smem:[%s7745_s0 + %s6326_s6]]   ;;  %s6329_s18 = smov 4  }
   0x3   :  { %s6397_s13 = sld [smem:[%s7745_s0 + %s6327_s10]]   ;;  %s6330_s22 = smov 5  }
   0x4   :  { %s6402_s17 = sld [smem:[%s7745_s0 + %s6328_s14]]   ;;  %s6331_s26 = smov 6  }
   0x5   :  { %s6407_s21 = sld [smem:[%s7745_s0 + %s6329_s18]]   ;;  %s6332_s30 = smov 7  }
   0x6   :  { %s6412_s25 = sld [smem:[%s7745_s0 + %s6330_s22]]   ;;  %s6333_s4 = smov 8  }
   0x7   :  { %s6417_s29 = sld [smem:[%s7745_s0 + %s6331_s26]]   ;;  %s6334_s10 = smov 9  }
   0x8   :  { %s6422_s3 = sld [smem:[%s7745_s0 + %s6332_s30]]   ;;  %s6335_s15 = smov 10  }
   0x9   :  { %s6427_s8 = sld [smem:[%s7745_s0 + %s6333_s4]]   ;;  %s6336_s20 = smov 11  }
   0xa   :  { %s6432_s14 = sld [smem:[%s7745_s0 + %s6334_s10]]   ;;  %s6337_s26 = smov 12  }
   0xb   :  { %s6437_s19 = sld [smem:[%s7745_s0 + %s6335_s15]]   ;;  %s6338_s1 = smov 13  }
   0xc   :  { %s6442_s24 = sld [smem:[%s7745_s0 + %s6336_s20]]   ;;  %s6339_s7 = smov 14  }
   0xd   :  { %s6447_s30 = sld [smem:[%s7745_s0 + %s6337_s26]]   ;;  %s6340_s15 = smov 15  }
   0xe   :  { %s6452_s6 = sld [smem:[%s7745_s0 + %s6338_s1]]   ;;  %s6341_s22 = smov 16  }
   0xf   :  { %s6457_s12 = sld [smem:[%s7745_s0 + %s6339_s7]]   ;;  %s6342_s28 = smov 17  }
  0x10   :  { %s6462_s20 = sld [smem:[%s7745_s0 + %s6340_s15]]   ;;  %s6343_s7 = smov 18  }
  0x11   :  { %s6467_s27 = sld [smem:[%s7745_s0 + %s6341_s22]]   ;;  %s6344_s15 = smov 19  }
  0x12   :  { %s6472_s4 = sld [smem:[%s7745_s0 + %s6342_s28]]   ;;  %s6345_s22 = smov 20  }
  0x13   :  { %7791 = sst [smem:[#allocation15_spill]] %s6447_s30  ;;  %s6346_s28 = smov 21  }
  0x14   :  { %s6477_s30 = sld [smem:[%s7745_s0 + %s6343_s7]]   ;;  %s6347_s7 = smov 22  }
  0x16   :  { %7792 = sst [smem:[#allocation16_spill]] %s6462_s20 }
  0x17   :  { %7793 = sst [smem:[#allocation17_spill]] %s6467_s27 }
  0x18   :  { %7794 = sst [smem:[#allocation18_spill]] %s6472_s4 }
  0x19   :  { %s6482_s20 = sld [smem:[%s7745_s0 + %s6344_s15]]   ;;  %s6348_s15 = smov 23  }
  0x1a   :  { %7795 = sst [smem:[#allocation19_spill]] %s6477_s30 }
  0x1b   :  { %s6487_s27 = sld [smem:[%s7745_s0 + %s6345_s22]]   ;;  %s6349_s22 = smov 24  }
  0x1c   :  { %s6492_s4 = sld [smem:[%s7745_s0 + %s6346_s28]]   ;;  %s6350_s28 = smov 25  }
  0x1d   :  { %s6497_s30 = sld [smem:[%s7745_s0 + %s6347_s7]]   ;;  %s6351_s7 = smov 26  }
  0x1f   :  { %7796 = sst [smem:[#allocation20_spill]] %s6482_s20 }
  0x20   :  { %s6502_s20 = sld [smem:[%s7745_s0 + %s6348_s15]]   ;;  %s6352_s15 = smov 27  }
  0x21   :  { %7797 = sst [smem:[#allocation21_spill]] %s6487_s27 }
  0x22   :  { %7798 = sst [smem:[#allocation22_spill]] %s6492_s4 }
  0x23   :  { %7799 = sst [smem:[#allocation23_spill]] %s6497_s30 }
  0x24   :  { %s6507_s27 = sld [smem:[%s7745_s0 + %s6349_s22]]   ;;  %s6353_s22 = smov 28  }
  0x25   :  { %s6512_s4 = sld [smem:[%s7745_s0 + %s6350_s28]]   ;;  %s6354_s28 = smov 29  }
  0x26   :  { %7800 = sst [smem:[#allocation24_spill]] %s6502_s20 }
  0x27   :  { %s6517_s30 = sld [smem:[%s7745_s0 + %s6351_s7]]  }
  0x28   :  { %s6522_s20 = sld [smem:[%s7745_s0 + %s6352_s15]]  }
  0x2a   :  { %7801 = sst [smem:[#allocation25_spill]] %s6507_s27 }
  0x2b   :  { %7802 = sst [smem:[#allocation26_spill]] %s6512_s4 }
  0x2c   :  { %s6527_s27 = sld [smem:[%s7745_s0 + %s6353_s22]]  }
  0x2d   :  { %s6532_s4 = sld [smem:[%s7745_s0 + %s6354_s28]]  }
  0x2e   :  { %7803 = sst [smem:[#allocation27_spill]] %s6522_s20 }
  0x32   :  { %7804 = sst [smem:[#allocation28_spill]] %s6527_s27 }
  0x33   :  { %7805 = sst [smem:[#allocation29_spill]] %s6532_s4 }
  0x34   :  { %65 = vsyncpa [#allocation5], 0 }
  0x35   :  { %66 = vsyncpa [#allocation7], 0 }
  0x36   :  { %67 = vsyncpa [#allocation3], 0  ;;  %s85_s7 = sshll.u32 %s6392_s9, 4  ;;  %s86_s7 = int_to_ptr.vmem [resolvable:$true] %s85_s7 }
  0x37   :  { %68 = vsyncpa [#allocation4], 0  ;;  %s75_s10 = sshll.u32 %s6387_s5, 4  ;;  %s6250_s11 = scalar_lea.vmem %s86_s7, 16  ;;  %s76_s10 = int_to_ptr.vmem [resolvable:$true] %s75_s10 }
  0x38   :  { %p6251_p0 = scmp.ne.s32.totalorder %s86_s7, %s6250_s11  ;;  %p6255_p1 = scmp.lt.s32.totalorder %s86_s7, %s86_s7 }
  0x39   :  { %p6256_p2 = scmp.lt.s32.totalorder %s6250_s11, %s6250_s11 }
  0x3b   :  { %p6257_p3 = por %p6256_p2, %p6255_p1 }
  0x3d   :  { %p6258_p4 = pnand %p6257_p3, %p6251_p0 }
  0x3f   :  { %6261 = shalt.err (!%p6258_p4)
}
  0x40   :  { %s6355_s15 = smov [#allocation6]   ;;  %s6262_s0 = scalar_lea.vmem %s76_s10, 16 }
  0x41   :  { %88 = dma.vmem_to_smem %s86_s7, 16, %s6355_s15, [#allocation7]  }
  0x42   :  { %p6263_p5 = scmp.ne.s32.totalorder %s76_s10, %s6262_s0  ;;  %p6267_p6 = scmp.lt.s32.totalorder %s76_s10, %s76_s10 }
  0x43   :  { %p6268_p7 = scmp.lt.s32.totalorder %s6262_s0, %s6262_s0 }
  0x45   :  { %p6269_p8 = por %p6268_p7, %p6267_p6 }
  0x47   :  { %p6270_p9 = pnand %p6269_p8, %p6263_p5 }
  0x49   :  { %6273 = shalt.err (!%p6270_p9)
}
  0x4a   :  { %s6356_s9 = smov [#allocation2]   ;;  %s95_s5 = sshll.u32 %s6397_s13, 4  ;;  %s96_s5 = int_to_ptr.vmem [resolvable:$true] %s95_s5 }
  0x4b   :  { %78 = dma.vmem_to_smem %s76_s10, 16, %s6356_s9, [#allocation5]  }
  0x4c   :  { %s6274_s16 = scalar_lea.vmem %s96_s5, 16  ;;  %p6279_p11 = scmp.lt.s32.totalorder %s96_s5, %s96_s5 }
  0x4d   :  { %p6275_p10 = scmp.ne.s32.totalorder %s96_s5, %s6274_s16  ;;  %p6280_p12 = scmp.lt.s32.totalorder %s6274_s16, %s6274_s16 }
  0x4f   :  { %p6281_p13 = por %p6280_p12, %p6279_p11 }
  0x51   :  { %p6282_p0 = pnand %p6281_p13, %p6275_p10 }
  0x53   :  { %6285 = shalt.err (!%p6282_p0)
}
  0x54   :  { %s6357_s18 = smov [#allocation8]  }
  0x55   :  { %98 = dma.vmem_to_smem %s96_s5, 16, %s6357_s18, [#allocation7]  }
  0x56   :  { %6318 = dma.done.wait [#allocation5], 16  }
  0x57   :  { %6319 = vsyncadd [#allocation5], 4294967280 }
  0x58   :  { %6320 = dma.done.wait [#allocation7], 32  }
  0x59   :  { %6321 = vsyncadd [#allocation7], 4294967264 }
  0x5a   :  { %158 = sfence }
  0x5b   :  { %v160_v0 = vld [vmem:[%s6417_s29] sm:$0xff]  ;;  %v161_v1 = vld [vmem:[%s6417_s29 + $0x8] sm:$0xff]  ;;  %v162_v2 = vld [vmem:[%s6417_s29 + $0x10] sm:$0xff]  ;;  %v6358_v3 = vmov 0.0   ;;  %vm6359_vm0 = vmmov 0   ;;  %vm281_vm1 = vcmask 392192  }
  0x5c   :  { %5435 = vmatprep.subr.bf16.mxu0 %v6358_v3  ;;  %v6541_v4 = vpack.c.bf16 %v161_v1, %v160_v0  ;;  %v163_v5 = vld [vmem:[%s6417_s29 + $0x18] sm:$0xff]  ;;  %5441 = vmatprep.mubr.msk.bf16.mxu0 %vm6359_vm0, %v6358_v3  ;;  %v164_v7 = vld [vmem:[%s6417_s29 + $0x20] sm:$0xff]  ;;  %v165_v8 = vld [vmem:[%s6417_s29 + $0x28] sm:$0xff]  ;;  %s5106_s13 = sld [smem:[#allocation2 + $0x1]]  ;;  %s5107_s29 = sld [smem:[#allocation2 + $0x2]]  ;;  %vm370_vm2 = vcmask 1040384  }
  0x5d   :  { %5453 = vmatprep.subr.bf16.mxu1 %v6358_v3  ;;  %5455 = vmatprep.mubr.msk.bf16.mxu1 %vm6359_vm0, %v6358_v3  ;;  %v6550_v6 = vpack.c.bf16 %v163_v5, %v162_v2  ;;  %v6556_v9 = vpack.c.bf16 %v165_v8, %v164_v7  ;;  %v279_v10 = vld [vmem:[%s6407_s21] sm:$0x1]  ;;  %s325_s22 = sld [smem:[#allocation2]]  ;;  %s5108_s23 = sld [smem:[#allocation2 + $0x3]]  ;;  %vm372_vm3 = vcmask 1041408   ;;  %vm374_vm4 = vcmask 1042432  }
  0x5e   :  { %5436 = vmatpush3.bf16.msra.mxu0 %v6541_v4  ;;  %v280_v11 = vpack.c.bf16 %v279_v10, %v279_v10  ;;  %s5109_s28 = sld [smem:[#allocation2 + $0x4]]  ;;  %s5110_s7 = sld [smem:[#allocation2 + $0x5]]  ;;  %vm376_vm5 = vcmask 1043456   ;;  %vm378_vm6 = vcmask 1044480   ;;  %vm380_vm7 = vcmask 1045504   ;;  %v197_v46 = vld [vmem:[%s6437_s19] sm:$0xff] }
  0x5f   :  { %5437 = vmatprep.subr.bf16.mxu0 %v6358_v3  ;;  %s5111_s11 = sld [smem:[#allocation2 + $0x6]]  ;;  %s5112_s0 = sld [smem:[#allocation2 + $0x7]]  ;;  %vm382_vm8 = vcmask 1046528   ;;  %v169_v34 = vld [vmem:[%s6422_s3] sm:$0x1]  ;;  %vm393_vm9 = vcmask 261120  }
  0x60   :  { %vm397_vm10 = vcmask 253952   ;;  %v198_v47 = vld [vmem:[%s6437_s19 + $0x8] sm:$0xff]  ;;  %v199_v49 = vld [vmem:[%s6437_s19 + $0x10] sm:$0xff]  ;;  %v200_v50 = vld [vmem:[%s6437_s19 + $0x18] sm:$0xff]  ;;  %s7779_s19 = smov 120   ;;  %s7783_s18 = smov 96  }
  0x61   :  { %v6595_v48 = vpack.c.bf16 %v198_v47, %v197_v46  ;;  %v6601_v51 = vpack.c.bf16 %v200_v50, %v199_v49  ;;  %v5113_v61 = vld [vmem:[%s6432_s14] ss:$0 sm:$0xff]  ;;  %vm467_vm11 = vcmask 64512   ;;  %vm521_vm12 = vcmask 72704  }
  0x62   :  { %5438 = vmatpush3.bf16.msra.mxu0 %v6550_v6  ;;  %s329_s26 = scalar_lea.vmem %s6412_s25, %s5106_s13  ;;  %s332_s1 = scalar_lea.vmem %s6412_s25, %s5107_s29  ;;  %vm7774_vm13 = vcmask 65536   ;;  %vm998_vm14 = vcmask 130048   ;;  %vm1001_vm15 = vcmask 195584  }
  0x63   :  { %5439 = vmatprep.subr.bf16.mxu0 %v6358_v3  ;;  %v330_v12 = vld [vmem:[%s329_s26] sm:$0x1]  ;;  %s326_s2 = scalar_lea.vmem %s6412_s25, %s325_s22  ;;  %s335_s10 = scalar_lea.vmem %s6412_s25, %s5108_s23 }
  0x64   :  { %v333_v13 = vld [vmem:[%s332_s1] sm:$0x1]  ;;  %v350_v14 = vrot.slane %v330_v12, 7  ;;  %s338_s15 = scalar_lea.vmem %s6412_s25, %s5109_s28  ;;  %s341_s9 = scalar_lea.vmem %s6412_s25, %s5110_s7 }
  0x65   :  { %v327_v15 = vld [vmem:[%s326_s2] sm:$0x1]  ;;  %v353_v17 = vrot.slane %v333_v13, 6  ;;  %s344_s5 = scalar_lea.vmem %s6412_s25, %s5111_s11  ;;  %s347_s16 = scalar_lea.vmem %s6412_s25, %s5112_s0 }
  0x66   :  { %5440 = vmatpush3.bf16.msra.mxu0 %v6556_v9  ;;  %v336_v16 = vld [vmem:[%s335_s10] sm:$0x1]  ;;  %v371_v18 = vsel %vm370_vm2, %v327_v15, %v350_v14  ;;  %s7785_s13 = smov 88   ;;  %s7775_s29 = smov 80  }
  0x67   :  { %5445 = vmatprep.subr.bf16.mxu0 %v6358_v3  ;;  %v339_v19 = vld [vmem:[%s338_s15] sm:$0x1]  ;;  %v356_v20 = vrot.slane %v336_v16, 5  ;;  %v373_v21 = vsel %vm372_vm3, %v371_v18, %v353_v17  ;;  %s7781_s22 = smov 112   ;;  %s7772_s23 = smov 72  }
  0x68   :  { %v342_v22 = vld [vmem:[%s341_s9] sm:$0x1]  ;;  %v359_v23 = vrot.slane %v339_v19, 4  ;;  %s7777_s26 = smov 104   ;;  %s7768_s28 = smov 64  }
  0x69   :  { %5442 = vmatmul.mubr.msk.bf16.vlgmr.msra.gmra.mrb[0].mxu0 %vm281_vm1, %v280_v11  ;;  %v375_v24 = vsel %vm374_vm4, %v373_v21, %v356_v20  ;;  %v345_v25 = vld [vmem:[%s344_s5] sm:$0x1]  ;;  %v362_v26 = vrot.slane %v342_v22, 3  ;;  %v515_v22 = vlaneseq  ;;  %s7764_s1 = smov 48   ;;  %s7766_s2 = smov 40  }
  0x6a   :  { %5449 = vmatprep.mubr.msk.bf16.mxu0 %vm6359_vm0, %v6358_v3  ;;  %v377_v27 = vsel %vm376_vm5, %v375_v24, %v359_v23  ;;  %v348_v28 = vld [vmem:[%s347_s16] sm:$0x1]  ;;  %v365_v29 = vrot.slane %v345_v25, 2  ;;  %5446 = vmatpush3.bf16.msra.mxu0 %v6595_v48  ;;  %s7770_s7 = smov 56   ;;  %s7762_s10 = smov 8  }
  0x6b   :  { %v379_v30 = vsel %vm378_vm6, %v377_v27, %v362_v26  ;;  %v368_v31 = vrot.slane %v348_v28, 1  ;;  %5447 = vmatprep.subr.bf16.mxu0 %v6358_v3  ;;  %v388_v23 = vld [vmem:[%s6402_s17] sm:$0x1]  ;;  %v6650_v25 = vshrl.u32 %v515_v22, 7  ;;  %s7760_s11 = smov 16   ;;  %s7758_s15 = smov 24  }
  0x6c   :  { %v381_v32 = vsel %vm380_vm7, %v379_v30, %v365_v29  ;;  %v389_v24 = vsub.f32 1.0, %v388_v23  ;;  %v170_v28 = vld [vmem:[%s6427_s8] sm:$0xff]  ;;  %s5129_s0 = sld [smem:[#allocation6 + $0x2]]  ;;  %s1194_s9 = sld [smem:[#allocation6]] }
  0x6d   :  { %v383_v33 = vsel %vm382_vm8, %v381_v32, %v368_v31  ;;  %v517_v27 = vsub.s32 0, %v6650_v25  ;;  %v171_v31 = vld [vmem:[%s6427_s8 + $0x8] sm:$0x1]  ;;  %s5130_s5 = sld [smem:[#allocation6 + $0x3]] }
  0x6e   :  { %v6581_v35 = vrot.slane %v383_v33, 7  ;;  %5448 = vmatpush3.bf16.msra.mxu0 %v6601_v51  ;;  %v390_v26 = vmul.f32 -1e+09, %v389_v24 }
  0x6f   :  { %5459 = vmatprep.subr.bf16.mxu0 %v6358_v3 }
  0x70   :  { %v392_v43 = vmul.f32 %v6581_v35, %v6581_v35  ;;  %v6656_v29 = vrot.slane %v390_v26, %v517_v27 }
  0x72   :  { %v398_v45 = vsel %vm397_vm10, %v392_v43, 0.0 }
 0x13c   :  { %v319_v36 = vpop.f32.mrb[0].mxu0 }
 0x13d   :  { %v320_v37 = vadd.f32 %v319_v36, %v169_v34  ;;  %v5443_v38 = vpop.f32.mrb[1].mxu0 }
 0x13e   :  { %v322_v39 = vpop.f32.mrb[2].mxu0 }
 0x13f   :  { %v5444_v40 = vpop.f32.mrb[3].mxu0  ;;  %v6585_v41 = vsel %vm370_vm2, %v320_v37, %v6581_v35 }
 0x140   :  { %v391_v42 = vmul.f32 %v6585_v41, %v6585_v41 }
 0x142   :  { %v394_v44 = vsel %vm393_vm9, %v391_v42, 0.0  ;;  %v172_v42 = vld [vmem:[%s6427_s8 + $0x10] sm:$0xff] }
 0x143   :  { %395 = vadd.xlane.f32.xlu0 %v394_v44 }
 0x147   :  { %399 = vadd.xlane.f32.xlu0 %v398_v45  ;;  %v173_v45 = vld [vmem:[%s6427_s8 + $0x18] sm:$0x1] }
 0x1d0   :  { %v396_v52 = vpop.xlane.xlu0 %395 }
 0x1d1   :  { %v402_v53 = vmul.f32 0.03125, %v396_v52 }
 0x1d3   :  { %v404_v54 = vadd.f32 1e-06, %v402_v53 }
 0x1d4   :  { %v400_v55 = vpop.xlane.xlu0 %399 }
 0x1d5   :  { %6052 = vrsqrt.f32 %v404_v54  ;;  %v403_v56 = vmul.f32 0.03125, %v400_v55 }
 0x1d7   :  { %v405_v57 = vadd.f32 1e-06, %v403_v56  ;;  %v174_v56 = vld [vmem:[%s6427_s8 + $0x20] sm:$0xff] }
 0x1d9   :  { %6054 = vrsqrt.f32 %v405_v57 }
 0x1df   :  { %v6053_v58 = vpop.eup %6052 }
 0x1e0   :  { %v408_v59 = vmul.f32 %v6053_v58, %v6585_v41 }
 0x1e2   :  { %v416_v63 = vmul.f32 %v5113_v61, %v408_v59  ;;  %v175_v59 = vld [vmem:[%s6427_s8 + $0x28] sm:$0x1] }
 0x1e3   :  { %v6055_v60 = vpop.eup %6054 }
 0x1e4   :  { %v409_v62 = vmul.f32 %v6055_v60, %v6581_v35 }
 0x1e6   :  { %v417_v0 = vmul.f32 %v5113_v61, %v409_v62 }
 0x1e8   :  { %v418_v1 = vpack.c.bf16 %v417_v0, %v416_v63 }
 0x1ea   :  { %5450 = vmatmul.mubr.msk.bf16.vlgmr.msra.gmra.mrb[4].mxu0 %vm393_vm9, %v418_v1 }
 0x1eb   :  { %5461 = vmatprep.mubr.msk.bf16.mxu0 %vm6359_vm0, %v6358_v3 }
 0x2bd   :  { %v456_v2 = vpop.f32.mrb[4].mxu0 }
 0x2be   :  { %v5451_v5 = vpop.f32.mrb[5].mxu0 }
 0x2bf   :  { %v459_v7 = vpop.f32.mrb[6].mxu0 }
 0x2c0   :  { %v6611_v8 = vpack.c.bf16 %v459_v7, %v456_v2  ;;  %v5452_v10 = vpop.f32.mrb[7].mxu0  ;;  %v176_v7 = vld [vmem:[%s6427_s8 + $0x30] sm:$0xff] }
 0x2c2   :  { %597 = vrot.lane.b32.xlu0 %v6611_v8, %s7779_s19  ;;  %465 = vrot.lane.b32.xlu1 %v6611_v8, %s7783_s18 }
 0x2c6   :  { %599 = vrot.lane.b32.xlu1 %v6611_v8, %s7785_s13 }
 0x2ca   :  { %724 = vrot.lane.b32.xlu1 %v6611_v8, %s7775_s29 }
 0x2ce   :  { %722 = vrot.lane.b32.xlu1 %v6611_v8, %s7781_s22 }
 0x2d2   :  { %849 = vrot.lane.b32.xlu1 %v6611_v8, %s7772_s23  ;;  %s5134_s23 = sld [smem:[#allocation6 + $0x7]] }
 0x2d6   :  { %847 = vrot.lane.b32.xlu1 %v6611_v8, %s7777_s26 }
 0x334   :  { %v466_v11 = vpop.permute.xlu1 %465  ;;  %v598_v16 = vpop.permute.xlu0 %597 }
 0x335   :  { %v472_v12 = vsel %vm467_vm11, %v466_v11, 0 }
 0x336   :  { %5454 = vmatpush3.bf16.xpose.msra.mxu1 %v472_v12  ;;  %v177_v12 = vld [vmem:[%s6427_s8 + $0x38] sm:$0x1] }
 0x337   :  { %5465 = vmatprep.subr.bf16.mxu1 %v6358_v3 }
 0x338   :  { %v600_v13 = vpop.permute.xlu1 %599 }
 0x339   :  { %v605_v14 = vsel %vm467_vm11, %v600_v13, 0 }
 0x33c   :  { %v725_v15 = vpop.permute.xlu1 %724 }
 0x33d   :  { %5456 = vmatmul.mubr.msk.bf16.vlgmr.msra.gmra.mrb[0].mxu1 %vm467_vm11, %v6611_v8  ;;  %v730_v18 = vsel %vm467_vm11, %v725_v15, 0 }
 0x33e   :  { %5466 = vmatpush3.bf16.xpose.msra.mxu1 %v605_v14  ;;  %5467 = vmatprep.mubr.msk.bf16.mxu1 %vm6359_vm0, %v6358_v3 }
 0x33f   :  { %5477 = vmatprep.subr.bf16.mxu1 %v6358_v3 }
 0x340   :  { %v723_v17 = vpop.permute.xlu1 %722 }
 0x344   :  { %v850_v19 = vpop.permute.xlu1 %849 }
 0x345   :  { %5468 = vmatmul.mubr.msk.bf16.vlgmr.msra.gmra.mrb[4].mxu1 %vm467_vm11, %v598_v16  ;;  %v855_v20 = vsel %vm467_vm11, %v850_v19, 0 }
 0x346   :  { %5478 = vmatpush3.bf16.xpose.msra.mxu1 %v730_v18  ;;  %5479 = vmatprep.mubr.msk.bf16.mxu1 %vm6359_vm0, %v6358_v3 }
 0x347   :  { %5489 = vmatprep.subr.bf16.mxu1 %v6358_v3 }
 0x348   :  { %v848_v21 = vpop.permute.xlu1 %847 }
 0x34d   :  { %5480 = vmatmul.mubr.msk.bf16.vlgmr.msra.gmra.mrb[8].mxu1 %vm467_vm11, %v723_v17 }
 0x34e   :  { %5490 = vmatpush3.bf16.xpose.msra.mxu1 %v855_v20  ;;  %5491 = vmatprep.mubr.msk.bf16.mxu1 %vm6359_vm0, %v6358_v3 }
 0x34f   :  { %5501 = vmatprep.subr.bf16.mxu1 %v6358_v3 }
 0x355   :  { %5492 = vmatmul.mubr.msk.bf16.vlgmr.msra.gmra.mrb[12].mxu1 %vm467_vm11, %v848_v21 }
 0x356   :  { %5505 = vmatprep.mubr.msk.bf16.mxu1 %vm6359_vm0, %v6358_v3 }
 0x410   :  { %v508_v30 = vpop.f32.mrb[0].mxu1 }
 0x411   :  { %v509_v32 = vadd.f32 %v508_v30, %v170_v28  ;;  %v5457_v33 = vpop.f32.mrb[1].mxu1 }
 0x412   :  { %v511_v34 = vpop.f32.mrb[2].mxu1 }
 0x413   :  { %v512_v36 = vadd.f32 %v511_v34, %v171_v31  ;;  %v5458_v37 = vpop.f32.mrb[3].mxu1  ;;  %v519_v38 = vadd.f32 %v6656_v29, %v509_v32 }
 0x415   :  { %v522_v39 = vsel %vm521_vm12, %v519_v38, -inf  ;;  %v520_v40 = vadd.f32 %v6656_v29, %v512_v36 }
 0x416   :  { %523 = vmax.xlane.f32.xlu1 %v522_v39 }
 0x417   :  { %v526_v43 = vsel %vm7774_vm13, %v520_v40, -inf }
 0x418   :  { %527 = vmax.xlane.f32.xlu0 %v526_v43  ;;  %v641_v44 = vpop.f32.mrb[4].mxu1 }
 0x419   :  { %v642_v46 = vadd.f32 %v641_v44, %v172_v42  ;;  %v5469_v47 = vpop.f32.mrb[5].mxu1 }
 0x41a   :  { %v644_v49 = vpop.f32.mrb[6].mxu1 }
 0x41b   :  { %v645_v50 = vadd.f32 %v644_v49, %v173_v45  ;;  %v5470_v52 = vpop.f32.mrb[7].mxu1  ;;  %v648_v53 = vadd.f32 %v642_v46, %v6656_v29 }
 0x41d   :  { %v650_v54 = vsel %vm521_vm12, %v648_v53, -inf  ;;  %v649_v55 = vadd.f32 %v645_v50, %v6656_v29 }
 0x41e   :  { %651 = vmax.xlane.f32.xlu1 %v650_v54 }
 0x41f   :  { %v653_v57 = vsel %vm7774_vm13, %v649_v55, -inf }
 0x420   :  { %654 = vmax.xlane.f32.xlu0 %v653_v57  ;;  %v766_v58 = vpop.f32.mrb[8].mxu1 }
 0x421   :  { %v767_v60 = vadd.f32 %v766_v58, %v174_v56  ;;  %v5481_v61 = vpop.f32.mrb[9].mxu1 }
 0x422   :  { %v769_v62 = vpop.f32.mrb[10].mxu1 }
 0x423   :  { %v770_v63 = vadd.f32 %v769_v62, %v175_v59  ;;  %v5482_v0 = vpop.f32.mrb[11].mxu1  ;;  %v773_v1 = vadd.f32 %v767_v60, %v6656_v29 }
 0x425   :  { %v775_v2 = vsel %vm521_vm12, %v773_v1, -inf  ;;  %v774_v5 = vadd.f32 %v770_v63, %v6656_v29 }
 0x426   :  { %776 = vmax.xlane.f32.xlu1 %v775_v2 }
 0x427   :  { %v778_v10 = vsel %vm7774_vm13, %v774_v5, -inf }
 0x428   :  { %779 = vmax.xlane.f32.xlu0 %v778_v10  ;;  %v891_v11 = vpop.f32.mrb[12].mxu1 }
 0x429   :  { %v892_v13 = vadd.f32 %v891_v11, %v176_v7  ;;  %v5493_v14 = vpop.f32.mrb[13].mxu1 }
 0x42a   :  { %v894_v15 = vpop.f32.mrb[14].mxu1 }
 0x42b   :  { %v895_v16 = vadd.f32 %v894_v15, %v177_v12  ;;  %v5494_v17 = vpop.f32.mrb[15].mxu1  ;;  %v898_v18 = vadd.f32 %v892_v13, %v6656_v29 }
 0x42d   :  { %v900_v19 = vsel %vm521_vm12, %v898_v18, -inf  ;;  %v899_v20 = vadd.f32 %v895_v16, %v6656_v29 }
 0x42e   :  { %901 = vmax.xlane.f32.xlu1 %v900_v19 }
 0x42f   :  { %v903_v21 = vsel %vm7774_vm13, %v899_v20, -inf }
 0x430   :  { %904 = vmax.xlane.f32.xlu0 %v903_v21 }
 0x43f   :  { %546 = vrot.lane.b32.xlu1 %v6611_v8, %s7768_s28  ;;  %s5133_s28 = sld [smem:[#allocation6 + $0x6]] }
 0x4a3   :  { %v524_v23 = vpop.xlane.xlu1 %523 }
 0x4a4   :  { %v529_v24 = vsub.f32 %v519_v38, %v524_v23 }
 0x4a5   :  { %v528_v26 = vpop.xlane.xlu0 %527 }
 0x4a6   :  { %v531_v28 = vmul.f32 1.442695, %v529_v24  ;;  %v530_v30 = vsub.f32 %v520_v40, %v528_v26 }
 0x4a8   :  { %6056 = vpow2.f32 %v531_v28  ;;  %v533_v31 = vmul.f32 1.442695, %v530_v30 }
 0x4aa   :  { %6058 = vpow2.f32 %v533_v31 }
 0x4ab   :  { %v652_v32 = vpop.xlane.xlu1 %651 }
 0x4ac   :  { %v656_v33 = vsub.f32 %v648_v53, %v652_v32  ;;  %v6368_v53 = vmov 65535  }
 0x4ad   :  { %v655_v34 = vpop.xlane.xlu0 %654  ;;  %v551_v54 = vsel %vm376_vm5, 4294967295, %v6368_v53 }
 0x4ae   :  { %v658_v36 = vmul.f32 1.442695, %v656_v33  ;;  %v657_v37 = vsub.f32 %v649_v55, %v655_v34  ;;  %v6691_v59 = vsel %vm378_vm6, %v551_v54, 0 }
 0x4b0   :  { %6060 = vpow2.f32 %v658_v36  ;;  %v660_v39 = vmul.f32 1.442695, %v657_v37 }
 0x4b2   :  { %v6057_v42 = vpop.eup %6056  ;;  %6062 = vpow2.f32 %v660_v39 }
 0x4b3   :  { %v777_v43 = vpop.xlane.xlu1 %776  ;;  %v535_v44 = vsel %vm521_vm12, %v6057_v42, 0.0 }
 0x4b4   :  { %v6059_v45 = vpop.eup %6058  ;;  %v781_v38 = vsub.f32 %v773_v1, %v777_v43  ;;  %536 = vadd.xlane.f32.xlu1 %v535_v44 }
 0x4b5   :  { %v780_v46 = vpop.xlane.xlu0 %779  ;;  %v538_v40 = vsel %vm7774_vm13, %v6059_v45, 0.0 }
 0x4b6   :  { %v783_v47 = vmul.f32 1.442695, %v781_v38  ;;  %v782_v49 = vsub.f32 %v774_v5, %v780_v46  ;;  %539 = vadd.xlane.f32.xlu0 %v538_v40 }
 0x4b8   :  { %6064 = vpow2.f32 %v783_v47  ;;  %v785_v50 = vmul.f32 1.442695, %v782_v49 }
 0x4ba   :  { %v6685_v52 = vpop.eup %6060  ;;  %6066 = vpow2.f32 %v785_v50 }
 0x4bb   :  { %v902_v55 = vpop.xlane.xlu1 %901  ;;  %v662_v56 = vsel %vm521_vm12, %v6685_v52, 0.0 }
 0x4bc   :  { %v6063_v57 = vpop.eup %6062  ;;  %v906_v58 = vsub.f32 %v898_v18, %v902_v55  ;;  %663 = vadd.xlane.f32.xlu1 %v662_v56 }
 0x4bd   :  { %v905_v60 = vpop.xlane.xlu0 %904  ;;  %v665_v61 = vsel %vm7774_vm13, %v6063_v57, 0.0 }
 0x4be   :  { %v908_v62 = vmul.f32 1.442695, %v906_v58  ;;  %v907_v63 = vsub.f32 %v899_v20, %v905_v60  ;;  %666 = vadd.xlane.f32.xlu0 %v665_v61 }
 0x4bf   :  { %v547_v0 = vpop.permute.xlu1 %546 }
 0x4c0   :  { %6068 = vpow2.f32 %v908_v62  ;;  %v910_v1 = vmul.f32 1.442695, %v907_v63  ;;  %v554_v2 = vand.u32 %v6691_v59, %v547_v0 }
 0x4c2   :  { %v6065_v5 = vpop.eup %6064  ;;  %6070 = vpow2.f32 %v910_v1  ;;  %5460 = vmatpush3.bf16.msra.mxu0 %v554_v2  ;;  %v203_v1 = vld [vmem:[%s6442_s24] sm:$0xff]  ;;  %v204_v2 = vld [vmem:[%s6442_s24 + $0x8] sm:$0xff] }
 0x4c3   :  { %v787_v7 = vsel %vm521_vm12, %v6065_v5, 0.0  ;;  %5471 = vmatprep.subr.bf16.mxu0 %v6358_v3 }
 0x4c4   :  { %v6067_v10 = vpop.eup %6066  ;;  %788 = vadd.xlane.f32.xlu1 %v787_v7 }
 0x4c5   :  { %v790_v11 = vsel %vm7774_vm13, %v6067_v10, 0.0 }
 0x4c6   :  { %791 = vadd.xlane.f32.xlu0 %v790_v11 }
 0x4ca   :  { %v6698_v12 = vpop.eup %6068 }
 0x4cb   :  { %v912_v13 = vsel %vm521_vm12, %v6698_v12, 0.0 }
 0x4cc   :  { %v6071_v14 = vpop.eup %6070  ;;  %913 = vadd.xlane.f32.xlu0 %v912_v13  ;;  %v206_v13 = vld [vmem:[%s6442_s24 + $0x18] sm:$0xff] }
 0x4cd   :  { %v915_v15 = vsel %vm7774_vm13, %v6071_v14, 0.0  ;;  %vm7789_vm13 = vcmask 523264  }
 0x4d0   :  { %916 = vadd.xlane.f32.xlu0 %v915_v15 }
 0x4d5   :  { %798 = vrot.lane.b32.xlu1 %v6611_v8, %s7764_s1  ;;  %s5132_s1 = sld [smem:[#allocation6 + $0x5]] }
 0x4d9   :  { %923 = vrot.lane.b32.xlu1 %v6611_v8, %s7766_s2  ;;  %s1204_s2 = scalar_lea.vmem %s6412_s25, %s5130_s5  ;;  %s7816_s5 = smov 8  }
 0x4e6   :  { %673 = vrot.lane.b32.xlu0 %v6611_v8, %s7770_s7 }
 0x541   :  { %v537_v16 = vpop.xlane.xlu1 %536 }
 0x542   :  { %6072 = vrcp.f32 %v537_v16 }
 0x543   :  { %v540_v17 = vpop.xlane.xlu0 %539 }
 0x544   :  { %6074 = vrcp.f32 %v540_v17 }
 0x549   :  { %v664_v26 = vpop.xlane.xlu1 %663 }
 0x54b   :  { %v667_v23 = vpop.xlane.xlu0 %666 }
 0x54c   :  { %v6073_v18 = vpop.eup %6072  ;;  %6076 = vrcp.f32 %v667_v23 }
 0x54d   :  { %v543_v20 = vmul.f32 %v6073_v18, %v6057_v42  ;;  %6078 = vrcp.f32 %v664_v26 }
 0x54e   :  { %v6075_v19 = vpop.eup %6074 }
 0x54f   :  { %v544_v21 = vmul.f32 %v6075_v19, %v6059_v45 }
 0x551   :  { %v545_v24 = vpack.c.bf16 %v544_v21, %v543_v20  ;;  %v789_v30 = vpop.xlane.xlu1 %788 }
 0x553   :  { %5462 = vmatmul.mubr.msk.bf16.vlgmr.msra.gmra.mrb[8].mxu0 %vm521_vm12, %v545_v24  ;;  %v792_v28 = vpop.xlane.xlu0 %791 }
 0x554   :  { %5473 = vmatprep.mubr.msk.bf16.mxu0 %vm6359_vm0, %v6358_v3  ;;  %6080 = vrcp.f32 %v792_v28 }
 0x555   :  { %6082 = vrcp.f32 %v789_v30  ;;  %v799_v42 = vpop.permute.xlu1 %798 }
 0x556   :  { %v6077_v32 = vpop.eup %6076  ;;  %v804_v45 = vand.u32 %v799_v42, %v6691_v59 }
 0x557   :  { %v6079_v33 = vpop.eup %6078  ;;  %v671_v34 = vmul.f32 %v6077_v32, %v6063_v57 }
 0x558   :  { %v670_v39 = vmul.f32 %v6079_v33, %v6685_v52 }
 0x559   :  { %v914_v8 = vpop.xlane.xlu0 %913  ;;  %v924_v47 = vpop.permute.xlu1 %923 }
 0x55a   :  { %v672_v43 = vpack.c.bf16 %v671_v34, %v670_v39  ;;  %v929_v52 = vand.u32 %v924_v47, %v6691_v59 }
 0x55d   :  { %v917_v31 = vpop.xlane.xlu0 %916 }
 0x55e   :  { %6084 = vrcp.f32 %v917_v31  ;;  %v6081_v44 = vpop.eup %6080 }
 0x55f   :  { %6086 = vrcp.f32 %v914_v8  ;;  %v6083_v38 = vpop.eup %6082  ;;  %v796_v46 = vmul.f32 %v6081_v44, %v6067_v10  ;;  %v6731_v10 = vpack.c.bf16 %v204_v2, %v203_v1 }
 0x560   :  { %v795_v40 = vmul.f32 %v6083_v38, %v6065_v5 }
 0x561   :  { %v674_v36 = vpop.permute.xlu0 %673  ;;  %5502 = vmatpush3.bf16.msra.mxu1 %v6731_v10 }
 0x562   :  { %v679_v37 = vand.u32 %v674_v36, %v6691_v59  ;;  %v797_v49 = vpack.c.bf16 %v796_v46, %v795_v40  ;;  %5503 = vmatprep.subr.bf16.mxu1 %v6358_v3 }
 0x564   :  { %5472 = vmatpush3.bf16.msra.mxu0 %v679_v37 }
 0x565   :  { %5483 = vmatprep.subr.bf16.mxu0 %v6358_v3 }
 0x567   :  { %5474 = vmatmul.mubr.msk.bf16.vlgmr.msra.gmra.mrb[12].mxu0 %vm521_vm12, %v672_v43 }
 0x568   :  { %5484 = vmatpush3.bf16.msra.mxu0 %v804_v45  ;;  %5485 = vmatprep.mubr.msk.bf16.mxu0 %vm6359_vm0, %v6358_v3  ;;  %v6085_v50 = vpop.eup %6084 }
 0x569   :  { %5495 = vmatprep.subr.bf16.mxu0 %v6358_v3  ;;  %v6087_v53 = vpop.eup %6086  ;;  %v921_v54 = vmul.f32 %v6085_v50, %v6071_v14  ;;  %v1205_v50 = vld [vmem:[%s1204_s2] sm:$0x1]  ;;  %s7811_s2 = smov 56  }
 0x56a   :  { %v920_v55 = vmul.f32 %v6087_v53, %v6698_v12  ;;  %v205_v12 = vld [vmem:[%s6442_s24 + $0x10] sm:$0xff]  ;;  %s5128_s24 = sld [smem:[#allocation6 + $0x1]] }
 0x56b   :  { %v6738_v15 = vpack.c.bf16 %v206_v13, %v205_v12 }
 0x56c   :  { %v922_v56 = vpack.c.bf16 %v921_v54, %v920_v55  ;;  %v1225_v55 = vrot.slane %v1205_v50, 5 }
 0x56d   :  { %5504 = vmatpush3.bf16.msra.mxu1 %v6738_v15 }
 0x56e   :  { %5517 = vmatprep.subr.bf16.mxu1 %v6358_v3 }
 0x56f   :  { %5486 = vmatmul.mubr.msk.bf16.vlgmr.msra.gmra.mrb[16].mxu0 %vm521_vm12, %v797_v49 }
 0x570   :  { %5496 = vmatpush3.bf16.msra.mxu0 %v929_v52  ;;  %5497 = vmatprep.mubr.msk.bf16.mxu0 %vm6359_vm0, %v6358_v3  ;;  %s1198_s16 = scalar_lea.vmem %s6412_s25, %s5128_s24  ;;  %s1210_s24 = scalar_lea.vmem %s6412_s25, %s5132_s1 }
 0x571   :  { %5509 = vmatprep.subr.bf16.mxu0 %v6358_v3  ;;  %v1199_v46 = vld [vmem:[%s1198_s16] sm:$0x1]  ;;  %s7810_s1 = sld [smem:[#allocation17_spill]]  ;;  %s7817_s16 = smov 16  }
 0x572   :  { %v1219_v47 = vrot.slane %v1199_v46, 7 }
 0x577   :  { %5498 = vmatmul.mubr.msk.bf16.vlgmr.msra.gmra.mrb[20].mxu0 %vm521_vm12, %v922_v56 }
 0x578   :  { %5513 = vmatprep.mubr.msk.bf16.mxu0 %vm6359_vm0, %v6358_v3 }
 0x626   :  { %v590_v57 = vpop.f32.mrb[8].mxu0 }
 0x627   :  { %v5463_v58 = vpop.f32.mrb[9].mxu0 }
 0x628   :  { %v593_v60 = vpop.f32.mrb[10].mxu0 }
 0x629   :  { %v5464_v61 = vpop.f32.mrb[11].mxu0 }
 0x63a   :  { %v715_v62 = vpop.f32.mrb[12].mxu0 }
 0x63b   :  { %v5475_v63 = vpop.f32.mrb[13].mxu0 }
 0x63c   :  { %v718_v0 = vpop.f32.mrb[14].mxu0 }
 0x63d   :  { %v6022_v5 = vpack.i.bf16 %v718_v0, %v715_v62  ;;  %v5476_v7 = vpop.f32.mrb[15].mxu0 }
 0x63f   :  { %6023 = vrot.lane.b32.xlu1 %v6022_v5, %s7762_s10  ;;  %s1195_s10 = scalar_lea.vmem %s6412_s25, %s1194_s9  ;;  %s7815_s9 = sld [smem:[#allocation20_spill]] }
 0x640   :  { %v1196_v49 = vld [vmem:[%s1195_s10] sm:$0x1]  ;;  %s1216_s10 = scalar_lea.vmem %s6412_s25, %s5134_s23  ;;  %s7807_s23 = sld [smem:[#allocation19_spill]] }
 0x641   :  { %v1239_v53 = vsel %vm370_vm2, %v1196_v49, %v1219_v47  ;;  %v1217_v0 = vld [vmem:[%s1216_s10] sm:$0x1]  ;;  %s7820_s10 = sld [smem:[#allocation16_spill]] }
 0x642   :  { %v840_v11 = vpop.f32.mrb[16].mxu0  ;;  %v1237_v5 = vrot.slane %v1217_v0, 1 }
 0x643   :  { %v5487_v14 = vpop.f32.mrb[17].mxu0 }
 0x644   :  { %v843_v16 = vpop.f32.mrb[18].mxu0 }
 0x645   :  { %v6027_v17 = vpack.i.bf16 %v843_v16, %v840_v11  ;;  %v5488_v18 = vpop.f32.mrb[19].mxu0 }
 0x647   :  { %6028 = vrot.lane.b32.xlu1 %v6027_v17, %s7760_s11  ;;  %s1201_s11 = scalar_lea.vmem %s6412_s25, %s5129_s0  ;;  %s1213_s0 = scalar_lea.vmem %s6412_s25, %s5133_s28 }
 0x648   :  { %v1202_v40 = vld [vmem:[%s1201_s11] sm:$0x1]  ;;  %s7808_s28 = sld [smem:[#allocation18_spill]]  ;;  %s7813_s11 = smov 40  }
 0x649   :  { %v1222_v52 = vrot.slane %v1202_v40, 6  ;;  %v1214_v61 = vld [vmem:[%s1213_s0] sm:$0x1]  ;;  %s7819_s0 = smov 24  }
 0x64a   :  { %v965_v19 = vpop.f32.mrb[20].mxu0  ;;  %v1234_v1 = vrot.slane %v1214_v61, 2 }
 0x64b   :  { %v5499_v20 = vpop.f32.mrb[21].mxu0  ;;  %v1240_v56 = vsel %vm372_vm3, %v1239_v53, %v1222_v52 }
 0x64c   :  { %v968_v21 = vpop.f32.mrb[22].mxu0 }
 0x64d   :  { %v6032_v23 = vpack.i.bf16 %v968_v21, %v965_v19  ;;  %v5500_v24 = vpop.f32.mrb[23].mxu0 }
 0x64e   :  { %v209_v24 = vld [vmem:[%s6452_s6] sm:$0xff] }
 0x64f   :  { %6033 = vrot.lane.b32.xlu0 %v6032_v23, %s7758_s15  ;;  %s5131_s15 = sld [smem:[#allocation6 + $0x4]] }
 0x655   :  { %s1207_s7 = scalar_lea.vmem %s6412_s25, %s5131_s15  ;;  %s7814_s15 = smov 48  }
 0x656   :  { %v1208_v54 = vld [vmem:[%s1207_s7] sm:$0x1]  ;;  %s7812_s7 = smov 64  }
 0x657   :  { %v1228_v58 = vrot.slane %v1208_v54, 4 }
 0x6b1   :  { %v6024_v26 = vpop.permute.xlu1 %6023 }
 0x6b2   :  { %v6026_v8 = vunpack.i.h.bf16 %v6024_v26  ;;  %v6025_v30 = vunpack.i.l.bf16 %v6024_v26  ;;  %v210_v26 = vld [vmem:[%s6452_s6 + $0x8] sm:$0xff] }
 0x6b4   :  { %v997_v34 = vsel %vm467_vm11, %v593_v60, %v6026_v8  ;;  %v996_v36 = vsel %vm467_vm11, %v590_v57, %v6025_v30  ;;  %v1211_v57 = vld [vmem:[%s1210_s24] sm:$0x1]  ;;  %v1241_v60 = vsel %vm374_vm4, %v1240_v56, %v1225_v55  ;;  %v211_v8 = vld [vmem:[%s6452_s6 + $0x10] sm:$0xff]  ;;  %v212_v30 = vld [vmem:[%s6452_s6 + $0x18] sm:$0xff]  ;;  %s7806_s6 = sld [smem:[#allocation15_spill]] }
 0x6b5   :  { %v1231_v62 = vrot.slane %v1211_v57, 3  ;;  %v1242_v63 = vsel %vm376_vm5, %v1241_v60, %v1228_v58  ;;  %v231_v56 = vld [vmem:[%s7807_s23] sm:$0xff]  ;;  %v232_v57 = vld [vmem:[%s7807_s23 + $0x8] sm:$0xff]  ;;  %s7818_s24 = sld [smem:[#allocation23_spill]] }
 0x6b7   :  { %v1243_v2 = vsel %vm378_vm6, %v1242_v63, %v1231_v62  ;;  %v6814_v62 = vpack.c.bf16 %v232_v57, %v231_v56  ;;  %v5135_v63 = vld [vmem:[%s7808_s28] ss:$0 sm:$0xff] }
 0x6b8   :  { %v1244_v7 = vsel %vm380_vm7, %v1243_v2, %v1234_v1  ;;  %v233_v2 = vld [vmem:[%s7807_s23 + $0x10] sm:$0xff] }
 0x6b9   :  { %v6029_v28 = vpop.permute.xlu1 %6028  ;;  %v6771_v16 = vsel %vm382_vm8, %v1244_v7, %v1237_v5  ;;  %v234_v5 = vld [vmem:[%s7807_s23 + $0x18] sm:$0xff]  ;;  %s7821_s23 = sld [smem:[#allocation22_spill]] }
 0x6ba   :  { %v6031_v31 = vunpack.i.h.bf16 %v6029_v28  ;;  %v6030_v32 = vunpack.i.l.bf16 %v6029_v28  ;;  %v1246_v21 = vmul.f32 %v6771_v16, %v6771_v16  ;;  %v6787_v28 = vpack.c.bf16 %v210_v26, %v209_v24  ;;  %v5124_v54 = vld [vmem:[%s7806_s6] ss:$0 sm:$0xff] }
 0x6bc   :  { %v1000_v42 = vsel %vm998_vm14, %v997_v34, %v6031_v31  ;;  %v999_v43 = vsel %vm998_vm14, %v996_v36, %v6030_v32  ;;  %v1247_v23 = vsel %vm393_vm9, %v1246_v21, 0.0  ;;  %5510 = vmatpush3.bf16.msra.mxu0 %v6787_v28  ;;  %v6793_v31 = vpack.c.bf16 %v212_v30, %v211_v8  ;;  %v215_v32 = vld [vmem:[%s6457_s12] sm:$0xff]  ;;  %v217_v34 = vld [vmem:[%s6457_s12 + $0x10] sm:$0xff] }
 0x6bd   :  { %5511 = vmatprep.subr.bf16.mxu0 %v6358_v3 }
 0x6c0   :  { %5512 = vmatpush3.bf16.msra.mxu0 %v6793_v31 }
 0x6c1   :  { %v6034_v33 = vpop.permute.xlu0 %6033  ;;  %5529 = vmatprep.subr.bf16.mxu0 %v6358_v3 }
 0x6c2   :  { %v6036_v37 = vunpack.i.h.bf16 %v6034_v33  ;;  %v6035_v39 = vunpack.i.l.bf16 %v6034_v33  ;;  %v216_v33 = vld [vmem:[%s6457_s12 + $0x8] sm:$0xff] }
 0x6c3   :  { %v6800_v36 = vpack.c.bf16 %v216_v33, %v215_v32 }
 0x6c4   :  { %v1003_v44 = vsel %vm1001_vm15, %v1000_v42, %v6036_v37  ;;  %v1002_v45 = vsel %vm1001_vm15, %v999_v43, %v6035_v39  ;;  %v218_v37 = vld [vmem:[%s6457_s12 + $0x18] sm:$0xff] }
 0x6c5   :  { %v1004_v38 = vpack.c.bf16 %v1003_v44, %v1002_v45  ;;  %v6804_v39 = vpack.c.bf16 %v218_v37, %v217_v34 }
 0x6c7   :  { %5506 = vmatmul.mubr.msk.bf16.vlgmr.msra.gmra.mrb[16].mxu1 %vm393_vm9, %v1004_v38 }
 0x6c8   :  { %5525 = vmatprep.mubr.msk.bf16.mxu1 %vm6359_vm0, %v6358_v3  ;;  %5518 = vmatpush3.bf16.msra.mxu1 %v6800_v36 }
 0x6c9   :  { %5519 = vmatprep.subr.bf16.mxu1 %v6358_v3 }
 0x6cc   :  { %5520 = vmatpush3.bf16.msra.mxu1 %v6804_v39 }
 0x6cd   :  { %5521 = vmatprep.subr.bf16.mxu1 %v6358_v3 }
 0x79a   :  { %v1042_v11 = vpop.f32.mrb[16].mxu1 }
 0x79b   :  { %v6768_v12 = vadd.f32 %v1042_v11, %v6585_v41  ;;  %v5507_v13 = vpop.f32.mrb[17].mxu1  ;;  %v6822_v11 = vpack.c.bf16 %v234_v5, %v233_v2 }
 0x79c   :  { %v1045_v14 = vpop.f32.mrb[18].mxu1 }
 0x79d   :  { %v6774_v17 = vadd.f32 %v1045_v14, %v6581_v35  ;;  %v5508_v18 = vpop.f32.mrb[19].mxu1  ;;  %v1051_v19 = vmul.f32 %v6768_v12, %v6768_v12  ;;  %v219_v14 = vld [vmem:[%s6457_s12 + $0x20] sm:$0xff] }
 0x79e   :  { %v220_v18 = vld [vmem:[%s6457_s12 + $0x28] sm:$0xff] }
 0x79f   :  { %v1053_v20 = vsel %vm393_vm9, %v1051_v19, 0.0  ;;  %v1052_v41 = vmul.f32 %v6774_v17, %v6774_v17  ;;  %v6834_v19 = vpack.c.bf16 %v220_v18, %v219_v14 }
 0x7a0   :  { %1054 = vadd.xlane.f32.xlu1 %v1053_v20  ;;  %v221_v20 = vld [vmem:[%s6457_s12 + $0x30] sm:$0xff] }
 0x7a1   :  { %v1056_v35 = vsel %vm397_vm10, %v1052_v41, 0.0  ;;  %5522 = vmatpush3.bf16.msra.mxu1 %v6834_v19  ;;  %v222_v41 = vld [vmem:[%s6457_s12 + $0x38] sm:$0xff]  ;;  %s7809_s12 = smov 72  }
 0x7a2   :  { %1057 = vadd.xlane.f32.xlu0 %v1056_v35  ;;  %5523 = vmatprep.subr.bf16.mxu1 %v6358_v3  ;;  %v6840_v21 = vpack.c.bf16 %v222_v41, %v221_v20 }
 0x7a5   :  { %5524 = vmatpush3.bf16.msra.mxu1 %v6840_v21 }
 0x7a6   :  { %1248 = vadd.xlane.f32.xlu0 %v1247_v23  ;;  %5543 = vmatprep.subr.bf16.mxu1 %v6358_v3 }
 0x82d   :  { %v1055_v42 = vpop.xlane.xlu1 %1054 }
 0x82e   :  { %v1059_v43 = vmul.f32 0.03125, %v1055_v42 }
 0x82f   :  { %v1058_v44 = vpop.xlane.xlu0 %1057 }
 0x830   :  { %v1061_v45 = vadd.f32 1e-06, %v1059_v43  ;;  %v1060_v38 = vmul.f32 0.03125, %v1058_v44 }
 0x832   :  { %6088 = vrsqrt.f32 %v1061_v45  ;;  %v1062_v46 = vadd.f32 1e-06, %v1060_v38 }
 0x833   :  { %v1249_v40 = vpop.xlane.xlu0 %1248 }
 0x834   :  { %6090 = vrsqrt.f32 %v1062_v46  ;;  %v1250_v47 = vmul.f32 0.03125, %v1249_v40 }
 0x836   :  { %v1251_v49 = vadd.f32 1e-06, %v1250_v47 }
 0x838   :  { %6092 = vrsqrt.f32 %v1251_v49 }
 0x83c   :  { %v6089_v50 = vpop.eup %6088 }
 0x83d   :  { %v1065_v52 = vmul.f32 %v6089_v50, %v6768_v12 }
 0x83e   :  { %v6091_v53 = vpop.eup %6090 }
 0x83f   :  { %v1066_v55 = vmul.f32 %v6091_v53, %v6774_v17  ;;  %v1073_v58 = vmul.f32 %v5124_v54, %v1065_v52 }
 0x841   :  { %v1074_v60 = vmul.f32 %v5124_v54, %v1066_v55 }
 0x842   :  { %v6093_v61 = vpop.eup %6092 }
 0x843   :  { %v1253_v0 = vmul.f32 %v6093_v61, %v6771_v16  ;;  %v1075_v1 = vpack.c.bf16 %v1074_v60, %v1073_v58  ;;  %v178_v60 = vld [vmem:[%s7810_s1] sm:$0xff] }
 0x845   :  { %5514 = vmatmul.mubr.msk.bf16.vlgmr.msra.gmra.mrb[24].mxu0 %vm393_vm9, %v1075_v1  ;;  %v1260_v7 = vmul.f32 %v5135_v63, %v1253_v0 }
 0x846   :  { %5530 = vmatpush3.bf16.msra.mxu0 %v6814_v62  ;;  %5533 = vmatprep.mubr.msk.bf16.mxu0 %vm6359_vm0, %v6358_v3 }
 0x847   :  { %5531 = vmatprep.subr.bf16.mxu0 %v6358_v3  ;;  %v1261_v13 = vpack.c.bf16 %v1260_v7, %v1260_v7  ;;  %v179_v7 = vld [vmem:[%s7810_s1 + $0x8] sm:$0xff] }
 0x84a   :  { %5532 = vmatpush3.bf16.msra.mxu0 %v6822_v11 }
 0x84b   :  { %5537 = vmatprep.subr.bf16.mxu0 %v6358_v3 }
 0x84d   :  { %5534 = vmatmul.mubr.msk.bf16.vlgmr.msra.gmra.mrb[28].mxu0 %vm393_vm9, %v1261_v13 }
 0x84e   :  { %5539 = vmatprep.mubr.msk.bf16.mxu0 %vm6359_vm0, %v6358_v3 }
 0x918   :  { %v1113_v35 = vpop.f32.mrb[24].mxu0 }
 0x919   :  { %v5515_v23 = vpop.f32.mrb[25].mxu0  ;;  %v1120_v26 = vmax.f32 %v1113_v35, 0.0 }
 0x91a   :  { %v1116_v24 = vpop.f32.mrb[26].mxu0  ;;  %v180_v23 = vld [vmem:[%s7810_s1 + $0x10] sm:$0xff] }
 0x91b   :  { %v1121_v8 = vmax.f32 %v1116_v24, 0.0  ;;  %v5516_v30 = vpop.f32.mrb[27].mxu0 }
 0x91d   :  { %v1122_v32 = vpack.c.bf16 %v1121_v8, %v1120_v26 }
 0x91f   :  { %5526 = vmatmul.mubr.msk.bf16.vlgmr.msra.gmra.mrb[20].mxu1 %vm7789_vm13, %v1122_v32 }
 0x920   :  { %v1299_v33 = vpop.f32.mrb[28].mxu0  ;;  %5545 = vmatprep.mubr.msk.bf16.mxu1 %vm6359_vm0, %v6358_v3 }
 0x921   :  { %v6847_v34 = vpack.c.bf16 %v1299_v33, %v1299_v33  ;;  %v5535_v37 = vpop.f32.mrb[29].mxu0 }
 0x922   :  { %v1302_v42 = vpop.f32.mrb[30].mxu0  ;;  %v181_v37 = vld [vmem:[%s7810_s1 + $0x18] sm:$0xff] }
 0x923   :  { %1417 = vrot.lane.b32.xlu0 %v6847_v34, %s7785_s13  ;;  %1307 = vrot.lane.b32.xlu1 %v6847_v34, %s7783_s18  ;;  %v5536_v43 = vpop.f32.mrb[31].mxu0 }
 0x927   :  { %1525 = vrot.lane.b32.xlu0 %v6847_v34, %s7781_s22  ;;  %1415 = vrot.lane.b32.xlu1 %v6847_v34, %s7779_s19 }
 0x92b   :  { %1635 = vrot.lane.b32.xlu0 %v6847_v34, %s7777_s26  ;;  %1527 = vrot.lane.b32.xlu1 %v6847_v34, %s7775_s29 }
 0x92f   :  { %1637 = vrot.lane.b32.xlu1 %v6847_v34, %s7809_s12 }
 0x995   :  { %v1308_v44 = vpop.permute.xlu1 %1307  ;;  %v1418_v38 = vpop.permute.xlu0 %1417 }
 0x996   :  { %v1313_v45 = vsel %vm467_vm11, %v1308_v44, 0  ;;  %v1423_v40 = vsel %vm467_vm11, %v1418_v38, 0 }
 0x997   :  { %5538 = vmatpush3.bf16.xpose.msra.mxu0 %v1313_v45 }
 0x998   :  { %5549 = vmatprep.subr.bf16.mxu0 %v6358_v3 }
 0x999   :  { %v1416_v46 = vpop.permute.xlu1 %1415  ;;  %v1526_v52 = vpop.permute.xlu0 %1525 }
 0x99d   :  { %v1528_v47 = vpop.permute.xlu1 %1527  ;;  %v1636_v54 = vpop.permute.xlu0 %1635 }
 0x99e   :  { %5540 = vmatmul.mubr.msk.bf16.vlgmr.msra.gmra.mrb[32].mxu0 %vm467_vm11, %v6847_v34  ;;  %v1533_v49 = vsel %vm467_vm11, %v1528_v47, 0 }
 0x99f   :  { %5550 = vmatpush3.bf16.xpose.msra.mxu0 %v1423_v40  ;;  %5551 = vmatprep.mubr.msk.bf16.mxu0 %vm6359_vm0, %v6358_v3 }
 0x9a0   :  { %5561 = vmatprep.subr.bf16.mxu0 %v6358_v3 }
 0x9a1   :  { %v1638_v50 = vpop.permute.xlu1 %1637 }
 0x9a2   :  { %v1643_v53 = vsel %vm467_vm11, %v1638_v50, 0 }
 0x9a6   :  { %5552 = vmatmul.mubr.msk.bf16.vlgmr.msra.gmra.mrb[36].mxu0 %vm467_vm11, %v1416_v46 }
 0x9a7   :  { %5562 = vmatpush3.bf16.xpose.msra.mxu0 %v1533_v49  ;;  %5563 = vmatprep.mubr.msk.bf16.mxu0 %vm6359_vm0, %v6358_v3 }
 0x9a8   :  { %5573 = vmatprep.subr.bf16.mxu0 %v6358_v3 }
 0x9ae   :  { %5564 = vmatmul.mubr.msk.bf16.vlgmr.msra.gmra.mrb[40].mxu0 %vm467_vm11, %v1526_v52 }
 0x9af   :  { %5574 = vmatpush3.bf16.xpose.msra.mxu0 %v1643_v53  ;;  %5575 = vmatprep.mubr.msk.bf16.mxu0 %vm6359_vm0, %v6358_v3 }
 0x9b0   :  { %5585 = vmatprep.subr.bf16.mxu0 %v6358_v3 }
 0x9b6   :  { %5576 = vmatmul.mubr.msk.bf16.vlgmr.msra.gmra.mrb[44].mxu0 %vm467_vm11, %v1636_v54 }
 0x9b7   :  { %5589 = vmatprep.mubr.msk.bf16.mxu0 %vm6359_vm0, %v6358_v3 }
 0x9f2   :  { %v6884_v55 = vpop.f32.mrb[20].mxu1 }
 0x9f3   :  { %v5527_v56 = vpop.f32.mrb[21].mxu1 }
 0x9f4   :  { %v6886_v57 = vpop.f32.mrb[22].mxu1 }
 0x9f5   :  { %v5528_v58 = vpop.f32.mrb[23].mxu1 }
 0xa71   :  { %v1349_v61 = vpop.f32.mrb[32].mxu0 }
 0xa72   :  { %v1350_v63 = vadd.f32 %v1349_v61, %v178_v60  ;;  %v5541_v0 = vpop.f32.mrb[33].mxu0 }
 0xa73   :  { %v1352_v1 = vpop.f32.mrb[34].mxu0 }
 0xa74   :  { %v5542_v2 = vpop.f32.mrb[35].mxu0  ;;  %v1355_v5 = vsel %vm467_vm11, %v1350_v63, -inf }
 0xa75   :  { %1356 = vmax.xlane.f32.xlu1 %v1355_v5 }
 0xa79   :  { %v1459_v13 = vpop.f32.mrb[36].mxu0 }
 0xa7a   :  { %v1460_v14 = vadd.f32 %v1459_v13, %v179_v7  ;;  %v5553_v18 = vpop.f32.mrb[37].mxu0 }
 0xa7b   :  { %v1462_v20 = vpop.f32.mrb[38].mxu0 }
 0xa7c   :  { %v5554_v41 = vpop.f32.mrb[39].mxu0  ;;  %v1465_v35 = vsel %vm467_vm11, %v1460_v14, -inf }
 0xa7d   :  { %1466 = vmax.xlane.f32.xlu0 %v1465_v35 }
 0xa81   :  { %v1569_v24 = vpop.f32.mrb[40].mxu0 }
 0xa82   :  { %v1570_v26 = vadd.f32 %v1569_v24, %v180_v23  ;;  %v5565_v8 = vpop.f32.mrb[41].mxu0 }
 0xa83   :  { %v1572_v30 = vpop.f32.mrb[42].mxu0 }
 0xa84   :  { %v5566_v32 = vpop.f32.mrb[43].mxu0  ;;  %v1575_v33 = vsel %vm467_vm11, %v1570_v26, -inf }
 0xa85   :  { %1576 = vmax.xlane.f32.xlu0 %v1575_v33 }
 0xa89   :  { %v1679_v42 = vpop.f32.mrb[44].mxu0 }
 0xa8a   :  { %v1680_v43 = vadd.f32 %v1679_v42, %v181_v37  ;;  %v5577_v44 = vpop.f32.mrb[45].mxu0 }
 0xa8b   :  { %v1682_v45 = vpop.f32.mrb[46].mxu0 }
 0xa8c   :  { %v5578_v38 = vpop.f32.mrb[47].mxu0  ;;  %v1685_v46 = vsel %vm467_vm11, %v1680_v43, -inf }
 0xa8d   :  { %1686 = vmax.xlane.f32.xlu1 %v1685_v46 }
 0xb02   :  { %v1357_v40 = vpop.xlane.xlu1 %1356 }
 0xb03   :  { %v1358_v47 = vsub.f32 %v1350_v63, %v1357_v40 }
 0xb05   :  { %v1359_v49 = vmul.f32 1.442695, %v1358_v47 }
 0xb07   :  { %6094 = vpow2.f32 %v1359_v49 }
 0xb0a   :  { %v1467_v50 = vpop.xlane.xlu0 %1466 }
 0xb0b   :  { %v1468_v52 = vsub.f32 %v1460_v14, %v1467_v50 }
 0xb0d   :  { %v1469_v53 = vmul.f32 1.442695, %v1468_v52 }
 0xb0f   :  { %6096 = vpow2.f32 %v1469_v53 }
 0xb11   :  { %v6095_v54 = vpop.eup %6094 }
 0xb12   :  { %v1577_v56 = vpop.xlane.xlu0 %1576  ;;  %v1361_v58 = vsel %vm467_vm11, %v6095_v54, 0.0 }
 0xb13   :  { %v1578_v60 = vsub.f32 %v1570_v26, %v1577_v56  ;;  %1362 = vadd.xlane.f32.xlu0 %v1361_v58 }
 0xb15   :  { %v1579_v61 = vmul.f32 1.442695, %v1578_v60 }
 0xb17   :  { %6098 = vpow2.f32 %v1579_v61 }
 0xb19   :  { %v6097_v0 = vpop.eup %6096 }
 0xb1a   :  { %v1471_v1 = vsel %vm467_vm11, %v6097_v0, 0.0  ;;  %v1687_v5 = vpop.xlane.xlu1 %1686 }
 0xb1b   :  { %1472 = vadd.xlane.f32.xlu1 %v1471_v1  ;;  %v1688_v7 = vsub.f32 %v1680_v43, %v1687_v5  ;;  %v238_v5 = vld [vmem:[%s7815_s9 + $0x8] sm:$0xff] }
 0xb1d   :  { %v1689_v13 = vmul.f32 1.442695, %v1688_v7 }
 0xb1f   :  { %6100 = vpow2.f32 %v1689_v13  ;;  %v239_v13 = vld [vmem:[%s7815_s9 + $0x10] sm:$0xff] }
 0xb21   :  { %v6099_v2 = vpop.eup %6098 }
 0xb22   :  { %v1581_v63 = vsel %vm467_vm11, %v6099_v2, 0.0 }
 0xb23   :  { %1582 = vadd.xlane.f32.xlu0 %v1581_v63  ;;  %v237_v63 = vld [vmem:[%s7815_s9] sm:$0xff] }
 0xb24   :  { %v6931_v7 = vpack.c.bf16 %v238_v5, %v237_v63  ;;  %v5127_v63 = vld [vmem:[%s7820_s10] ss:$0 sm:$0xff] }
 0xb26   :  { %5586 = vmatpush3.bf16.msra.mxu0 %v6931_v7 }
 0xb27   :  { %5587 = vmatprep.subr.bf16.mxu0 %v6358_v3 }
 0xb29   :  { %v6101_v14 = vpop.eup %6100 }
 0xb2a   :  { %v1691_v18 = vsel %vm467_vm11, %v6101_v14, 0.0 }
 0xb2c   :  { %1477 = vrot.lane.b32.xlu1 %v6847_v34, %s7811_s2 }
 0xb39   :  { %1367 = vrot.lane.b32.xlu0 %v6847_v34, %s7812_s7 }
 0xb3d   :  { %1697 = vrot.lane.b32.xlu0 %v6847_v34, %s7813_s11 }
 0xb50   :  { %1692 = vadd.xlane.f32.xlu1 %v1691_v18 }
 0xb61   :  { %1587 = vrot.lane.b32.xlu1 %v6847_v34, %s7814_s15 }
 0xba0   :  { %v1363_v20 = vpop.xlane.xlu0 %1362 }
 0xba1   :  { %6102 = vrcp.f32 %v1363_v20 }
 0xba8   :  { %v1473_v41 = vpop.xlane.xlu1 %1472 }
 0xba9   :  { %6104 = vrcp.f32 %v1473_v41 }
 0xbab   :  { %v6103_v35 = vpop.eup %6102 }
 0xbac   :  { %v1365_v24 = vmul.f32 %v6103_v35, %v6095_v54  ;;  %v1478_v30 = vpop.permute.xlu1 %1477 }
 0xbad   :  { %v1483_v37 = vsel %vm376_vm5, %v1478_v30, 0 }
 0xbae   :  { %v1366_v32 = vpack.c.bf16 %v1365_v24, %v1365_v24 }
 0xbb0   :  { %v1583_v23 = vpop.xlane.xlu0 %1582 }
 0xbb1   :  { %6106 = vrcp.f32 %v1583_v23 }
 0xbb3   :  { %v6105_v33 = vpop.eup %6104 }
 0xbb4   :  { %v1368_v26 = vpop.permute.xlu0 %1367  ;;  %v1475_v34 = vmul.f32 %v6105_v33, %v6097_v0 }
 0xbb5   :  { %v1373_v8 = vsel %vm376_vm5, %v1368_v26, 0 }
 0xbb6   :  { %5544 = vmatpush3.bf16.msra.mxu1 %v1373_v8  ;;  %v1476_v42 = vpack.c.bf16 %v1475_v34, %v1475_v34  ;;  %v1169_v34 = vadd.f32 %v6886_v57, %v6774_v17  ;;  %v252_v17 = vld [vmem:[%s7818_s24 + $0x18] sm:$0xff] }
 0xbb7   :  { %5555 = vmatprep.subr.bf16.mxu1 %v6358_v3 }
 0xbb8   :  { %v1698_v40 = vpop.permute.xlu0 %1697 }
 0xbb9   :  { %5546 = vmatmul.mubr.msk.bf16.vlgmr.msra.gmra.mrb[24].mxu1 %vm467_vm11, %v1366_v32  ;;  %v1703_v49 = vsel %vm376_vm5, %v1698_v40, 0  ;;  %v1168_v32 = vadd.f32 %v6884_v55, %v6768_v12 }
 0xbba   :  { %5556 = vmatpush3.bf16.msra.mxu1 %v1483_v37  ;;  %5557 = vmatprep.mubr.msk.bf16.mxu1 %vm6359_vm0, %v6358_v3 }
 0xbbb   :  { %5567 = vmatprep.subr.bf16.mxu1 %v6358_v3  ;;  %v6107_v43 = vpop.eup %6106  ;;  %v1170_v33 = vmul.f32 %v1168_v32, %v1168_v32 }
 0xbbc   :  { %v1585_v45 = vmul.f32 %v6107_v43, %v6099_v2 }
 0xbbd   :  { %v1172_v37 = vsel %vm393_vm9, %v1170_v33, 0.0  ;;  %v244_v33 = vld [vmem:[%s7821_s23 + $0x8] sm:$0xff] }
 0xbbe   :  { %v1586_v47 = vpack.c.bf16 %v1585_v45, %v1585_v45 }
 0xbc1   :  { %5558 = vmatmul.mubr.msk.bf16.vlgmr.msra.gmra.mrb[28].mxu1 %vm467_vm11, %v1476_v42  ;;  %v1171_v42 = vmul.f32 %v1169_v34, %v1169_v34 }
 0xbc2   :  { %5569 = vmatprep.mubr.msk.bf16.mxu1 %vm6359_vm0, %v6358_v3 }
 0xbc3   :  { %v1175_v43 = vsel %vm397_vm10, %v1171_v42, 0.0 }
 0xbdd   :  { %v1693_v44 = vpop.xlane.xlu1 %1692 }
 0xbde   :  { %6108 = vrcp.f32 %v1693_v44 }
 0xbe1   :  { %v1588_v38 = vpop.permute.xlu1 %1587 }
 0xbe2   :  { %v1593_v46 = vsel %vm376_vm5, %v1588_v38, 0  ;;  %v249_v38 = vld [vmem:[%s7818_s24] sm:$0xff] }
 0xbe3   :  { %5568 = vmatpush3.bf16.msra.mxu1 %v1593_v46  ;;  %v250_v46 = vld [vmem:[%s7818_s24 + $0x8] sm:$0xff] }
 0xbe4   :  { %5579 = vmatprep.subr.bf16.mxu1 %v6358_v3 }
 0xbe6   :  { %5570 = vmatmul.mubr.msk.bf16.vlgmr.msra.gmra.mrb[32].mxu1 %vm467_vm11, %v1586_v47 }
 0xbe7   :  { %5580 = vmatpush3.bf16.msra.mxu1 %v1703_v49  ;;  %5581 = vmatprep.mubr.msk.bf16.mxu1 %vm6359_vm0, %v6358_v3  ;;  %v6954_v49 = vpack.c.bf16 %v250_v46, %v249_v38 }
 0xbe8   :  { %v6109_v50 = vpop.eup %6108  ;;  %5593 = vmatprep.subr.bf16.mxu1 %v6358_v3 }
 0xbe9   :  { %v1695_v52 = vmul.f32 %v6109_v50, %v6101_v14  ;;  %v240_v14 = vld [vmem:[%s7815_s9 + $0x18] sm:$0xff]  ;;  %s7822_s9 = sld [smem:[#allocation21_spill]] }
 0xbea   :  { %v6937_v18 = vpack.c.bf16 %v240_v14, %v239_v13 }
 0xbeb   :  { %v1696_v53 = vpack.c.bf16 %v1695_v52, %v1695_v52  ;;  %v251_v52 = vld [vmem:[%s7818_s24 + $0x10] sm:$0xff]  ;;  %s7823_s24 = sld [smem:[#allocation24_spill]] }
 0xbec   :  { %5588 = vmatpush3.bf16.msra.mxu0 %v6937_v18  ;;  %v6960_v57 = vpack.c.bf16 %v252_v17, %v251_v52 }
 0xbed   :  { %5601 = vmatprep.subr.bf16.mxu0 %v6358_v3 }
 0xbee   :  { %5582 = vmatmul.mubr.msk.bf16.vlgmr.msra.gmra.mrb[36].mxu1 %vm467_vm11, %v1696_v53 }
 0xbef   :  { %5597 = vmatprep.mubr.msk.bf16.mxu1 %vm6359_vm0, %v6358_v3 }
 0xc8c   :  { %v1409_v54 = vpop.f32.mrb[24].mxu1 }
 0xc8d   :  { %v5547_v56 = vpop.f32.mrb[25].mxu1 }
 0xc8e   :  { %v1412_v58 = vpop.f32.mrb[26].mxu1 }
 0xc8f   :  { %v5548_v60 = vpop.f32.mrb[27].mxu1 }
 0xc94   :  { %v1519_v61 = vpop.f32.mrb[28].mxu1 }
 0xc95   :  { %1746 = vrot.lane.b32.xlu1 %v1519_v61, %s7816_s5  ;;  %v5559_v0 = vpop.f32.mrb[29].mxu1 }
 0xc96   :  { %v1522_v1 = vpop.f32.mrb[30].mxu1 }
 0xc97   :  { %v5560_v2 = vpop.f32.mrb[31].mxu1 }
 0xcb9   :  { %v1629_v20 = vpop.f32.mrb[32].mxu1 }
 0xcba   :  { %1750 = vrot.lane.b32.xlu0 %v1629_v20, %s7817_s16  ;;  %v5571_v41 = vpop.f32.mrb[33].mxu1 }
 0xcbb   :  { %v1632_v35 = vpop.f32.mrb[34].mxu1 }
 0xcbc   :  { %v5572_v23 = vpop.f32.mrb[35].mxu1 }
 0xcc1   :  { %v1739_v24 = vpop.f32.mrb[36].mxu1 }
 0xcc2   :  { %1754 = vrot.lane.b32.xlu1 %v1739_v24, %s7819_s0  ;;  %v5583_v26 = vpop.f32.mrb[37].mxu1 }
 0xcc3   :  { %v1742_v8 = vpop.f32.mrb[38].mxu1 }
 0xcc4   :  { %v5584_v30 = vpop.f32.mrb[39].mxu1 }
 0xcd9   :  { %1173 = vadd.xlane.f32.xlu0 %v1172_v37 }
 0xce6   :  { %1176 = vadd.xlane.f32.xlu1 %v1175_v43 }
 0xd07   :  { %v1747_v44 = vpop.permute.xlu1 %1746 }
 0xd08   :  { %v1757_v40 = vsel %vm467_vm11, %v1409_v54, %v1747_v44 }
 0xd2c   :  { %v1751_v45 = vpop.permute.xlu0 %1750 }
 0xd2d   :  { %v1758_v12 = vsel %vm998_vm14, %v1757_v40, %v1751_v45 }
 0xd34   :  { %v1755_v55 = vpop.permute.xlu1 %1754 }
 0xd35   :  { %v1759_v47 = vsel %vm1001_vm15, %v1758_v12, %v1755_v55 }
 0xd36   :  { %v1760_v50 = vpack.c.bf16 %v1759_v47, %v1759_v47 }
 0xd38   :  { %5590 = vmatmul.mubr.msk.bf16.vlgmr.msra.gmra.mrb[48].mxu0 %vm393_vm9, %v1760_v50  ;;  %v5146_v50 = vld [vmem:[%s7822_s9] ss:$0 sm:$0xff] }
 0xd39   :  { %5602 = vmatpush3.bf16.msra.mxu0 %v6954_v49  ;;  %5605 = vmatprep.mubr.msk.bf16.mxu0 %vm6359_vm0, %v6358_v3 }
 0xd3a   :  { %5603 = vmatprep.subr.bf16.mxu0 %v6358_v3 }
 0xd3d   :  { %5604 = vmatpush3.bf16.msra.mxu0 %v6960_v57 }
 0xd3e   :  { %5615 = vmatprep.subr.bf16.mxu0 %v6358_v3 }
 0xd66   :  { %v1174_v53 = vpop.xlane.xlu0 %1173 }
 0xd67   :  { %v1178_v54 = vmul.f32 0.03125, %v1174_v53 }
 0xd69   :  { %v1180_v56 = vadd.f32 1e-06, %v1178_v54 }
 0xd6b   :  { %6110 = vrsqrt.f32 %v1180_v56 }
 0xd73   :  { %v1177_v58 = vpop.xlane.xlu1 %1176 }
 0xd74   :  { %v1179_v60 = vmul.f32 0.03125, %v1177_v58 }
 0xd75   :  { %v6111_v0 = vpop.eup %6110 }
 0xd76   :  { %v1181_v61 = vadd.f32 1e-06, %v1179_v60  ;;  %v1184_v1 = vmul.f32 %v6111_v0, %v1168_v32  ;;  %v243_v32 = vld [vmem:[%s7821_s23] sm:$0xff] }
 0xd77   :  { %v6979_v37 = vpack.c.bf16 %v244_v33, %v243_v32 }
 0xd78   :  { %6112 = vrsqrt.f32 %v1181_v61  ;;  %v1192_v13 = vmul.f32 %v5127_v63, %v1184_v1 }
 0xd79   :  { %5594 = vmatpush3.bf16.msra.mxu1 %v6979_v37 }
 0xd7a   :  { %5595 = vmatprep.subr.bf16.mxu1 %v6358_v3 }
 0xd82   :  { %v6113_v2 = vpop.eup %6112 }
 0xd83   :  { %v1185_v5 = vmul.f32 %v6113_v2, %v1169_v34  ;;  %v245_v34 = vld [vmem:[%s7821_s23 + $0x10] sm:$0xff] }
 0xd85   :  { %v1193_v14 = vmul.f32 %v5127_v63, %v1185_v5 }
 0xd87   :  { %v1864_v20 = vpack.c.bf16 %v1193_v14, %v1192_v13 }
 0xd89   :  { %5606 = vmatmul.mubr.msk.bf16.vlgmr.msra.gmra.mrb[52].mxu0 %vm393_vm9, %v1864_v20 }
 0xd8a   :  { %5617 = vmatprep.mubr.msk.bf16.mxu0 %vm6359_vm0, %v6358_v3 }
 0xe0b   :  { %v1798_v41 = vpop.f32.mrb[48].mxu0 }
 0xe0c   :  { %v6972_v35 = vadd.f32 %v1798_v41, %v6771_v16  ;;  %v5591_v23 = vpop.f32.mrb[49].mxu0  ;;  %v246_v16 = vld [vmem:[%s7821_s23 + $0x18] sm:$0xff]  ;;  %s7824_s23 = sld [smem:[#allocation26_spill]] }
 0xe0d   :  { %v1801_v24 = vpop.f32.mrb[50].mxu0  ;;  %v6985_v42 = vpack.c.bf16 %v246_v16, %v245_v34 }
 0xe0e   :  { %v5592_v26 = vpop.f32.mrb[51].mxu0  ;;  %v1805_v8 = vmul.f32 %v6972_v35, %v6972_v35 }
 0xe0f   :  { %5596 = vmatpush3.bf16.msra.mxu1 %v6985_v42 }
 0xe10   :  { %v1806_v30 = vsel %vm393_vm9, %v1805_v8, 0.0  ;;  %5609 = vmatprep.subr.bf16.mxu1 %v6358_v3 }
 0xe11   :  { %1807 = vadd.xlane.f32.xlu0 %v1806_v30 }
 0xe5c   :  { %v1902_v43 = vpop.f32.mrb[52].mxu0 }
 0xe5d   :  { %v5607_v44 = vpop.f32.mrb[53].mxu0 }
 0xe5e   :  { %v1905_v45 = vpop.f32.mrb[54].mxu0 }
 0xe5f   :  { %v6989_v38 = vpack.c.bf16 %v1905_v45, %v1902_v43  ;;  %v5608_v46 = vpop.f32.mrb[55].mxu0 }
 0xe61   :  { %2021 = vrot.lane.b32.xlu0 %v6989_v38, %s7779_s19  ;;  %v1915_v54 = vsel %vm467_vm11, %v6989_v38, 0 }
 0xe9e   :  { %v1808_v40 = vpop.xlane.xlu0 %1807 }
 0xe9f   :  { %v1809_v12 = vmul.f32 0.03125, %v1808_v40 }
 0xea1   :  { %v1810_v55 = vadd.f32 1e-06, %v1809_v12 }
 0xea3   :  { %6114 = vrsqrt.f32 %v1810_v55 }
 0xead   :  { %v6115_v47 = vpop.eup %6114 }
 0xeae   :  { %v1812_v52 = vmul.f32 %v6115_v47, %v6972_v35 }
 0xeb0   :  { %v1819_v17 = vmul.f32 %v5146_v50, %v1812_v52 }
 0xeb2   :  { %v1820_v53 = vpack.c.bf16 %v1819_v17, %v1819_v17 }
 0xeb4   :  { %5598 = vmatmul.mubr.msk.bf16.vlgmr.msra.gmra.mrb[40].mxu1 %vm393_vm9, %v1820_v53 }
 0xeb5   :  { %5610 = vmatpush3.bf16.xpose.msra.mxu1 %v1915_v54  ;;  %5611 = vmatprep.mubr.msk.bf16.mxu1 %vm6359_vm0, %v6358_v3 }
 0xeb6   :  { %5621 = vmatprep.subr.bf16.mxu1 %v6358_v3 }
 0xed3   :  { %v2022_v58 = vpop.permute.xlu0 %2021 }
 0xed4   :  { %v2027_v2 = vsel %vm467_vm11, %v2022_v58, 0 }
 0xf87   :  { %v1858_v56 = vpop.f32.mrb[40].mxu1 }
 0xf88   :  { %v1909_v60 = vpack.c.bf16 %v1858_v56, %v1858_v56  ;;  %v5599_v61 = vpop.f32.mrb[41].mxu1 }
 0xf89   :  { %v1861_v0 = vpop.f32.mrb[42].mxu1 }
 0xf8a   :  { %2019 = vrot.lane.b32.xlu1 %v1909_v60, %s7779_s19  ;;  %v5600_v1 = vpop.f32.mrb[43].mxu1  ;;  %2129 = vrot.lane.b32.xlu0 %v1909_v60, %s7781_s22  ;;  %s5184_s19 = sld [smem:[#allocation2 + $0xd]] }
 0xf8b   :  { %5612 = vmatmul.mubr.msk.bf16.vlgmr.msra.gmra.mrb[44].mxu1 %vm467_vm11, %v1909_v60 }
 0xf8c   :  { %5622 = vmatpush3.bf16.xpose.msra.mxu1 %v2027_v2  ;;  %5623 = vmatprep.mubr.msk.bf16.mxu1 %vm6359_vm0, %v6358_v3 }
 0xf8d   :  { %5633 = vmatprep.subr.bf16.mxu1 %v6358_v3 }
 0xf8e   :  { %2131 = vrot.lane.b32.xlu1 %v6989_v38, %s7781_s22  ;;  %2239 = vrot.lane.b32.xlu0 %v1909_v60, %s7777_s26  ;;  %s5185_s22 = sld [smem:[#allocation2 + $0xe]] }
 0xf90   :  { %s2741_s10 = scalar_lea.vmem %s6412_s25, %s5184_s19  ;;  %s7829_s19 = smov 120  }
 0xf92   :  { %2241 = vrot.lane.b32.xlu1 %v6989_v38, %s7777_s26  ;;  %s5183_s26 = sld [smem:[#allocation2 + $0xc]] }
 0xf98   :  { %s2738_s9 = scalar_lea.vmem %s6412_s25, %s5183_s26 }
 0xffc   :  { %v2020_v63 = vpop.permute.xlu1 %2019  ;;  %v2130_v20 = vpop.permute.xlu0 %2129 }
 0xffd   :  { %5624 = vmatmul.mubr.msk.bf16.vlgmr.msra.gmra.mrb[48].mxu1 %vm467_vm11, %v2020_v63 }
 0xffe   :  { %5635 = vmatprep.mubr.msk.bf16.mxu1 %vm6359_vm0, %v6358_v3 }
0x1000   :  { %v2132_v5 = vpop.permute.xlu1 %2131  ;;  %v2240_v23 = vpop.permute.xlu0 %2239 }
0x1001   :  { %v2137_v13 = vsel %vm467_vm11, %v2132_v5, 0 }
0x1002   :  { %5634 = vmatpush3.bf16.xpose.msra.mxu1 %v2137_v13 }
0x1003   :  { %5645 = vmatprep.subr.bf16.mxu1 %v6358_v3 }
0x1004   :  { %v2242_v14 = vpop.permute.xlu1 %2241 }
0x1005   :  { %v2247_v41 = vsel %vm467_vm11, %v2242_v14, 0 }
0x1009   :  { %5636 = vmatmul.mubr.msk.bf16.vlgmr.msra.gmra.mrb[52].mxu1 %vm467_vm11, %v2130_v20 }
0x100a   :  { %5646 = vmatpush3.bf16.xpose.msra.mxu1 %v2247_v41  ;;  %5647 = vmatprep.mubr.msk.bf16.mxu1 %vm6359_vm0, %v6358_v3 }
0x100b   :  { %5657 = vmatprep.subr.bf16.mxu1 %v6358_v3 }
0x1011   :  { %5648 = vmatmul.mubr.msk.bf16.vlgmr.msra.gmra.mrb[56].mxu1 %vm467_vm11, %v2240_v23 }
0x1012   :  { %5661 = vmatprep.mubr.msk.bf16.mxu1 %vm6359_vm0, %v6358_v3 }
0x105e   :  { %v1951_v24 = vpop.f32.mrb[44].mxu1 }
0x105f   :  { %v1952_v26 = vadd.f32 %v1951_v24, %v6656_v29  ;;  %v5613_v8 = vpop.f32.mrb[45].mxu1 }
0x1060   :  { %v1954_v30 = vpop.f32.mrb[46].mxu1 }
0x1061   :  { %v5614_v32 = vpop.f32.mrb[47].mxu1  ;;  %v1957_v33 = vsel %vm521_vm12, %v1952_v26, -inf }
0x1062   :  { %1958 = vmax.xlane.f32.xlu1 %v1957_v33 }
0x10d0   :  { %v2063_v34 = vpop.f32.mrb[48].mxu1 }
0x10d1   :  { %v2064_v16 = vadd.f32 %v2063_v34, %v6656_v29  ;;  %v5625_v43 = vpop.f32.mrb[49].mxu1 }
0x10d2   :  { %v2066_v44 = vpop.f32.mrb[50].mxu1 }
0x10d3   :  { %v5626_v45 = vpop.f32.mrb[51].mxu1  ;;  %v2069_v46 = vsel %vm521_vm12, %v2064_v16, -inf }
0x10d4   :  { %2070 = vmax.xlane.f32.xlu0 %v2069_v46 }
0x10dc   :  { %v2173_v40 = vpop.f32.mrb[52].mxu1 }
0x10dd   :  { %v2174_v12 = vadd.f32 %v2173_v40, %v6656_v29  ;;  %v5637_v55 = vpop.f32.mrb[53].mxu1 }
0x10de   :  { %v2176_v47 = vpop.f32.mrb[54].mxu1 }
0x10df   :  { %v5638_v50 = vpop.f32.mrb[55].mxu1  ;;  %v2179_v52 = vsel %vm521_vm12, %v2174_v12, -inf }
0x10e0   :  { %2180 = vmax.xlane.f32.xlu0 %v2179_v52 }
0x10e4   :  { %v2283_v17 = vpop.f32.mrb[56].mxu1 }
0x10e5   :  { %v2284_v53 = vadd.f32 %v2283_v17, %v6656_v29  ;;  %v5649_v54 = vpop.f32.mrb[57].mxu1 }
0x10e6   :  { %v2286_v56 = vpop.f32.mrb[58].mxu1 }
0x10e7   :  { %v5650_v58 = vpop.f32.mrb[59].mxu1  ;;  %v2289_v60 = vsel %vm521_vm12, %v2284_v53, -inf }
0x10e8   :  { %2290 = vmax.xlane.f32.xlu1 %v2289_v60 }
0x10ef   :  { %v1959_v61 = vpop.xlane.xlu1 %1958 }
0x10f0   :  { %v1960_v0 = vsub.f32 %v1952_v26, %v1959_v61 }
0x10f2   :  { %v1961_v1 = vmul.f32 1.442695, %v1960_v0 }
0x10f4   :  { %6116 = vpow2.f32 %v1961_v1 }
0x10f9   :  { %1970 = vrot.lane.b32.xlu1 %v6989_v38, %s7783_s18 }
0x10fe   :  { %v6117_v2 = vpop.eup %6116 }
0x10ff   :  { %v1963_v63 = vsel %vm521_vm12, %v6117_v2, 0.0 }
0x1100   :  { %1964 = vadd.xlane.f32.xlu0 %v1963_v63 }
0x1161   :  { %v2071_v5 = vpop.xlane.xlu0 %2070 }
0x1162   :  { %v2072_v13 = vsub.f32 %v2064_v16, %v2071_v5 }
0x1164   :  { %v2073_v29 = vmul.f32 1.442695, %v2072_v13 }
0x1166   :  { %6118 = vpow2.f32 %v2073_v29 }
0x116d   :  { %v2181_v14 = vpop.xlane.xlu0 %2180 }
0x116e   :  { %v2182_v20 = vsub.f32 %v2174_v12, %v2181_v14 }
0x1170   :  { %v6119_v41 = vpop.eup %6118  ;;  %v2183_v23 = vmul.f32 1.442695, %v2182_v20 }
0x1171   :  { %v2075_v24 = vsel %vm521_vm12, %v6119_v41, 0.0 }
0x1172   :  { %6120 = vpow2.f32 %v2183_v23  ;;  %2076 = vadd.xlane.f32.xlu1 %v2075_v24  ;;  %v255_v23 = vld [vmem:[%s7823_s24] sm:$0xff]  ;;  %v256_v24 = vld [vmem:[%s7823_s24 + $0x8] sm:$0xff] }
0x1175   :  { %v2291_v26 = vpop.xlane.xlu1 %2290 }
0x1176   :  { %v2292_v8 = vsub.f32 %v2284_v53, %v2291_v26  ;;  %v7068_v26 = vpack.c.bf16 %v256_v24, %v255_v23  ;;  %v267_v23 = vld [vmem:[%s6517_s30] sm:$0xff]  ;;  %v268_v24 = vld [vmem:[%s6517_s30 + $0x8] sm:$0xff] }
0x1178   :  { %v2293_v30 = vmul.f32 1.442695, %v2292_v8  ;;  %5658 = vmatpush3.bf16.msra.mxu1 %v7068_v26 }
0x1179   :  { %v1971_v32 = vpop.permute.xlu1 %1970  ;;  %5659 = vmatprep.subr.bf16.mxu1 %v6358_v3 }
0x117a   :  { %6122 = vpow2.f32 %v2293_v30  ;;  %v1976_v33 = vand.u32 %v1971_v32, %v6691_v59 }
0x117c   :  { %v6121_v34 = vpop.eup %6120  ;;  %5616 = vmatpush3.bf16.msra.mxu0 %v1976_v33 }
0x117d   :  { %v2185_v16 = vsel %vm521_vm12, %v6121_v34, 0.0  ;;  %5627 = vmatprep.subr.bf16.mxu0 %v6358_v3 }
0x117e   :  { %2186 = vadd.xlane.f32.xlu0 %v2185_v16  ;;  %v258_v16 = vld [vmem:[%s7823_s24 + $0x18] sm:$0xff] }
0x1183   :  { %2191 = vrot.lane.b32.xlu1 %v6989_v38, %s7775_s29  ;;  %s5182_s29 = sld [smem:[#allocation2 + $0xb]] }
0x1184   :  { %v6123_v43 = vpop.eup %6122 }
0x1185   :  { %v2295_v44 = vsel %vm521_vm12, %v6123_v43, 0.0 }
0x1186   :  { %2296 = vadd.xlane.f32.xlu0 %v2295_v44 }
0x1187   :  { %2301 = vrot.lane.b32.xlu1 %v6989_v38, %s7809_s12 }
0x118d   :  { %v1965_v45 = vpop.xlane.xlu0 %1964 }
0x118e   :  { %6124 = vrcp.f32 %v1965_v45 }
0x1198   :  { %v6125_v46 = vpop.eup %6124 }
0x1199   :  { %v1967_v40 = vmul.f32 %v6125_v46, %v6117_v2 }
0x119b   :  { %v1968_v12 = vpack.c.bf16 %v1967_v40, %v1967_v40 }
0x119c   :  { %2081 = vrot.lane.b32.xlu0 %v6989_v38, %s7785_s13  ;;  %s5186_s13 = sld [smem:[#allocation2 + $0xf]] }
0x119d   :  { %5618 = vmatmul.mubr.msk.bf16.vlgmr.msra.gmra.mrb[56].mxu0 %vm521_vm12, %v1968_v12 }
0x119e   :  { %5629 = vmatprep.mubr.msk.bf16.mxu0 %vm6359_vm0, %v6358_v3 }
0x11ff   :  { %v2077_v55 = vpop.xlane.xlu1 %2076 }
0x1200   :  { %6126 = vrcp.f32 %v2077_v55 }
0x1203   :  { %v2192_v56 = vpop.permute.xlu1 %2191 }
0x1204   :  { %v2197_v60 = vand.u32 %v2192_v56, %v6691_v59 }
0x1207   :  { %v2302_v0 = vpop.permute.xlu1 %2301 }
0x1208   :  { %v2307_v63 = vand.u32 %v2302_v0, %v6691_v59 }
0x120a   :  { %v6127_v52 = vpop.eup %6126 }
0x120b   :  { %v2187_v47 = vpop.xlane.xlu0 %2186  ;;  %v2079_v53 = vmul.f32 %v6127_v52, %v6119_v41 }
0x120c   :  { %6128 = vrcp.f32 %v2187_v47 }
0x120d   :  { %v2080_v58 = vpack.c.bf16 %v2079_v53, %v2079_v53 }
0x1213   :  { %v2297_v50 = vpop.xlane.xlu0 %2296 }
0x1214   :  { %6130 = vrcp.f32 %v2297_v50 }
0x1216   :  { %v6129_v38 = vpop.eup %6128 }
0x1217   :  { %v2082_v17 = vpop.permute.xlu0 %2081  ;;  %v2189_v61 = vmul.f32 %v6129_v38, %v6121_v34  ;;  %v257_v34 = vld [vmem:[%s7823_s24 + $0x10] sm:$0xff]  ;;  %s7825_s24 = sld [smem:[#allocation25_spill]] }
0x1218   :  { %v2087_v54 = vand.u32 %v2082_v17, %v6691_v59 }
0x1219   :  { %v2190_v1 = vpack.c.bf16 %v2189_v61, %v2189_v61 }
0x121a   :  { %5628 = vmatpush3.bf16.msra.mxu0 %v2087_v54 }
0x121b   :  { %5639 = vmatprep.subr.bf16.mxu0 %v6358_v3 }
0x121d   :  { %5630 = vmatmul.mubr.msk.bf16.vlgmr.msra.gmra.mrb[60].mxu0 %vm521_vm12, %v2080_v58 }
0x121e   :  { %5640 = vmatpush3.bf16.msra.mxu0 %v2197_v60  ;;  %5641 = vmatprep.mubr.msk.bf16.mxu0 %vm6359_vm0, %v6358_v3  ;;  %v6131_v2 = vpop.eup %6130 }
0x121f   :  { %5651 = vmatprep.subr.bf16.mxu0 %v6358_v3  ;;  %v2299_v5 = vmul.f32 %v6131_v2, %v6123_v43  ;;  %v7075_v43 = vpack.c.bf16 %v258_v16, %v257_v34  ;;  %v271_v34 = vld [vmem:[%s6517_s30 + $0x20] sm:$0xff]  ;;  %v272_v16 = vld [vmem:[%s6517_s30 + $0x28] sm:$0xff] }
0x1221   :  { %v2300_v13 = vpack.c.bf16 %v2299_v5, %v2299_v5  ;;  %5660 = vmatpush3.bf16.msra.mxu1 %v7075_v43 }
0x1222   :  { %5673 = vmatprep.subr.bf16.mxu1 %v6358_v3 }
0x1225   :  { %5642 = vmatmul.mubr.msk.bf16.vlgmr.msra.gmra.mrb[64].mxu0 %vm521_vm12, %v2190_v1 }
0x1226   :  { %5652 = vmatpush3.bf16.msra.mxu0 %v2307_v63  ;;  %5653 = vmatprep.mubr.msk.bf16.mxu0 %vm6359_vm0, %v6358_v3 }
0x1227   :  { %5665 = vmatprep.subr.bf16.mxu0 %v6358_v3 }
0x122d   :  { %5654 = vmatmul.mubr.msk.bf16.vlgmr.msra.gmra.mrb[68].mxu0 %vm521_vm12, %v2300_v13  ;;  %v261_v13 = vld [vmem:[%s7824_s23] sm:$0xff] }
0x122e   :  { %5669 = vmatprep.mubr.msk.bf16.mxu0 %vm6359_vm0, %v6358_v3 }
0x1270   :  { %v2012_v29 = vpop.f32.mrb[56].mxu0 }
0x1271   :  { %v5619_v14 = vpop.f32.mrb[57].mxu0 }
0x1272   :  { %v2015_v20 = vpop.f32.mrb[58].mxu0 }
0x1273   :  { %v5620_v41 = vpop.f32.mrb[59].mxu0  ;;  %v264_v20 = vld [vmem:[%s7824_s23 + $0x18] sm:$0xff] }
0x12f0   :  { %v2123_v8 = vpop.f32.mrb[60].mxu0 }
0x12f1   :  { %2350 = vrot.lane.b32.xlu1 %v2123_v8, %s7816_s5  ;;  %v5631_v30 = vpop.f32.mrb[61].mxu0  ;;  %v269_v8 = vld [vmem:[%s6517_s30 + $0x10] sm:$0xff] }
0x12f2   :  { %v2126_v32 = vpop.f32.mrb[62].mxu0  ;;  %v7108_v30 = vpack.c.bf16 %v268_v24, %v267_v23 }
0x12f3   :  { %v5632_v33 = vpop.f32.mrb[63].mxu0  ;;  %v270_v32 = vld [vmem:[%s6517_s30 + $0x18] sm:$0xff] }
0x12f4   :  { %v7112_v33 = vpack.c.bf16 %v270_v32, %v269_v8 }
0x12f8   :  { %v2233_v44 = vpop.f32.mrb[64].mxu0 }
0x12f9   :  { %2354 = vrot.lane.b32.xlu0 %v2233_v44, %s7817_s16  ;;  %v5643_v45 = vpop.f32.mrb[65].mxu0  ;;  %v7118_v44 = vpack.c.bf16 %v272_v16, %v271_v34 }
0x12fa   :  { %v2236_v46 = vpop.f32.mrb[66].mxu0 }
0x12fb   :  { %v5644_v40 = vpop.f32.mrb[67].mxu0 }
0x1300   :  { %v2343_v12 = vpop.f32.mrb[68].mxu0 }
0x1301   :  { %2358 = vrot.lane.b32.xlu1 %v2343_v12, %s7819_s0  ;;  %v5655_v55 = vpop.f32.mrb[69].mxu0 }
0x1302   :  { %v2346_v47 = vpop.f32.mrb[70].mxu0  ;;  %v5158_v55 = vld [vmem:[%s7825_s24] ss:$0 sm:$0xff]  ;;  %s2735_s24 = scalar_lea.vmem %s6412_s25, %s5182_s29  ;;  %s5199_s29 = sld [smem:[#allocation6 + $0x8]] }
0x1303   :  { %v5656_v50 = vpop.f32.mrb[71].mxu0 }
0x1363   :  { %v2351_v52 = vpop.permute.xlu1 %2350 }
0x1364   :  { %v2361_v53 = vsel %vm467_vm11, %v2012_v29, %v2351_v52  ;;  %v262_v29 = vld [vmem:[%s7824_s23 + $0x8] sm:$0xff] }
0x1365   :  { %v7095_v14 = vpack.c.bf16 %v262_v29, %v261_v13  ;;  %v2739_v13 = vld [vmem:[%s2738_s9] sm:$0x1] }
0x1366   :  { %v2759_v23 = vrot.slane %v2739_v13, 4 }
0x1367   :  { %5666 = vmatpush3.bf16.msra.mxu0 %v7095_v14 }
0x1368   :  { %5667 = vmatprep.subr.bf16.mxu0 %v6358_v3 }
0x136b   :  { %v2355_v17 = vpop.permute.xlu0 %2354 }
0x136c   :  { %v2362_v54 = vsel %vm998_vm14, %v2361_v53, %v2355_v17  ;;  %v273_v17 = vld [vmem:[%s6517_s30 + $0x30] sm:$0xff]  ;;  %v274_v53 = vld [vmem:[%s6517_s30 + $0x38] sm:$0xff]  ;;  %s5181_s30 = sld [smem:[#allocation2 + $0xa]] }
0x1372   :  { %s2732_s4 = scalar_lea.vmem %s6412_s25, %s5181_s30  ;;  %s5204_s30 = sld [smem:[#allocation6 + $0xd]] }
0x1373   :  { %v2359_v56 = vpop.permute.xlu1 %2358 }
0x1374   :  { %v2363_v58 = vsel %vm1001_vm15, %v2362_v54, %v2359_v56  ;;  %v7130_v54 = vpack.c.bf16 %v274_v53, %v273_v17  ;;  %v182_v53 = vld [vmem:[%s6412_s25] sm:$0xff] }
0x1375   :  { %v2364_v38 = vpack.c.bf16 %v2363_v58, %v2363_v58 }
0x1377   :  { %5662 = vmatmul.mubr.msk.bf16.vlgmr.msra.gmra.mrb[60].mxu1 %vm393_vm9, %v2364_v38 }
0x1378   :  { %5681 = vmatprep.mubr.msk.bf16.mxu1 %vm6359_vm0, %v6358_v3  ;;  %5674 = vmatpush3.bf16.msra.mxu1 %v7108_v30 }
0x1379   :  { %5675 = vmatprep.subr.bf16.mxu1 %v6358_v3 }
0x137c   :  { %5676 = vmatpush3.bf16.msra.mxu1 %v7112_v33 }
0x137d   :  { %5677 = vmatprep.subr.bf16.mxu1 %v6358_v3 }
0x1380   :  { %5678 = vmatpush3.bf16.msra.mxu1 %v7118_v44 }
0x1381   :  { %5679 = vmatprep.subr.bf16.mxu1 %v6358_v3 }
0x1384   :  { %5680 = vmatpush3.bf16.msra.mxu1 %v7130_v54 }
0x1385   :  { %5697 = vmatprep.subr.bf16.mxu1 %v6358_v3 }
0x144a   :  { %v2402_v60 = vpop.f32.mrb[60].mxu1 }
0x144b   :  { %v7088_v61 = vadd.f32 %v2402_v60, %v6972_v35  ;;  %v5663_v0 = vpop.f32.mrb[61].mxu1  ;;  %v263_v35 = vld [vmem:[%s7824_s23 + $0x10] sm:$0xff]  ;;  %s5179_s23 = sld [smem:[#allocation2 + $0x8]] }
0x144c   :  { %v2405_v1 = vpop.f32.mrb[62].mxu1  ;;  %v7100_v41 = vpack.c.bf16 %v264_v20, %v263_v35  ;;  %v2742_v20 = vld [vmem:[%s2741_s10] sm:$0x1]  ;;  %s5203_s10 = sld [smem:[#allocation6 + $0xc]] }
0x144d   :  { %v5664_v2 = vpop.f32.mrb[63].mxu1  ;;  %v2409_v63 = vmul.f32 %v7088_v61, %v7088_v61  ;;  %v2762_v32 = vrot.slane %v2742_v20, 3 }
0x144e   :  { %5668 = vmatpush3.bf16.msra.mxu0 %v7100_v41  ;;  %v2680_v2 = vld [vmem:[%s6407_s21 + $0x1] sm:$0x1]  ;;  %s5180_s21 = sld [smem:[#allocation2 + $0x9]] }
0x144f   :  { %v2410_v5 = vsel %vm393_vm9, %v2409_v63, 0.0  ;;  %5685 = vmatprep.subr.bf16.mxu0 %v6358_v3  ;;  %v2681_v63 = vpack.c.bf16 %v2680_v2, %v2680_v2 }
0x1450   :  { %2411 = vadd.xlane.f32.xlu0 %v2410_v5 }
0x1451   :  { %s2726_s27 = scalar_lea.vmem %s6412_s25, %s5179_s23 }
0x1454   :  { %s2729_s18 = scalar_lea.vmem %s6412_s25, %s5180_s21  ;;  %s2744_s21 = scalar_lea.vmem %s6412_s25, %s5185_s22 }
0x1455   :  { %v2745_v8 = vld [vmem:[%s2744_s21] sm:$0x1]  ;;  %s5202_s22 = sld [smem:[#allocation6 + $0xb]]  ;;  %s5205_s21 = sld [smem:[#allocation6 + $0xe]] }
0x145b   :  { %s3568_s23 = scalar_lea.vmem %s6412_s25, %s5202_s22  ;;  %s5243_s22 = sld [smem:[#allocation8 + $0xe]] }
0x14dd   :  { %v2412_v45 = vpop.xlane.xlu0 %2411 }
0x14de   :  { %v2413_v46 = vmul.f32 0.03125, %v2412_v45  ;;  %v2765_v45 = vrot.slane %v2745_v8, 2 }
0x14e0   :  { %v2414_v40 = vadd.f32 1e-06, %v2413_v46 }
0x14e2   :  { %6132 = vrsqrt.f32 %v2414_v40 }
0x14ec   :  { %v6133_v12 = vpop.eup %6132 }
0x14ed   :  { %v2416_v47 = vmul.f32 %v6133_v12, %v7088_v61 }
0x14ef   :  { %v2423_v50 = vmul.f32 %v5158_v55, %v2416_v47 }
0x14f1   :  { %v2424_v52 = vpack.c.bf16 %v2423_v50, %v2423_v50 }
0x14f3   :  { %5670 = vmatmul.mubr.msk.bf16.vlgmr.msra.gmra.mrb[72].mxu0 %vm393_vm9, %v2424_v52 }
0x14f4   :  { %5693 = vmatprep.mubr.msk.bf16.mxu0 %vm6359_vm0, %v6358_v3 }
0x15c6   :  { %v2462_v56 = vpop.f32.mrb[72].mxu0 }
0x15c7   :  { %v2468_v58 = vmax.f32 %v2462_v56, 0.0  ;;  %v5671_v38 = vpop.f32.mrb[73].mxu0  ;;  %v183_v56 = vld [vmem:[%s6412_s25 + $0x8] sm:$0xff] }
0x15c8   :  { %v2465_v60 = vpop.f32.mrb[74].mxu0 }
0x15c9   :  { %v2469_v0 = vpack.c.bf16 %v2468_v58, %v2468_v58  ;;  %v5672_v1 = vpop.f32.mrb[75].mxu0  ;;  %v190_v58 = vpack.c.bf16 %v183_v56, %v182_v53 }
0x15cb   :  { %5682 = vmatmul.mubr.msk.bf16.vlgmr.msra.gmra.mrb[64].mxu1 %vm7789_vm13, %v2469_v0  ;;  %v7174_v38 = vsel %vm393_vm9, %v190_v58, 0 }
0x15cc   :  { %5698 = vmatpush3.bf16.msra.mxu1 %v6541_v4  ;;  %5703 = vmatprep.mubr.msk.bf16.mxu1 %vm6359_vm0, %v6358_v3  ;;  %v2730_v4 = vld [vmem:[%s2729_s18] sm:$0x1]  ;;  %s7830_s18 = smov 104  }
0x15cd   :  { %5699 = vmatprep.subr.bf16.mxu1 %v6358_v3  ;;  %5686 = vmatpush3.bf16.xpose.msra.mxu0 %v7174_v38 }
0x15ce   :  { %5687 = vmatprep.subr.bf16.mxu0 %v6358_v3 }
0x15d0   :  { %5700 = vmatpush3.bf16.msra.mxu1 %v6550_v6  ;;  %v2733_v6 = vld [vmem:[%s2732_s4] sm:$0x1]  ;;  %s2747_s4 = scalar_lea.vmem %s6412_s25, %s5186_s13  ;;  %s7831_s13 = smov 80  }
0x15d1   :  { %5701 = vmatprep.subr.bf16.mxu1 %v6358_v3  ;;  %v2753_v5 = vrot.slane %v2733_v6, 6  ;;  %v2748_v16 = vld [vmem:[%s2747_s4] sm:$0x1]  ;;  %s3571_s4 = scalar_lea.vmem %s6412_s25, %s5203_s10  ;;  %s6375_s10 = smov [#allocation9]  }
0x15d2   :  { %v2768_v40 = vrot.slane %v2748_v16, 1  ;;  %v187_v16 = vld [vmem:[%s6412_s25 + $0x28] sm:$0xff] }
0x15d4   :  { %5702 = vmatpush3.bf16.msra.mxu1 %v6556_v9  ;;  %v2750_v9 = vrot.slane %v2730_v4, 7 }
0x15d5   :  { %5707 = vmatprep.subr.bf16.mxu1 %v6358_v3 }
0x15d7   :  { %5704 = vmatmul.mubr.msk.bf16.vlgmr.msra.gmra.mrb[68].mxu1 %vm281_vm1, %v2681_v63  ;;  %vm7832_vm1 = vcmask 65536  }
0x15d8   :  { %5708 = vmatpush3.bf16.msra.mxu1 %v6595_v48  ;;  %5711 = vmatprep.mubr.msk.bf16.mxu1 %vm6359_vm0, %v6358_v3  ;;  %v2727_v48 = vld [vmem:[%s2726_s27] sm:$0x1]  ;;  %s7828_s27 = smov 112  }
0x15d9   :  { %5709 = vmatprep.subr.bf16.mxu1 %v6358_v3  ;;  %v2770_v35 = vsel %vm370_vm2, %v2727_v48, %v2750_v9  ;;  %v6230_v48 = vld [vmem:[%s6422_s3] sm:$0x1]  ;;  %s7826_s3 = smov 88  }
0x15da   :  { %v2771_v24 = vsel %vm372_vm3, %v2770_v35, %v2753_v5 }
0x15dc   :  { %5710 = vmatpush3.bf16.msra.mxu1 %v6601_v51  ;;  %v2736_v51 = vld [vmem:[%s2735_s24] sm:$0x1]  ;;  %s3559_s24 = scalar_lea.vmem %s6412_s25, %s5199_s29 }
0x15dd   :  { %5721 = vmatprep.subr.bf16.mxu1 %v6358_v3  ;;  %v2756_v29 = vrot.slane %v2736_v51, 5 }
0x15df   :  { %v2772_v34 = vsel %vm374_vm4, %v2771_v24, %v2756_v29  ;;  %v185_v24 = vld [vmem:[%s6412_s25 + $0x18] sm:$0xff] }
0x15e0   :  { %v2773_v46 = vsel %vm376_vm5, %v2772_v34, %v2759_v23  ;;  %v184_v23 = vld [vmem:[%s6412_s25 + $0x10] sm:$0xff]  ;;  %v186_v34 = vld [vmem:[%s6412_s25 + $0x20] sm:$0xff] }
0x15e1   :  { %v2774_v12 = vsel %vm378_vm6, %v2773_v46, %v2762_v32  ;;  %v191_v8 = vpack.c.bf16 %v185_v24, %v184_v23  ;;  %v6231_v23 = vld [vmem:[%s6432_s14] ss:$0 sm:$0xff]  ;;  %s7827_s14 = smov 96  }
0x15e2   :  { %v2775_v55 = vsel %vm380_vm7, %v2774_v12, %v2765_v45  ;;  %v192_v45 = vpack.c.bf16 %v187_v16, %v186_v34  ;;  %v189_v12 = vld [vmem:[%s6412_s25 + $0x38] sm:$0xff] }
0x15e3   :  { %v2776_v47 = vsel %vm382_vm8, %v2775_v55, %v2768_v40  ;;  %v7191_v32 = vsel %vm393_vm9, %v191_v8, 0  ;;  %v188_v40 = vld [vmem:[%s6412_s25 + $0x30] sm:$0xff] }
0x15e4   :  { %v7166_v50 = vrot.slane %v2776_v47, 7  ;;  %5688 = vmatpush3.bf16.xpose.msra.mxu0 %v7191_v32  ;;  %v7198_v46 = vsel %vm393_vm9, %v192_v45, 0  ;;  %v193_v55 = vpack.c.bf16 %v189_v12, %v188_v40 }
0x15e5   :  { %5689 = vmatprep.subr.bf16.mxu0 %v6358_v3 }
0x15e6   :  { %v2785_v52 = vmul.f32 %v7166_v50, %v7166_v50  ;;  %v7205_v47 = vsel %vm393_vm9, %v193_v55, 0 }
0x15e8   :  { %v2789_v17 = vsel %vm397_vm10, %v2785_v52, 0.0 }
0x15e9   :  { %2790 = vadd.xlane.f32.xlu0 %v2789_v17 }
0x15ec   :  { %5690 = vmatpush3.bf16.xpose.msra.mxu0 %v7198_v46 }
0x15ed   :  { %5691 = vmatprep.subr.bf16.mxu0 %v6358_v3 }
0x15f4   :  { %5692 = vmatpush3.bf16.xpose.msra.mxu0 %v7205_v47 }
0x15f5   :  { %5715 = vmatprep.subr.bf16.mxu0 %v6358_v3 }
0x1676   :  { %v2791_v52 = vpop.xlane.xlu0 %2790 }
0x1677   :  { %v2793_v58 = vmul.f32 0.03125, %v2791_v52 }
0x169e   :  { %v2507_v60 = vpop.f32.mrb[64].mxu1 }
0x169f   :  { %v2513_v0 = vadd.f32 %v2507_v60, %v7088_v61  ;;  %v5683_v1 = vpop.f32.mrb[65].mxu1  ;;  %v2795_v60 = vadd.f32 1e-06, %v2793_v58 }
0x16a0   :  { %v2510_v2 = vpop.f32.mrb[66].mxu1 }
0x16a1   :  { %v5684_v63 = vpop.f32.mrb[67].mxu1  ;;  %v2514_v4 = vmul.f32 %v2513_v0, %v2513_v0 }
0x16a3   :  { %v2515_v6 = vsel %vm393_vm9, %v2514_v4, 0.0  ;;  %v5161_v4 = vld [vmem:[%s6522_s20] ss:$0 sm:$0xff]  ;;  %s5206_s20 = sld [smem:[#allocation6 + $0xf]] }
0x16a4   :  { %2516 = vadd.xlane.f32.xlu0 %v2515_v6 }
0x16a9   :  { %s3580_s29 = scalar_lea.vmem %s6412_s25, %s5206_s20  ;;  %s7838_s20 = sld [smem:[#allocation21_spill]] }
0x16aa   :  { %v2719_v9 = vpop.f32.mrb[68].mxu1 }
0x16ab   :  { %v2720_v51 = vadd.f32 %v6230_v48, %v2719_v9  ;;  %v5705_v5 = vpop.f32.mrb[69].mxu1 }
0x16ac   :  { %v2722_v13 = vpop.f32.mrb[70].mxu1 }
0x16ad   :  { %v5706_v29 = vpop.f32.mrb[71].mxu1  ;;  %v7183_v61 = vsel %vm370_vm2, %v2720_v51, %v7166_v50 }
0x16ae   :  { %v2784_v35 = vmul.f32 %v7183_v61, %v7183_v61 }
0x16b0   :  { %v2786_v20 = vsel %vm393_vm9, %v2784_v35, 0.0 }
0x16b1   :  { %2787 = vadd.xlane.f32.xlu1 %v2786_v20 }
0x1731   :  { %v2517_v17 = vpop.xlane.xlu0 %2516 }
0x1732   :  { %v2518_v53 = vmul.f32 0.03125, %v2517_v17 }
0x1734   :  { %v2519_v56 = vadd.f32 1e-06, %v2518_v53 }
0x1736   :  { %6134 = vrsqrt.f32 %v2519_v56 }
0x1737   :  { %6136 = vrsqrt.f32 %v2795_v60 }
0x173e   :  { %v2788_v1 = vpop.xlane.xlu1 %2787 }
0x173f   :  { %v2792_v2 = vmul.f32 0.03125, %v2788_v1 }
0x1740   :  { %v6135_v63 = vpop.eup %6134 }
0x1741   :  { %v2521_v6 = vmul.f32 %v6135_v63, %v2513_v0  ;;  %v2794_v9 = vadd.f32 1e-06, %v2792_v2  ;;  %v6137_v5 = vpop.eup %6136 }
0x1742   :  { %v2799_v29 = vmul.f32 %v6137_v5, %v7166_v50  ;;  %v2781_v5 = vld [vmem:[%s6402_s17 + $0x1] sm:$0x1]  ;;  %s5200_s17 = sld [smem:[#allocation6 + $0x9]] }
0x1743   :  { %6138 = vrsqrt.f32 %v2794_v9  ;;  %v2528_v48 = vmul.f32 %v5161_v4, %v2521_v6 }
0x1744   :  { %v2801_v24 = vmul.f32 %v6231_v23, %v2799_v29 }
0x1745   :  { %v2529_v51 = vmul.f32 0.17677669, %v2528_v48 }
0x1747   :  { %v2530_v13 = vpack.c.bf16 %v2529_v51, %v2529_v51 }
0x1748   :  { %s3562_s26 = scalar_lea.vmem %s6412_s25, %s5200_s17  ;;  %s3574_s17 = scalar_lea.vmem %s6412_s25, %s5204_s30 }
0x1749   :  { %5694 = vmatmul.mubr.msk.bf16.vlgmr.msra.gmra.mrb[76].mxu0 %vm393_vm9, %v2530_v13  ;;  %v2782_v13 = vsub.f32 1.0, %v2781_v5 }
0x174a   :  { %5717 = vmatprep.mubr.msk.bf16.mxu0 %vm6359_vm0, %v6358_v3 }
0x174b   :  { %v2783_v29 = vmul.f32 -1e+09, %v2782_v13 }
0x174d   :  { %v6139_v35 = vpop.eup %6138 }
0x174e   :  { %v2798_v20 = vmul.f32 %v6139_v35, %v7183_v61  ;;  %v7267_v35 = vrot.slane %v2783_v29, %v517_v27  ;;  %v6237_v29 = vld [vmem:[%s6427_s8 + $0x28] sm:$0x1] }
0x1750   :  { %v2800_v8 = vmul.f32 %v6231_v23, %v2798_v20  ;;  %v6232_v23 = vld [vmem:[%s6427_s8] sm:$0xff] }
0x1752   :  { %v2802_v0 = vpack.c.bf16 %v2801_v24, %v2800_v8 }
0x1754   :  { %5712 = vmatmul.mubr.msk.bf16.vlgmr.msra.gmra.mrb[72].mxu1 %vm393_vm9, %v2802_v0  ;;  %v6233_v0 = vld [vmem:[%s6427_s8 + $0x8] sm:$0x1] }
0x1755   :  { %5723 = vmatprep.mubr.msk.bf16.mxu1 %vm6359_vm0, %v6358_v3 }
0x181c   :  { %v7219_v34 = vpop.f32.mrb[76].mxu0 }
0x181d   :  { %2586 = vst.msk [vmem:[#allocation9] sm:$0xff] %vm7789_vm13, %v7219_v34  ;;  %v5695_v16 = vpop.f32.mrb[77].mxu0  ;;  %vm7833_vm13 = vmmov %vm7832_vm1 }
0x181e   :  { %v2583_v45 = vpop.f32.mrb[78].mxu0 }
0x181f   :  { %v5696_v40 = vpop.f32.mrb[79].mxu0 }
0x1827   :  { %v2840_v12 = vpop.f32.mrb[72].mxu1 }
0x1828   :  { %v5713_v55 = vpop.f32.mrb[73].mxu1 }
0x1829   :  { %v2843_v52 = vpop.f32.mrb[74].mxu1  ;;  %v6234_v55 = vld [vmem:[%s6427_s8 + $0x10] sm:$0xff] }
0x182a   :  { %v7223_v17 = vpack.c.bf16 %v2843_v52, %v2840_v12  ;;  %v5714_v53 = vpop.f32.mrb[75].mxu1 }
0x182c   :  { %2978 = vrot.lane.b32.xlu0 %v7223_v17, %s7826_s3  ;;  %2849 = vrot.lane.b32.xlu1 %v7223_v17, %s7827_s14 }
0x1830   :  { %3101 = vrot.lane.b32.xlu0 %v7223_v17, %s7828_s27  ;;  %2976 = vrot.lane.b32.xlu1 %v7223_v17, %s7829_s19 }
0x1834   :  { %3226 = vrot.lane.b32.xlu0 %v7223_v17, %s7830_s18  ;;  %3103 = vrot.lane.b32.xlu1 %v7223_v17, %s7831_s13 }
0x1838   :  { %3228 = vrot.lane.b32.xlu1 %v7223_v17, %s7809_s12 }
0x189e   :  { %v2850_v56 = vpop.permute.xlu1 %2849  ;;  %v2979_v60 = vpop.permute.xlu0 %2978 }
0x189f   :  { %v2855_v58 = vsel %vm467_vm11, %v2850_v56, 0  ;;  %v2984_v2 = vsel %vm467_vm11, %v2979_v60, 0 }
0x18a0   :  { %5716 = vmatpush3.bf16.xpose.msra.mxu0 %v2855_v58  ;;  %v6235_v58 = vld [vmem:[%s6427_s8 + $0x18] sm:$0x1] }
0x18a1   :  { %5727 = vmatprep.subr.bf16.mxu0 %v6358_v3 }
0x18a2   :  { %v2977_v1 = vpop.permute.xlu1 %2976  ;;  %v3102_v9 = vpop.permute.xlu0 %3101 }
0x18a6   :  { %v3104_v63 = vpop.permute.xlu1 %3103  ;;  %v3227_v51 = vpop.permute.xlu0 %3226 }
0x18a7   :  { %5718 = vmatmul.mubr.msk.bf16.vlgmr.msra.gmra.mrb[80].mxu0 %vm467_vm11, %v7223_v17  ;;  %v3109_v4 = vsel %vm467_vm11, %v3104_v63, 0 }
0x18a8   :  { %5728 = vmatpush3.bf16.xpose.msra.mxu0 %v2984_v2  ;;  %5729 = vmatprep.mubr.msk.bf16.mxu0 %vm6359_vm0, %v6358_v3 }
0x18a9   :  { %5739 = vmatprep.subr.bf16.mxu0 %v6358_v3 }
0x18aa   :  { %v3229_v6 = vpop.permute.xlu1 %3228 }
0x18ab   :  { %v3234_v48 = vsel %vm467_vm11, %v3229_v6, 0 }
0x18af   :  { %5730 = vmatmul.mubr.msk.bf16.vlgmr.msra.gmra.mrb[84].mxu0 %vm467_vm11, %v2977_v1 }
0x18b0   :  { %5740 = vmatpush3.bf16.xpose.msra.mxu0 %v3109_v4  ;;  %5741 = vmatprep.mubr.msk.bf16.mxu0 %vm6359_vm0, %v6358_v3 }
0x18b1   :  { %5751 = vmatprep.subr.bf16.mxu0 %v6358_v3 }
0x18b7   :  { %5742 = vmatmul.mubr.msk.bf16.vlgmr.msra.gmra.mrb[88].mxu0 %vm467_vm11, %v3102_v9 }
0x18b8   :  { %5752 = vmatpush3.bf16.xpose.msra.mxu0 %v3234_v48  ;;  %5753 = vmatprep.mubr.msk.bf16.mxu0 %vm6359_vm0, %v6358_v3  ;;  %v6236_v48 = vld [vmem:[%s6427_s8 + $0x20] sm:$0xff] }
0x18b9   :  { %5763 = vmatprep.subr.bf16.mxu0 %v6358_v3 }
0x18bf   :  { %5754 = vmatmul.mubr.msk.bf16.vlgmr.msra.gmra.mrb[92].mxu0 %vm467_vm11, %v3227_v51 }
0x18c0   :  { %5764 = vmatpush3.bf16.msra.mxu0 %v6731_v10  ;;  %5767 = vmatprep.mubr.msk.bf16.mxu0 %vm6359_vm0, %v6358_v3 }
0x18c1   :  { %5765 = vmatprep.subr.bf16.mxu0 %v6358_v3 }
0x18c4   :  { %5766 = vmatpush3.bf16.msra.mxu0 %v6738_v15 }
0x18c5   :  { %5779 = vmatprep.subr.bf16.mxu0 %v6358_v3 }
0x197a   :  { %v2891_v20 = vpop.f32.mrb[80].mxu0 }
0x197b   :  { %v2892_v10 = vadd.f32 %v6232_v23, %v2891_v20  ;;  %v5719_v24 = vpop.f32.mrb[81].mxu0 }
0x197c   :  { %v2894_v8 = vpop.f32.mrb[82].mxu0 }
0x197d   :  { %v2895_v16 = vadd.f32 %v6233_v0, %v2894_v8  ;;  %v5720_v45 = vpop.f32.mrb[83].mxu0  ;;  %v2902_v15 = vadd.f32 %v7267_v35, %v2892_v10 }
0x197e   :  { %v6238_v45 = vld [vmem:[%s6427_s8 + $0x30] sm:$0xff] }
0x197f   :  { %v2904_v40 = vsel %vm521_vm12, %v2902_v15, -inf  ;;  %v2903_v12 = vadd.f32 %v7267_v35, %v2895_v16 }
0x1980   :  { %2905 = vmax.xlane.f32.xlu1 %v2904_v40 }
0x1981   :  { %v2907_v25 = vsel %vm7832_vm1, %v2903_v12, -inf }
0x1982   :  { %2908 = vmax.xlane.f32.xlu0 %v2907_v25  ;;  %v3020_v27 = vpop.f32.mrb[84].mxu0 }
0x1983   :  { %v3021_v52 = vadd.f32 %v6234_v55, %v3020_v27  ;;  %v5731_v53 = vpop.f32.mrb[85].mxu0  ;;  %v6239_v55 = vld [vmem:[%s6427_s8 + $0x38] sm:$0x1]  ;;  %s5201_s8 = sld [smem:[#allocation6 + $0xa]] }
0x1984   :  { %v3023_v56 = vpop.f32.mrb[86].mxu0 }
0x1985   :  { %v3024_v60 = vadd.f32 %v6235_v58, %v3023_v56  ;;  %v5732_v1 = vpop.f32.mrb[87].mxu0  ;;  %v7278_v2 = vadd.f32 %v3021_v52, %v7267_v35 }
0x1987   :  { %v3028_v63 = vadd.f32 %v3024_v60, %v7267_v35  ;;  %v3029_v4 = vsel %vm521_vm12, %v7278_v2, -inf }
0x1988   :  { %3030 = vmax.xlane.f32.xlu0 %v3029_v4 }
0x1989   :  { %v3032_v6 = vsel %vm7832_vm1, %v3028_v63, -inf  ;;  %s3565_s9 = scalar_lea.vmem %s6412_s25, %s5201_s8  ;;  %s3577_s8 = scalar_lea.vmem %s6412_s25, %s5205_s21 }
0x198a   :  { %3033 = vmax.xlane.f32.xlu1 %v3032_v6  ;;  %v3145_v9 = vpop.f32.mrb[88].mxu0  ;;  %s7837_s25 = sld [smem:[#allocation16_spill]] }
0x198b   :  { %v3146_v51 = vadd.f32 %v6236_v48, %v3145_v9  ;;  %v5743_v5 = vpop.f32.mrb[89].mxu0 }
0x198c   :  { %v3148_v13 = vpop.f32.mrb[90].mxu0 }
0x198d   :  { %v3149_v20 = vadd.f32 %v6237_v29, %v3148_v13  ;;  %v5744_v23 = vpop.f32.mrb[91].mxu0  ;;  %v7287_v10 = vadd.f32 %v3146_v51, %v7267_v35 }
0x198f   :  { %v3153_v24 = vadd.f32 %v3149_v20, %v7267_v35  ;;  %v3154_v8 = vsel %vm521_vm12, %v7287_v10, -inf }
0x1990   :  { %3155 = vmax.xlane.f32.xlu0 %v3154_v8 }
0x1991   :  { %v3157_v0 = vsel %vm7832_vm1, %v3153_v24, -inf }
0x1992   :  { %3158 = vmax.xlane.f32.xlu1 %v3157_v0  ;;  %v3270_v16 = vpop.f32.mrb[92].mxu0 }
0x1993   :  { %v3271_v40 = vadd.f32 %v6238_v45, %v3270_v16  ;;  %v5755_v25 = vpop.f32.mrb[93].mxu0 }
0x1994   :  { %v3273_v27 = vpop.f32.mrb[94].mxu0 }
0x1995   :  { %v3274_v52 = vadd.f32 %v6239_v55, %v3273_v27  ;;  %v5756_v53 = vpop.f32.mrb[95].mxu0  ;;  %v3277_v56 = vadd.f32 %v3271_v40, %v7267_v35 }
0x1997   :  { %v3278_v58 = vadd.f32 %v3274_v52, %v7267_v35  ;;  %v3279_v60 = vsel %vm521_vm12, %v3277_v56, -inf }
0x1998   :  { %3280 = vmax.xlane.f32.xlu0 %v3279_v60 }
0x1999   :  { %v3282_v1 = vsel %vm7833_vm13, %v3278_v58, -inf  ;;  %vm7834_vm13 = vmmov %vm7832_vm1 }
0x199a   :  { %3283 = vmax.xlane.f32.xlu1 %v3282_v1 }
0x1a0d   :  { %v2906_v4 = vpop.xlane.xlu1 %2905 }
0x1a0e   :  { %v2910_v6 = vsub.f32 %v2902_v15, %v2906_v4 }
0x1a0f   :  { %v2909_v9 = vpop.xlane.xlu0 %2908 }
0x1a10   :  { %v2912_v48 = vmul.f32 1.442695, %v2910_v6  ;;  %v2911_v51 = vsub.f32 %v2903_v12, %v2909_v9 }
0x1a12   :  { %6140 = vpow2.f32 %v2912_v48  ;;  %v2914_v5 = vmul.f32 1.442695, %v2911_v51 }
0x1a14   :  { %6142 = vpow2.f32 %v2914_v5 }
0x1a15   :  { %v3031_v8 = vpop.xlane.xlu0 %3030 }
0x1a16   :  { %v3035_v51 = vsub.f32 %v7278_v2, %v3031_v8 }
0x1a17   :  { %v3034_v13 = vpop.xlane.xlu1 %3033 }
0x1a18   :  { %v3036_v29 = vsub.f32 %v3028_v63, %v3034_v13  ;;  %v3037_v5 = vmul.f32 1.442695, %v3035_v51 }
0x1a1a   :  { %v3039_v20 = vmul.f32 1.442695, %v3036_v29 }
0x1a1c   :  { %v6141_v23 = vpop.eup %6140  ;;  %6144 = vpow2.f32 %v3039_v20 }
0x1a1d   :  { %v2916_v0 = vsel %vm521_vm12, %v6141_v23, 0.0  ;;  %v3156_v25 = vpop.xlane.xlu0 %3155 }
0x1a1e   :  { %v6143_v16 = vpop.eup %6142  ;;  %2917 = vadd.xlane.f32.xlu0 %v2916_v0  ;;  %v3160_v13 = vsub.f32 %v7287_v10, %v3156_v25 }
0x1a1f   :  { %v3159_v45 = vpop.xlane.xlu1 %3158  ;;  %v2919_v40 = vsel %vm7834_vm13, %v6143_v16, 0.0  ;;  %vm7835_vm13 = vmmov %vm7832_vm1 }
0x1a20   :  { %v3161_v15 = vsub.f32 %v3153_v24, %v3159_v45  ;;  %2920 = vadd.xlane.f32.xlu1 %v2919_v40  ;;  %v3162_v29 = vmul.f32 1.442695, %v3160_v13 }
0x1a22   :  { %v3164_v12 = vmul.f32 1.442695, %v3161_v15 }
0x1a24   :  { %6146 = vpow2.f32 %v3164_v12 }
0x1a25   :  { %v3281_v27 = vpop.xlane.xlu0 %3280 }
0x1a26   :  { %v7301_v55 = vpop.eup %6144  ;;  %v3285_v63 = vsub.f32 %v3277_v56, %v3281_v27 }
0x1a27   :  { %v3284_v52 = vpop.xlane.xlu1 %3283  ;;  %v3044_v53 = vsel %vm7832_vm1, %v7301_v55, 0.0 }
0x1a28   :  { %v3287_v60 = vmul.f32 1.442695, %v3285_v63  ;;  %v3286_v1 = vsub.f32 %v3278_v58, %v3284_v52  ;;  %3045 = vadd.xlane.f32.xlu1 %v3044_v53 }
0x1a2a   :  { %6148 = vpow2.f32 %v3287_v60  ;;  %v3289_v4 = vmul.f32 1.442695, %v3286_v1 }
0x1a2c   :  { %6150 = vpow2.f32 %v3289_v4 }
0x1a2d   :  { %6152 = vpow2.f32 %v3037_v5 }
0x1a2e   :  { %v7305_v6 = vpop.eup %6146  ;;  %6154 = vpow2.f32 %v3162_v29 }
0x1a2f   :  { %v3169_v24 = vsel %vm7835_vm13, %v7305_v6, 0.0  ;;  %vm7836_vm13 = vcmask 523264  }
0x1a30   :  { %3170 = vadd.xlane.f32.xlu1 %v3169_v24 }
0x1a34   :  { %v7309_v9 = vpop.eup %6148  ;;  %2927 = vrot.lane.b32.xlu0 %v7223_v17, %s7812_s7 }
0x1a35   :  { %v3291_v56 = vsel %vm521_vm12, %v7309_v9, 0.0 }
0x1a36   :  { %v7315_v48 = vpop.eup %6150  ;;  %3292 = vadd.xlane.f32.xlu1 %v3291_v56 }
0x1a37   :  { %v3294_v58 = vsel %vm7832_vm1, %v7315_v48, 0.0  ;;  %v6153_v20 = vpop.eup %6152 }
0x1a38   :  { %v3041_v0 = vsel %vm521_vm12, %v6153_v20, 0.0  ;;  %v6155_v45 = vpop.eup %6154 }
0x1a39   :  { %v3166_v40 = vsel %vm521_vm12, %v6155_v45, 0.0 }
0x1a3a   :  { %3295 = vadd.xlane.f32.xlu1 %v3294_v58 }
0x1a4b   :  { %3052 = vrot.lane.b32.xlu1 %v7223_v17, %s7811_s2 }
0x1a53   :  { %3042 = vadd.xlane.f32.xlu0 %v3041_v0 }
0x1a57   :  { %3167 = vadd.xlane.f32.xlu0 %v3166_v40 }
0x1a6d   :  { %3177 = vrot.lane.b32.xlu0 %v7223_v17, %s7814_s15 }
0x1a71   :  { %3302 = vrot.lane.b32.xlu0 %v7223_v17, %s7813_s11 }
0x1aab   :  { %v2918_v2 = vpop.xlane.xlu0 %2917 }
0x1aac   :  { %6156 = vrcp.f32 %v2918_v2 }
0x1aad   :  { %v2921_v10 = vpop.xlane.xlu1 %2920 }
0x1aae   :  { %6158 = vrcp.f32 %v2921_v10 }
0x1aaf   :  { %v2928_v8 = vpop.permute.xlu0 %2927 }
0x1ab0   :  { %v2933_v15 = vand.u32 %v2928_v8, %v6691_v59 }
0x1ab2   :  { %5722 = vmatpush3.bf16.msra.mxu1 %v2933_v15 }
0x1ab3   :  { %5733 = vmatprep.subr.bf16.mxu1 %v6358_v3 }
0x1ab5   :  { %v3046_v52 = vpop.xlane.xlu1 %3045 }
0x1ab6   :  { %v6157_v25 = vpop.eup %6156  ;;  %6160 = vrcp.f32 %v3046_v52 }
0x1ab7   :  { %v2924_v27 = vmul.f32 %v6157_v25, %v6141_v23 }
0x1ab8   :  { %v6159_v12 = vpop.eup %6158 }
0x1ab9   :  { %v2925_v63 = vmul.f32 %v6159_v12, %v6143_v16 }
0x1abb   :  { %v2926_v53 = vpack.c.bf16 %v2925_v63, %v2924_v27 }
0x1abd   :  { %5724 = vmatmul.mubr.msk.bf16.vlgmr.msra.gmra.mrb[76].mxu1 %vm521_vm12, %v2926_v53  ;;  %v3171_v17 = vpop.xlane.xlu1 %3170 }
0x1abe   :  { %5735 = vmatprep.mubr.msk.bf16.mxu1 %vm6359_vm0, %v6358_v3 }
0x1ac0   :  { %v6161_v16 = vpop.eup %6160 }
0x1ac1   :  { %v3050_v51 = vmul.f32 %v6161_v16, %v7301_v55 }
0x1ac3   :  { %v3293_v60 = vpop.xlane.xlu1 %3292 }
0x1ac7   :  { %v3296_v1 = vpop.xlane.xlu1 %3295 }
0x1acb   :  { %v3053_v4 = vpop.permute.xlu1 %3052 }
0x1acc   :  { %v3058_v24 = vand.u32 %v3053_v4, %v6691_v59 }
0x1ace   :  { %5734 = vmatpush3.bf16.msra.mxu1 %v3058_v24 }
0x1acf   :  { %5745 = vmatprep.subr.bf16.mxu1 %v6358_v3 }
0x1ae0   :  { %v3043_v56 = vpop.xlane.xlu0 %3042 }
0x1ae1   :  { %6162 = vrcp.f32 %v3043_v56 }
0x1ae4   :  { %v3168_v23 = vpop.xlane.xlu0 %3167 }
0x1ae5   :  { %6164 = vrcp.f32 %v3168_v23 }
0x1ae6   :  { %6166 = vrcp.f32 %v3171_v17 }
0x1ae7   :  { %6168 = vrcp.f32 %v3296_v1 }
0x1ae8   :  { %v3178_v13 = vpop.permute.xlu0 %3177  ;;  %6170 = vrcp.f32 %v3293_v60 }
0x1ae9   :  { %v3183_v40 = vand.u32 %v3178_v13, %v6691_v59 }
0x1aeb   :  { %v6163_v58 = vpop.eup %6162 }
0x1aec   :  { %v3049_v5 = vmul.f32 %v6163_v58, %v6153_v20  ;;  %v3303_v20 = vpop.permute.xlu0 %3302 }
0x1aed   :  { %v3308_v25 = vand.u32 %v3303_v20, %v6691_v59 }
0x1aee   :  { %v3051_v29 = vpack.c.bf16 %v3050_v51, %v3049_v5 }
0x1aef   :  { %v6165_v0 = vpop.eup %6164 }
0x1af0   :  { %5736 = vmatmul.mubr.msk.bf16.vlgmr.msra.gmra.mrb[80].mxu1 %vm521_vm12, %v3051_v29  ;;  %v6167_v2 = vpop.eup %6166  ;;  %v3174_v10 = vmul.f32 %v6165_v0, %v6155_v45 }
0x1af1   :  { %5746 = vmatpush3.bf16.msra.mxu1 %v3183_v40  ;;  %5747 = vmatprep.mubr.msk.bf16.mxu1 %vm6359_vm0, %v6358_v3  ;;  %v3175_v55 = vmul.f32 %v6167_v2, %v7305_v6  ;;  %v6169_v15 = vpop.eup %6168 }
0x1af2   :  { %5757 = vmatprep.subr.bf16.mxu1 %v6358_v3  ;;  %v6171_v12 = vpop.eup %6170  ;;  %v3300_v27 = vmul.f32 %v6169_v15, %v7315_v48 }
0x1af3   :  { %v3176_v8 = vpack.c.bf16 %v3175_v55, %v3174_v10  ;;  %v3299_v45 = vmul.f32 %v6171_v12, %v7309_v9 }
0x1af5   :  { %v3301_v63 = vpack.c.bf16 %v3300_v27, %v3299_v45 }
0x1af8   :  { %5748 = vmatmul.mubr.msk.bf16.vlgmr.msra.gmra.mrb[84].mxu1 %vm521_vm12, %v3176_v8 }
0x1af9   :  { %5758 = vmatpush3.bf16.msra.mxu1 %v3308_v25  ;;  %5759 = vmatprep.mubr.msk.bf16.mxu1 %vm6359_vm0, %v6358_v3 }
0x1afa   :  { %5771 = vmatprep.subr.bf16.mxu1 %v6358_v3 }
0x1b00   :  { %5760 = vmatmul.mubr.msk.bf16.vlgmr.msra.gmra.mrb[88].mxu1 %vm521_vm12, %v3301_v63 }
0x1b01   :  { %5772 = vmatpush3.bf16.msra.mxu1 %v6787_v28  ;;  %5775 = vmatprep.mubr.msk.bf16.mxu1 %vm6359_vm0, %v6358_v3 }
0x1b02   :  { %5773 = vmatprep.subr.bf16.mxu1 %v6358_v3 }
0x1b05   :  { %5774 = vmatpush3.bf16.msra.mxu1 %v6793_v31 }
0x1b06   :  { %5791 = vmatprep.subr.bf16.mxu1 %v6358_v3 }
0x1b90   :  { %v2969_v6 = vpop.f32.mrb[76].mxu1 }
0x1b91   :  { %v5725_v48 = vpop.f32.mrb[77].mxu1 }
0x1b92   :  { %v2972_v52 = vpop.f32.mrb[78].mxu1 }
0x1b93   :  { %v5726_v53 = vpop.f32.mrb[79].mxu1 }
0x1bc3   :  { %v3094_v17 = vpop.f32.mrb[80].mxu1 }
0x1bc4   :  { %v5737_v9 = vpop.f32.mrb[81].mxu1 }
0x1bc5   :  { %v3097_v60 = vpop.f32.mrb[82].mxu1  ;;  %v3572_v9 = vld [vmem:[%s3571_s4] sm:$0x1] }
0x1bc6   :  { %v6037_v1 = vpack.i.bf16 %v3097_v60, %v3094_v17  ;;  %v5738_v4 = vpop.f32.mrb[83].mxu1 }
0x1bc7   :  { %v3575_v4 = vld [vmem:[%s3574_s17] sm:$0x1] }
0x1bc8   :  { %6038 = vrot.lane.b32.xlu1 %v6037_v1, %s7816_s5 }
0x1bcb   :  { %v3219_v28 = vpop.f32.mrb[84].mxu1 }
0x1bcc   :  { %v5749_v24 = vpop.f32.mrb[85].mxu1 }
0x1bcd   :  { %v3222_v56 = vpop.f32.mrb[86].mxu1 }
0x1bce   :  { %v6042_v23 = vpack.i.bf16 %v3222_v56, %v3219_v28  ;;  %v5750_v16 = vpop.f32.mrb[87].mxu1  ;;  %v3592_v28 = vrot.slane %v3572_v9, 4  ;;  %v3578_v56 = vld [vmem:[%s3577_s8] sm:$0x1] }
0x1bd0   :  { %6043 = vrot.lane.b32.xlu0 %v6042_v23, %s7817_s16  ;;  %v3595_v23 = vrot.slane %v3575_v4, 3  ;;  %v6240_v4 = vld [vmem:[%s7806_s6] ss:$0 sm:$0xff]  ;;  %s7839_s6 = sld [smem:[#allocation25_spill]] }
0x1bd3   :  { %v3344_v31 = vpop.f32.mrb[88].mxu1 }
0x1bd4   :  { %v5761_v58 = vpop.f32.mrb[89].mxu1 }
0x1bd5   :  { %v3347_v51 = vpop.f32.mrb[90].mxu1  ;;  %v3598_v58 = vrot.slane %v3578_v56, 2 }
0x1bd6   :  { %v6047_v5 = vpack.i.bf16 %v3347_v51, %v3344_v31  ;;  %v5762_v13 = vpop.f32.mrb[91].mxu1  ;;  %v3581_v31 = vld [vmem:[%s3580_s29] sm:$0x1] }
0x1bd8   :  { %6048 = vrot.lane.b32.xlu1 %v6047_v5, %s7819_s0  ;;  %v3601_v5 = vrot.slane %v3581_v31, 1 }
0x1c3a   :  { %v6039_v29 = vpop.permute.xlu1 %6038 }
0x1c3b   :  { %v6041_v40 = vunpack.i.h.bf16 %v6039_v29  ;;  %v6040_v2 = vunpack.i.l.bf16 %v6039_v29 }
0x1c3d   :  { %v3376_v8 = vsel %vm467_vm11, %v2972_v52, %v6041_v40  ;;  %v3375_v15 = vsel %vm467_vm11, %v2969_v6, %v6040_v2  ;;  %v3560_v6 = vld [vmem:[%s3559_s24] sm:$0x1] }
0x1c42   :  { %v6044_v0 = vpop.permute.xlu0 %6043 }
0x1c43   :  { %v6046_v10 = vunpack.i.h.bf16 %v6044_v0  ;;  %v6045_v55 = vunpack.i.l.bf16 %v6044_v0 }
0x1c45   :  { %v3378_v27 = vsel %vm998_vm14, %v3376_v8, %v6046_v10  ;;  %v3377_v45 = vsel %vm998_vm14, %v3375_v15, %v6045_v55 }
0x1c4a   :  { %v6049_v20 = vpop.permute.xlu1 %6048 }
0x1c4b   :  { %v6051_v25 = vunpack.i.h.bf16 %v6049_v20  ;;  %v6050_v12 = vunpack.i.l.bf16 %v6049_v20 }
0x1c4d   :  { %v3380_v63 = vsel %vm1001_vm15, %v3378_v27, %v6051_v25  ;;  %v3379_v48 = vsel %vm1001_vm15, %v3377_v45, %v6050_v12 }
0x1c4e   :  { %v3381_v53 = vpack.c.bf16 %v3380_v63, %v3379_v48 }
0x1c50   :  { %5768 = vmatmul.mubr.msk.bf16.vlgmr.msra.gmra.mrb[96].mxu0 %vm393_vm9, %v3381_v53 }
0x1c51   :  { %5780 = vmatpush3.bf16.msra.mxu0 %v6800_v36  ;;  %5787 = vmatprep.mubr.msk.bf16.mxu0 %vm6359_vm0, %v6358_v3  ;;  %v3563_v36 = vld [vmem:[%s3562_s26] sm:$0x1]  ;;  %s5245_s26 = sld [smem:[#allocation8 + $0xf]] }
0x1c52   :  { %5781 = vmatprep.subr.bf16.mxu0 %v6358_v3 }
0x1c55   :  { %5782 = vmatpush3.bf16.msra.mxu0 %v6804_v39  ;;  %v3566_v39 = vld [vmem:[%s3565_s9] sm:$0x1]  ;;  %s5018_s9 = sshll.u32 %s6375_s10, 4  ;;  %s5019_s9 = int_to_ptr.vmem [resolvable:$true] %s5018_s9 }
0x1c56   :  { %5783 = vmatprep.subr.bf16.mxu0 %v6358_v3  ;;  %v3586_v52 = vrot.slane %v3566_v39, 6  ;;  %s6286_s24 = scalar_lea.vmem %s5019_s9, 256  ;;  %p6291_p2 = scmp.lt.s32.totalorder %s5019_s9, %s5019_s9 }
0x1c57   :  { %p6287_p1 = scmp.ne.s32.totalorder %s5019_s9, %s6286_s24  ;;  %p6292_p3 = scmp.lt.s32.totalorder %s6286_s24, %s6286_s24 }
0x1c59   :  { %5784 = vmatpush3.bf16.msra.mxu0 %v6834_v19  ;;  %v3583_v19 = vrot.slane %v3563_v36, 7  ;;  %p6293_p4 = por %p6292_p3, %p6291_p2 }
0x1c5a   :  { %5785 = vmatprep.subr.bf16.mxu0 %v6358_v3 }
0x1c5b   :  { %v3603_v17 = vsel %vm370_vm2, %v3560_v6, %v3583_v19  ;;  %p6294_p5 = pnand %p6293_p4, %p6287_p1 }
0x1c5c   :  { %v3604_v1 = vsel %vm372_vm3, %v3603_v17, %v3586_v52 }
0x1c5d   :  { %5786 = vmatpush3.bf16.msra.mxu0 %v6840_v21  ;;  %v3569_v21 = vld [vmem:[%s3568_s23] sm:$0x1] }
0x1c5e   :  { %5805 = vmatprep.subr.bf16.mxu0 %v6358_v3  ;;  %v3589_v60 = vrot.slane %v3569_v21, 5 }
0x1c60   :  { %v3605_v24 = vsel %vm374_vm4, %v3604_v1, %v3589_v60 }
0x1c61   :  { %v3606_v16 = vsel %vm376_vm5, %v3605_v24, %v3592_v28 }
0x1c62   :  { %v3607_v51 = vsel %vm378_vm6, %v3606_v16, %v3595_v23  ;;  %v6241_v23 = vld [vmem:[%s7808_s28] ss:$0 sm:$0xff]  ;;  %s2601_s28 = sld [smem:[#allocation8]] }
0x1c63   :  { %v3608_v13 = vsel %vm380_vm7, %v3607_v51, %v3598_v58 }
0x1c64   :  { %v7392_v0 = vsel %vm382_vm8, %v3608_v13, %v3601_v5 }
0x1c65   :  { %v3610_v15 = vmul.f32 %v7392_v0, %v7392_v0 }
0x1c67   :  { %v3611_v27 = vsel %vm393_vm9, %v3610_v15, 0.0 }
0x1d23   :  { %v3419_v29 = vpop.f32.mrb[96].mxu0 }
0x1d24   :  { %v7395_v40 = vadd.f32 %v3419_v29, %v7183_v61  ;;  %v5769_v2 = vpop.f32.mrb[97].mxu0 }
0x1d25   :  { %v3422_v10 = vpop.f32.mrb[98].mxu0 }
0x1d26   :  { %v7398_v55 = vadd.f32 %v3422_v10, %v7166_v50  ;;  %v5770_v20 = vpop.f32.mrb[99].mxu0  ;;  %v3428_v8 = vmul.f32 %v7395_v40, %v7395_v40 }
0x1d28   :  { %v3430_v25 = vsel %vm393_vm9, %v3428_v8, 0.0  ;;  %v3429_v12 = vmul.f32 %v7398_v55, %v7398_v55 }
0x1d29   :  { %3431 = vadd.xlane.f32.xlu0 %v3430_v25 }
0x1d2a   :  { %v3433_v61 = vsel %vm397_vm10, %v3429_v12, 0.0 }
0x1d2b   :  { %3434 = vadd.xlane.f32.xlu1 %v3433_v61 }
0x1d2d   :  { %3612 = vadd.xlane.f32.xlu0 %v3611_v27 }
0x1db6   :  { %v3432_v50 = vpop.xlane.xlu0 %3431 }
0x1db7   :  { %v3436_v45 = vmul.f32 0.03125, %v3432_v50 }
0x1db8   :  { %v3435_v63 = vpop.xlane.xlu1 %3434 }
0x1db9   :  { %v3438_v48 = vadd.f32 1e-06, %v3436_v45  ;;  %v3437_v53 = vmul.f32 0.03125, %v3435_v63 }
0x1dba   :  { %v3613_v36 = vpop.xlane.xlu0 %3612 }
0x1dbb   :  { %6172 = vrsqrt.f32 %v3438_v48  ;;  %v3439_v39 = vadd.f32 1e-06, %v3437_v53  ;;  %v3614_v19 = vmul.f32 0.03125, %v3613_v36 }
0x1dbd   :  { %6174 = vrsqrt.f32 %v3439_v39  ;;  %v3615_v6 = vadd.f32 1e-06, %v3614_v19 }
0x1dbf   :  { %6176 = vrsqrt.f32 %v3615_v6 }
0x1dc5   :  { %v6173_v21 = vpop.eup %6172 }
0x1dc6   :  { %v3442_v52 = vmul.f32 %v6173_v21, %v7395_v40 }
0x1dc7   :  { %v6175_v17 = vpop.eup %6174 }
0x1dc8   :  { %v3443_v9 = vmul.f32 %v6175_v17, %v7398_v55  ;;  %v3444_v28 = vmul.f32 %v6240_v4, %v3442_v52 }
0x1dc9   :  { %v6177_v60 = vpop.eup %6176 }
0x1dca   :  { %v3617_v1 = vmul.f32 %v6177_v60, %v7392_v0  ;;  %v3445_v24 = vmul.f32 %v6240_v4, %v3443_v9  ;;  %v6242_v9 = vld [vmem:[%s7810_s1] sm:$0xff] }
0x1dcc   :  { %v3446_v56 = vpack.c.bf16 %v3445_v24, %v3444_v28  ;;  %v3618_v16 = vmul.f32 %v6241_v23, %v3617_v1 }
0x1dce   :  { %5776 = vmatmul.mubr.msk.bf16.vlgmr.msra.gmra.mrb[92].mxu1 %vm393_vm9, %v3446_v56  ;;  %v3619_v31 = vpack.c.bf16 %v3618_v16, %v3618_v16 }
0x1dcf   :  { %5792 = vmatpush3.bf16.msra.mxu1 %v6814_v62  ;;  %5795 = vmatprep.mubr.msk.bf16.mxu1 %vm6359_vm0, %v6358_v3 }
0x1dd0   :  { %5793 = vmatprep.subr.bf16.mxu1 %v6358_v3 }
0x1dd3   :  { %5794 = vmatpush3.bf16.msra.mxu1 %v6822_v11 }
0x1dd4   :  { %5799 = vmatprep.subr.bf16.mxu1 %v6358_v3 }
0x1dd6   :  { %5796 = vmatmul.mubr.msk.bf16.vlgmr.msra.gmra.mrb[96].mxu1 %vm393_vm9, %v3619_v31 }
0x1dd7   :  { %5801 = vmatprep.mubr.msk.bf16.mxu1 %vm6359_vm0, %v6358_v3 }
0x1ea1   :  { %v3484_v58 = vpop.f32.mrb[92].mxu1 }
0x1ea2   :  { %v5777_v51 = vpop.f32.mrb[93].mxu1  ;;  %v3491_v13 = vmax.f32 %v3484_v58, 0.0 }
0x1ea3   :  { %v3487_v5 = vpop.f32.mrb[94].mxu1 }
0x1ea4   :  { %v3492_v62 = vmax.f32 %v3487_v5, 0.0  ;;  %v5778_v29 = vpop.f32.mrb[95].mxu1  ;;  %v6244_v5 = vld [vmem:[%s7810_s1 + $0x10] sm:$0xff] }
0x1ea6   :  { %v3493_v2 = vpack.c.bf16 %v3492_v62, %v3491_v13 }
0x1ea8   :  { %5788 = vmatmul.mubr.msk.bf16.vlgmr.msra.gmra.mrb[100].mxu0 %vm7836_vm13, %v3493_v2 }
0x1ea9   :  { %v3657_v10 = vpop.f32.mrb[96].mxu1  ;;  %5807 = vmatprep.mubr.msk.bf16.mxu0 %vm6359_vm0, %v6358_v3 }
0x1eaa   :  { %v7427_v11 = vpack.c.bf16 %v3657_v10, %v3657_v10  ;;  %v5797_v20 = vpop.f32.mrb[97].mxu1 }
0x1eab   :  { %v3660_v8 = vpop.f32.mrb[98].mxu1 }
0x1eac   :  { %3775 = vrot.lane.b32.xlu1 %v7427_v11, %s7826_s3  ;;  %3665 = vrot.lane.b32.xlu0 %v7427_v11, %s7827_s14  ;;  %v5798_v15 = vpop.f32.mrb[99].mxu1  ;;  %v6245_v8 = vld [vmem:[%s7810_s1 + $0x18] sm:$0xff] }
0x1eb0   :  { %3773 = vrot.lane.b32.xlu1 %v7427_v11, %s7829_s19  ;;  %3885 = vrot.lane.b32.xlu0 %v7427_v11, %s7831_s13 }
0x1eb4   :  { %3883 = vrot.lane.b32.xlu1 %v7427_v11, %s7828_s27  ;;  %3995 = vrot.lane.b32.xlu0 %v7427_v11, %s7809_s12 }
0x1eb8   :  { %3993 = vrot.lane.b32.xlu1 %v7427_v11, %s7830_s18 }
0x1f1e   :  { %v3666_v25 = vpop.permute.xlu0 %3665  ;;  %v3776_v61 = vpop.permute.xlu1 %3775 }
0x1f1f   :  { %v3671_v12 = vsel %vm467_vm11, %v3666_v25, 0  ;;  %v3781_v27 = vsel %vm467_vm11, %v3776_v61, 0 }
0x1f20   :  { %5800 = vmatpush3.bf16.xpose.msra.mxu1 %v3671_v12 }
0x1f21   :  { %5811 = vmatprep.subr.bf16.mxu1 %v6358_v3 }
0x1f22   :  { %v3886_v50 = vpop.permute.xlu0 %3885  ;;  %v3774_v45 = vpop.permute.xlu1 %3773 }
0x1f23   :  { %v3891_v63 = vsel %vm467_vm11, %v3886_v50, 0 }
0x1f26   :  { %v3996_v48 = vpop.permute.xlu0 %3995  ;;  %v3884_v53 = vpop.permute.xlu1 %3883 }
0x1f27   :  { %5802 = vmatmul.mubr.msk.bf16.vlgmr.msra.gmra.mrb[100].mxu1 %vm467_vm11, %v7427_v11  ;;  %v4001_v36 = vsel %vm467_vm11, %v3996_v48, 0 }
0x1f28   :  { %5812 = vmatpush3.bf16.xpose.msra.mxu1 %v3781_v27  ;;  %5813 = vmatprep.mubr.msk.bf16.mxu1 %vm6359_vm0, %v6358_v3 }
0x1f29   :  { %5823 = vmatprep.subr.bf16.mxu1 %v6358_v3 }
0x1f2a   :  { %v3994_v39 = vpop.permute.xlu1 %3993 }
0x1f2f   :  { %5814 = vmatmul.mubr.msk.bf16.vlgmr.msra.gmra.mrb[104].mxu1 %vm467_vm11, %v3774_v45 }
0x1f30   :  { %5824 = vmatpush3.bf16.xpose.msra.mxu1 %v3891_v63  ;;  %5825 = vmatprep.mubr.msk.bf16.mxu1 %vm6359_vm0, %v6358_v3 }
0x1f31   :  { %5835 = vmatprep.subr.bf16.mxu1 %v6358_v3 }
0x1f37   :  { %5826 = vmatmul.mubr.msk.bf16.vlgmr.msra.gmra.mrb[108].mxu1 %vm467_vm11, %v3884_v53 }
0x1f38   :  { %5836 = vmatpush3.bf16.xpose.msra.mxu1 %v4001_v36  ;;  %5837 = vmatprep.mubr.msk.bf16.mxu1 %vm6359_vm0, %v6358_v3 }
0x1f39   :  { %5847 = vmatprep.subr.bf16.mxu1 %v6358_v3 }
0x1f3f   :  { %5838 = vmatmul.mubr.msk.bf16.vlgmr.msra.gmra.mrb[112].mxu1 %vm467_vm11, %v3994_v39 }
0x1f40   :  { %5848 = vmatpush3.bf16.msra.mxu1 %v6931_v7  ;;  %5851 = vmatprep.mubr.msk.bf16.mxu1 %vm6359_vm0, %v6358_v3 }
0x1f41   :  { %5849 = vmatprep.subr.bf16.mxu1 %v6358_v3 }
0x1f44   :  { %5850 = vmatpush3.bf16.msra.mxu1 %v6937_v18  ;;  %v6243_v18 = vld [vmem:[%s7810_s1 + $0x8] sm:$0xff]  ;;  %s5166_s1 = sld [smem:[#allocation8 + $0x2]] }
0x1f45   :  { %5863 = vmatprep.subr.bf16.mxu1 %v6358_v3 }
0x1f7b   :  { %v7468_v19 = vpop.f32.mrb[100].mxu0 }
0x1f7c   :  { %v5789_v6 = vpop.f32.mrb[101].mxu0 }
0x1f7d   :  { %v7470_v21 = vpop.f32.mrb[102].mxu0 }
0x1f7e   :  { %v5790_v52 = vpop.f32.mrb[103].mxu0 }
0x1ffa   :  { %v3707_v17 = vpop.f32.mrb[100].mxu1 }
0x1ffb   :  { %v3708_v7 = vadd.f32 %v6242_v9, %v3707_v17  ;;  %v5803_v60 = vpop.f32.mrb[101].mxu1 }
0x1ffc   :  { %v3710_v1 = vpop.f32.mrb[102].mxu1 }
0x1ffd   :  { %v5804_v4 = vpop.f32.mrb[103].mxu1  ;;  %v3713_v28 = vsel %vm467_vm11, %v3708_v7, -inf }
0x1ffe   :  { %3714 = vmax.xlane.f32.xlu0 %v3713_v28 }
0x2002   :  { %v3817_v24 = vpop.f32.mrb[104].mxu1 }
0x2003   :  { %v3818_v56 = vadd.f32 %v6243_v18, %v3817_v24  ;;  %v5815_v23 = vpop.f32.mrb[105].mxu1 }
0x2004   :  { %v3820_v16 = vpop.f32.mrb[106].mxu1 }
0x2005   :  { %v5816_v31 = vpop.f32.mrb[107].mxu1  ;;  %v3823_v58 = vsel %vm467_vm11, %v3818_v56, -inf }
0x2006   :  { %3824 = vmax.xlane.f32.xlu1 %v3823_v58 }
0x200a   :  { %v3927_v51 = vpop.f32.mrb[108].mxu1 }
0x200b   :  { %v3928_v13 = vadd.f32 %v6244_v5, %v3927_v51  ;;  %v5827_v62 = vpop.f32.mrb[109].mxu1 }
0x200c   :  { %v3930_v29 = vpop.f32.mrb[110].mxu1 }
0x200d   :  { %v5828_v2 = vpop.f32.mrb[111].mxu1  ;;  %v3933_v10 = vsel %vm467_vm11, %v3928_v13, -inf }
0x200e   :  { %3934 = vmax.xlane.f32.xlu0 %v3933_v10 }
0x2012   :  { %v4037_v20 = vpop.f32.mrb[112].mxu1 }
0x2013   :  { %v4038_v15 = vadd.f32 %v6245_v8, %v4037_v20  ;;  %v5839_v25 = vpop.f32.mrb[113].mxu1 }
0x2014   :  { %v4040_v12 = vpop.f32.mrb[114].mxu1 }
0x2015   :  { %v5840_v61 = vpop.f32.mrb[115].mxu1  ;;  %v4043_v27 = vsel %vm467_vm11, %v4038_v15, -inf }
0x2016   :  { %4044 = vmax.xlane.f32.xlu0 %v4043_v27 }
0x208b   :  { %v3715_v50 = vpop.xlane.xlu0 %3714 }
0x208c   :  { %v3716_v45 = vsub.f32 %v3708_v7, %v3715_v50 }
0x208e   :  { %v3717_v63 = vmul.f32 1.442695, %v3716_v45 }
0x2090   :  { %6178 = vpow2.f32 %v3717_v63 }
0x2093   :  { %v3825_v48 = vpop.xlane.xlu1 %3824 }
0x2094   :  { %v3826_v53 = vsub.f32 %v3818_v56, %v3825_v48 }
0x2096   :  { %v3827_v36 = vmul.f32 1.442695, %v3826_v53 }
0x2098   :  { %6180 = vpow2.f32 %v3827_v36 }
0x209a   :  { %v6179_v39 = vpop.eup %6178 }
0x209b   :  { %v3719_v6 = vsel %vm467_vm11, %v6179_v39, 0.0  ;;  %v3935_v52 = vpop.xlane.xlu0 %3934 }
0x209c   :  { %3720 = vadd.xlane.f32.xlu1 %v3719_v6  ;;  %v3936_v24 = vsub.f32 %v3928_v13, %v3935_v52 }
0x209e   :  { %v3937_v18 = vmul.f32 1.442695, %v3936_v24 }
0x20a2   :  { %v6181_v17 = vpop.eup %6180 }
0x20a3   :  { %v4045_v9 = vpop.xlane.xlu0 %4044  ;;  %v3829_v60 = vsel %vm467_vm11, %v6181_v17, 0.0 }
0x20a4   :  { %v4046_v1 = vsub.f32 %v4038_v15, %v4045_v9  ;;  %3830 = vadd.xlane.f32.xlu0 %v3829_v60 }
0x20a6   :  { %v4047_v4 = vmul.f32 1.442695, %v4046_v1 }
0x20a8   :  { %6182 = vpow2.f32 %v4047_v4 }
0x20a9   :  { %6184 = vpow2.f32 %v3937_v18 }
0x20ad   :  { %3725 = vrot.lane.b32.xlu1 %v7427_v11, %s7812_s7  ;;  %s5170_s7 = sld [smem:[#allocation8 + $0x4]] }
0x20b2   :  { %v6183_v7 = vpop.eup %6182 }
0x20b3   :  { %v4049_v28 = vsel %vm467_vm11, %v6183_v7, 0.0  ;;  %v6185_v56 = vpop.eup %6184 }
0x20b4   :  { %4050 = vadd.xlane.f32.xlu0 %v4049_v28  ;;  %v3939_v23 = vsel %vm467_vm11, %v6185_v56, 0.0 }
0x20ca   :  { %3835 = vrot.lane.b32.xlu0 %v7427_v11, %s7811_s2  ;;  %s5168_s2 = sld [smem:[#allocation8 + $0x3]] }
0x20d1   :  { %3940 = vadd.xlane.f32.xlu1 %v3939_v23 }
0x20e2   :  { %3945 = vrot.lane.b32.xlu1 %v7427_v11, %s7814_s15  ;;  %s5174_s15 = sld [smem:[#allocation8 + $0x6]] }
0x20e6   :  { %4055 = vrot.lane.b32.xlu1 %v7427_v11, %s7813_s11  ;;  %s5172_s11 = sld [smem:[#allocation8 + $0x5]] }
0x2129   :  { %v3721_v16 = vpop.xlane.xlu1 %3720 }
0x212a   :  { %6186 = vrcp.f32 %v3721_v16  ;;  %v3538_v16 = vadd.f32 %v7468_v19, %v7395_v40 }
0x212d   :  { %v3726_v31 = vpop.permute.xlu1 %3725 }
0x212e   :  { %v3731_v58 = vsel %vm376_vm5, %v3726_v31, 0  ;;  %v3539_v31 = vadd.f32 %v7470_v21, %v7398_v55 }
0x212f   :  { %5806 = vmatpush3.bf16.msra.mxu0 %v3731_v58  ;;  %v3540_v58 = vmul.f32 %v3538_v16, %v3538_v16 }
0x2130   :  { %5817 = vmatprep.subr.bf16.mxu0 %v6358_v3 }
0x2131   :  { %v3831_v5 = vpop.xlane.xlu0 %3830 }
0x2132   :  { %6188 = vrcp.f32 %v3831_v5  ;;  %v3542_v5 = vsel %vm393_vm9, %v3540_v58, 0.0 }
0x2134   :  { %v6187_v51 = vpop.eup %6186 }
0x2135   :  { %v3723_v13 = vmul.f32 %v6187_v51, %v6179_v39  ;;  %v3541_v51 = vmul.f32 %v3539_v31, %v3539_v31 }
0x2137   :  { %v3724_v62 = vpack.c.bf16 %v3723_v13, %v3723_v13  ;;  %v3545_v13 = vsel %vm397_vm10, %v3541_v51, 0.0  ;;  %vm7840_vm10 = vmmov %vm7836_vm13 }
0x2139   :  { %5808 = vmatmul.mubr.msk.bf16.vlgmr.msra.gmra.mrb[104].mxu0 %vm467_vm11, %v3724_v62 }
0x213a   :  { %5819 = vmatprep.mubr.msk.bf16.mxu0 %vm6359_vm0, %v6358_v3 }
0x213c   :  { %v6189_v29 = vpop.eup %6188 }
0x213d   :  { %v3833_v2 = vmul.f32 %v6189_v29, %v6181_v17 }
0x213f   :  { %v3834_v8 = vpack.c.bf16 %v3833_v2, %v3833_v2 }
0x2141   :  { %v4051_v11 = vpop.xlane.xlu0 %4050 }
0x2145   :  { %v3836_v10 = vpop.permute.xlu0 %3835 }
0x2146   :  { %v3841_v20 = vsel %vm376_vm5, %v3836_v10, 0 }
0x2147   :  { %5818 = vmatpush3.bf16.msra.mxu0 %v3841_v20 }
0x2148   :  { %5829 = vmatprep.subr.bf16.mxu0 %v6358_v3 }
0x214a   :  { %5820 = vmatmul.mubr.msk.bf16.vlgmr.msra.gmra.mrb[108].mxu0 %vm467_vm11, %v3834_v8 }
0x214b   :  { %5831 = vmatprep.mubr.msk.bf16.mxu0 %vm6359_vm0, %v6358_v3 }
0x215e   :  { %v3941_v15 = vpop.xlane.xlu1 %3940 }
0x215f   :  { %6190 = vrcp.f32 %v3941_v15 }
0x2160   :  { %6192 = vrcp.f32 %v4051_v11 }
0x2162   :  { %v3946_v25 = vpop.permute.xlu1 %3945 }
0x2163   :  { %v3951_v12 = vsel %vm376_vm5, %v3946_v25, 0 }
0x2164   :  { %5830 = vmatpush3.bf16.msra.mxu0 %v3951_v12 }
0x2165   :  { %5841 = vmatprep.subr.bf16.mxu0 %v6358_v3 }
0x2166   :  { %v4056_v50 = vpop.permute.xlu1 %4055 }
0x2167   :  { %v4061_v48 = vsel %vm376_vm5, %v4056_v50, 0  ;;  %v6246_v50 = vld [vmem:[%s7837_s25] ss:$0 sm:$0xff] }
0x2169   :  { %v6191_v61 = vpop.eup %6190 }
0x216a   :  { %v3943_v27 = vmul.f32 %v6191_v61, %v6185_v56  ;;  %v6193_v63 = vpop.eup %6192 }
0x216b   :  { %v4053_v53 = vmul.f32 %v6193_v63, %v6183_v7 }
0x216c   :  { %v3944_v45 = vpack.c.bf16 %v3943_v27, %v3943_v27 }
0x216d   :  { %v4054_v36 = vpack.c.bf16 %v4053_v53, %v4053_v53 }
0x216e   :  { %5832 = vmatmul.mubr.msk.bf16.vlgmr.msra.gmra.mrb[112].mxu0 %vm467_vm11, %v3944_v45 }
0x216f   :  { %5842 = vmatpush3.bf16.msra.mxu0 %v4061_v48  ;;  %5843 = vmatprep.mubr.msk.bf16.mxu0 %vm6359_vm0, %v6358_v3 }
0x2170   :  { %5855 = vmatprep.subr.bf16.mxu0 %v6358_v3 }
0x2176   :  { %5844 = vmatmul.mubr.msk.bf16.vlgmr.msra.gmra.mrb[116].mxu0 %vm467_vm11, %v4054_v36 }
0x2177   :  { %5856 = vmatpush3.bf16.msra.mxu0 %v6979_v37  ;;  %5859 = vmatprep.mubr.msk.bf16.mxu0 %vm6359_vm0, %v6358_v3 }
0x2178   :  { %5857 = vmatprep.subr.bf16.mxu0 %v6358_v3 }
0x217b   :  { %5858 = vmatpush3.bf16.msra.mxu0 %v6985_v42 }
0x217c   :  { %5871 = vmatprep.subr.bf16.mxu0 %v6358_v3 }
0x220c   :  { %v3767_v39 = vpop.f32.mrb[104].mxu0 }
0x220d   :  { %v5809_v6 = vpop.f32.mrb[105].mxu0 }
0x220e   :  { %v3770_v52 = vpop.f32.mrb[106].mxu0 }
0x220f   :  { %v5810_v17 = vpop.f32.mrb[107].mxu0 }
0x221d   :  { %v3877_v9 = vpop.f32.mrb[108].mxu0 }
0x221e   :  { %4104 = vrot.lane.b32.xlu0 %v3877_v9, %s7816_s5  ;;  %v5821_v60 = vpop.f32.mrb[109].mxu0 }
0x221f   :  { %v3880_v1 = vpop.f32.mrb[110].mxu0 }
0x2220   :  { %v5822_v4 = vpop.f32.mrb[111].mxu0 }
0x2241   :  { %v3987_v37 = vpop.f32.mrb[112].mxu0 }
0x2242   :  { %4108 = vrot.lane.b32.xlu1 %v3987_v37, %s7817_s16  ;;  %v5833_v7 = vpop.f32.mrb[113].mxu0 }
0x2243   :  { %v3990_v28 = vpop.f32.mrb[114].mxu0 }
0x2244   :  { %v5834_v24 = vpop.f32.mrb[115].mxu0 }
0x2249   :  { %v4097_v18 = vpop.f32.mrb[116].mxu0 }
0x224a   :  { %4112 = vrot.lane.b32.xlu0 %v4097_v18, %s7819_s0  ;;  %v5845_v42 = vpop.f32.mrb[117].mxu0 }
0x224b   :  { %v4100_v56 = vpop.f32.mrb[118].mxu0  ;;  %v6247_v42 = vld [vmem:[%s7838_s20] ss:$0 sm:$0xff] }
0x224c   :  { %v5846_v23 = vpop.f32.mrb[119].mxu0 }
0x2266   :  { %3543 = vadd.xlane.f32.xlu1 %v3542_v5 }
0x2269   :  { %3546 = vadd.xlane.f32.xlu0 %v3545_v13 }
0x2290   :  { %v4105_v62 = vpop.permute.xlu0 %4104 }
0x2291   :  { %v4115_v11 = vsel %vm467_vm11, %v3767_v39, %v4105_v62 }
0x22b4   :  { %v4109_v29 = vpop.permute.xlu1 %4108 }
0x22b5   :  { %v4116_v2 = vsel %vm998_vm14, %v4115_v11, %v4109_v29 }
0x22bc   :  { %v4113_v10 = vpop.permute.xlu0 %4112 }
0x22bd   :  { %v4117_v40 = vsel %vm1001_vm15, %v4116_v2, %v4113_v10 }
0x22be   :  { %v4118_v19 = vpack.c.bf16 %v4117_v40, %v4117_v40 }
0x22c0   :  { %5852 = vmatmul.mubr.msk.bf16.vlgmr.msra.gmra.mrb[116].mxu1 %vm393_vm9, %v4118_v19 }
0x22c1   :  { %5864 = vmatpush3.bf16.msra.mxu1 %v6954_v49  ;;  %5867 = vmatprep.mubr.msk.bf16.mxu1 %vm6359_vm0, %v6358_v3 }
0x22c2   :  { %5865 = vmatprep.subr.bf16.mxu1 %v6358_v3 }
0x22c5   :  { %5866 = vmatpush3.bf16.msra.mxu1 %v6960_v57 }
0x22c6   :  { %5877 = vmatprep.subr.bf16.mxu1 %v6358_v3 }
0x22f3   :  { %v3544_v55 = vpop.xlane.xlu1 %3543 }
0x22f4   :  { %v3548_v21 = vmul.f32 0.03125, %v3544_v55 }
0x22f6   :  { %v3550_v20 = vadd.f32 1e-06, %v3548_v21  ;;  %v3547_v8 = vpop.xlane.xlu0 %3546 }
0x22f7   :  { %v3549_v15 = vmul.f32 0.03125, %v3547_v8 }
0x22f8   :  { %6194 = vrsqrt.f32 %v3550_v20 }
0x22f9   :  { %v3551_v25 = vadd.f32 1e-06, %v3549_v15 }
0x22fb   :  { %6196 = vrsqrt.f32 %v3551_v25 }
0x2302   :  { %v6195_v12 = vpop.eup %6194 }
0x2303   :  { %v3554_v49 = vmul.f32 %v6195_v12, %v3538_v16 }
0x2305   :  { %v6197_v61 = vpop.eup %6196  ;;  %v3556_v45 = vmul.f32 %v6246_v50, %v3554_v49 }
0x2306   :  { %v3555_v27 = vmul.f32 %v6197_v61, %v3539_v31 }
0x2308   :  { %v3557_v63 = vmul.f32 %v6246_v50, %v3555_v27 }
0x230a   :  { %v4216_v48 = vpack.c.bf16 %v3557_v63, %v3556_v45 }
0x230c   :  { %5868 = vmatmul.mubr.msk.bf16.vlgmr.msra.gmra.mrb[120].mxu1 %vm393_vm9, %v4216_v48 }
0x230d   :  { %5879 = vmatprep.mubr.msk.bf16.mxu1 %vm6359_vm0, %v6358_v3 }
0x2393   :  { %v4156_v57 = vpop.f32.mrb[116].mxu1 }
0x2394   :  { %v7540_v53 = vadd.f32 %v4156_v57, %v7392_v0  ;;  %v5853_v36 = vpop.f32.mrb[117].mxu1 }
0x2395   :  { %v4159_v39 = vpop.f32.mrb[118].mxu1 }
0x2396   :  { %v5854_v6 = vpop.f32.mrb[119].mxu1  ;;  %v4163_v52 = vmul.f32 %v7540_v53, %v7540_v53 }
0x2398   :  { %v4164_v17 = vsel %vm393_vm9, %v4163_v52, 0.0 }
0x2399   :  { %4165 = vadd.xlane.f32.xlu0 %v4164_v17 }
0x23df   :  { %v4254_v9 = vpop.f32.mrb[120].mxu1 }
0x23e0   :  { %v5869_v60 = vpop.f32.mrb[121].mxu1 }
0x23e1   :  { %v4257_v1 = vpop.f32.mrb[122].mxu1 }
0x23e2   :  { %v7545_v4 = vpack.c.bf16 %v4257_v1, %v4254_v9  ;;  %v5870_v37 = vpop.f32.mrb[123].mxu1 }
0x23e4   :  { %4373 = vrot.lane.b32.xlu1 %v7545_v4, %s7829_s19  ;;  %v4267_v16 = vsel %vm467_vm11, %v7545_v4, 0 }
0x23e8   :  { %4483 = vrot.lane.b32.xlu1 %v7545_v4, %s7828_s27 }
0x2426   :  { %v4166_v0 = vpop.xlane.xlu0 %4165 }
0x2427   :  { %v4167_v7 = vmul.f32 0.03125, %v4166_v0 }
0x2429   :  { %v4168_v28 = vadd.f32 1e-06, %v4167_v7 }
0x242b   :  { %6198 = vrsqrt.f32 %v4168_v28 }
0x2435   :  { %v6199_v24 = vpop.eup %6198 }
0x2436   :  { %v4170_v18 = vmul.f32 %v6199_v24, %v7540_v53 }
0x2438   :  { %v4171_v56 = vmul.f32 %v6247_v42, %v4170_v18 }
0x243a   :  { %v4172_v23 = vpack.c.bf16 %v4171_v56, %v4171_v56 }
0x243c   :  { %5860 = vmatmul.mubr.msk.bf16.vlgmr.msra.gmra.mrb[120].mxu0 %vm393_vm9, %v4172_v23 }
0x243d   :  { %5872 = vmatpush3.bf16.xpose.msra.mxu0 %v4267_v16  ;;  %5873 = vmatprep.mubr.msk.bf16.mxu0 %vm6359_vm0, %v6358_v3 }
0x243e   :  { %5883 = vmatprep.subr.bf16.mxu0 %v6358_v3 }
0x2456   :  { %v4374_v58 = vpop.permute.xlu1 %4373 }
0x2457   :  { %v4379_v29 = vsel %vm467_vm11, %v4374_v58, 0 }
0x245a   :  { %v4484_v11 = vpop.permute.xlu1 %4483 }
0x245b   :  { %v4489_v10 = vsel %vm467_vm11, %v4484_v11, 0 }
0x250f   :  { %v4210_v31 = vpop.f32.mrb[120].mxu0 }
0x2510   :  { %v4261_v51 = vpack.c.bf16 %v4210_v31, %v4210_v31  ;;  %v5861_v5 = vpop.f32.mrb[121].mxu0 }
0x2511   :  { %v4213_v13 = vpop.f32.mrb[122].mxu0 }
0x2512   :  { %4481 = vrot.lane.b32.xlu1 %v4261_v51, %s7828_s27  ;;  %4371 = vrot.lane.b32.xlu0 %v4261_v51, %s7829_s19  ;;  %v5862_v62 = vpop.f32.mrb[123].mxu0  ;;  %s5235_s27 = sld [smem:[#allocation8 + $0xa]]  ;;  %s5237_s19 = sld [smem:[#allocation8 + $0xb]] }
0x2513   :  { %5874 = vmatmul.mubr.msk.bf16.vlgmr.msra.gmra.mrb[124].mxu0 %vm467_vm11, %v4261_v51 }
0x2514   :  { %5884 = vmatpush3.bf16.xpose.msra.mxu0 %v4379_v29  ;;  %5885 = vmatprep.mubr.msk.bf16.mxu0 %vm6359_vm0, %v6358_v3 }
0x2515   :  { %5895 = vmatprep.subr.bf16.mxu0 %v6358_v3 }
0x2516   :  { %4591 = vrot.lane.b32.xlu1 %v4261_v51, %s7830_s18  ;;  %4593 = vrot.lane.b32.xlu0 %v7545_v4, %s7830_s18  ;;  %s5239_s18 = sld [smem:[#allocation8 + $0xc]] }
0x2584   :  { %v4372_v2 = vpop.permute.xlu0 %4371  ;;  %v4482_v19 = vpop.permute.xlu1 %4481 }
0x2585   :  { %5886 = vmatmul.mubr.msk.bf16.vlgmr.msra.gmra.mrb[128].mxu0 %vm467_vm11, %v4372_v2 }
0x2586   :  { %5896 = vmatpush3.bf16.xpose.msra.mxu0 %v4489_v10  ;;  %5897 = vmatprep.mubr.msk.bf16.mxu0 %vm6359_vm0, %v6358_v3 }
0x2587   :  { %5907 = vmatprep.subr.bf16.mxu0 %v6358_v3 }
0x2588   :  { %v4594_v40 = vpop.permute.xlu0 %4593  ;;  %v4592_v21 = vpop.permute.xlu1 %4591 }
0x2589   :  { %v4599_v55 = vsel %vm467_vm11, %v4594_v40, 0 }
0x258d   :  { %5898 = vmatmul.mubr.msk.bf16.vlgmr.msra.gmra.mrb[132].mxu0 %vm467_vm11, %v4482_v19 }
0x258e   :  { %5908 = vmatpush3.bf16.xpose.msra.mxu0 %v4599_v55  ;;  %5909 = vmatprep.mubr.msk.bf16.mxu0 %vm6359_vm0, %v6358_v3 }
0x258f   :  { %5919 = vmatprep.subr.bf16.mxu0 %v6358_v3 }
0x2595   :  { %5910 = vmatmul.mubr.msk.bf16.vlgmr.msra.gmra.mrb[136].mxu0 %vm467_vm11, %v4592_v21 }
0x2596   :  { %5920 = vmatpush3.bf16.msra.mxu0 %v7068_v26  ;;  %5923 = vmatprep.mubr.msk.bf16.mxu0 %vm6359_vm0, %v6358_v3 }
0x2597   :  { %5921 = vmatprep.subr.bf16.mxu0 %v6358_v3 }
0x259a   :  { %5922 = vmatpush3.bf16.msra.mxu0 %v7075_v43 }
0x259b   :  { %5935 = vmatprep.subr.bf16.mxu0 %v6358_v3 }
0x25e6   :  { %v4303_v20 = vpop.f32.mrb[124].mxu0 }
0x25e7   :  { %v4304_v8 = vadd.f32 %v4303_v20, %v7267_v35  ;;  %v5875_v15 = vpop.f32.mrb[125].mxu0 }
0x25e8   :  { %v4306_v25 = vpop.f32.mrb[126].mxu0 }
0x25e9   :  { %v5876_v12 = vpop.f32.mrb[127].mxu0  ;;  %v4309_v49 = vsel %vm521_vm12, %v4304_v8, -inf }
0x25ea   :  { %4310 = vmax.xlane.f32.xlu0 %v4309_v49 }
0x2658   :  { %v4415_v61 = vpop.f32.mrb[128].mxu0 }
0x2659   :  { %v4416_v26 = vadd.f32 %v4415_v61, %v7267_v35  ;;  %v5887_v27 = vpop.f32.mrb[129].mxu0 }
0x265a   :  { %v4418_v50 = vpop.f32.mrb[130].mxu0 }
0x265b   :  { %v5888_v45 = vpop.f32.mrb[131].mxu0  ;;  %v4421_v63 = vsel %vm521_vm12, %v4416_v26, -inf }
0x265c   :  { %4422 = vmax.xlane.f32.xlu1 %v4421_v63 }
0x2660   :  { %v4525_v43 = vpop.f32.mrb[132].mxu0 }
0x2661   :  { %v4526_v48 = vadd.f32 %v4525_v43, %v7267_v35  ;;  %v5899_v57 = vpop.f32.mrb[133].mxu0 }
0x2662   :  { %v4528_v36 = vpop.f32.mrb[134].mxu0 }
0x2663   :  { %v5900_v39 = vpop.f32.mrb[135].mxu0  ;;  %v4531_v6 = vsel %vm521_vm12, %v4526_v48, -inf }
0x2664   :  { %4532 = vmax.xlane.f32.xlu0 %v4531_v6 }
0x2668   :  { %v4635_v52 = vpop.f32.mrb[136].mxu0 }
0x2669   :  { %v4636_v17 = vadd.f32 %v4635_v52, %v7267_v35  ;;  %v5911_v9 = vpop.f32.mrb[137].mxu0 }
0x266a   :  { %v4638_v60 = vpop.f32.mrb[138].mxu0 }
0x266b   :  { %v5912_v1 = vpop.f32.mrb[139].mxu0  ;;  %v4641_v37 = vsel %vm521_vm12, %v4636_v17, -inf }
0x266c   :  { %4642 = vmax.xlane.f32.xlu0 %v4641_v37 }
0x2677   :  { %v4311_v0 = vpop.xlane.xlu0 %4310 }
0x2678   :  { %v4312_v7 = vsub.f32 %v4304_v8, %v4311_v0 }
0x267a   :  { %v4313_v28 = vmul.f32 1.442695, %v4312_v7 }
0x267c   :  { %6200 = vpow2.f32 %v4313_v28 }
0x2686   :  { %v6201_v24 = vpop.eup %6200 }
0x2687   :  { %v4315_v18 = vsel %vm521_vm12, %v6201_v24, 0.0 }
0x2688   :  { %4316 = vadd.xlane.f32.xlu1 %v4315_v18 }
0x2699   :  { %4433 = vrot.lane.b32.xlu1 %v7545_v4, %s7826_s3  ;;  %s5231_s3 = sld [smem:[#allocation8 + $0x8]] }
0x26e9   :  { %v4423_v42 = vpop.xlane.xlu1 %4422 }
0x26ea   :  { %v4424_v56 = vsub.f32 %v4416_v26, %v4423_v42 }
0x26ec   :  { %v4425_v35 = vmul.f32 1.442695, %v4424_v56 }
0x26ee   :  { %6202 = vpow2.f32 %v4425_v35 }
0x26f1   :  { %v4533_v23 = vpop.xlane.xlu0 %4532 }
0x26f2   :  { %v4534_v16 = vsub.f32 %v4526_v48, %v4533_v23 }
0x26f4   :  { %v4535_v31 = vmul.f32 1.442695, %v4534_v16 }
0x26f6   :  { %6204 = vpow2.f32 %v4535_v31 }
0x26f8   :  { %v6203_v58 = vpop.eup %6202 }
0x26f9   :  { %v4643_v51 = vpop.xlane.xlu0 %4642  ;;  %v4427_v5 = vsel %vm521_vm12, %v6203_v58, 0.0 }
0x26fa   :  { %v4644_v13 = vsub.f32 %v4636_v17, %v4643_v51  ;;  %4428 = vadd.xlane.f32.xlu0 %v4427_v5 }
0x26fc   :  { %v4645_v62 = vmul.f32 1.442695, %v4644_v13 }
0x26fe   :  { %6206 = vpow2.f32 %v4645_v62 }
0x2700   :  { %v6205_v29 = vpop.eup %6204 }
0x2701   :  { %v4537_v11 = vsel %vm521_vm12, %v6205_v29, 0.0 }
0x2702   :  { %4538 = vadd.xlane.f32.xlu1 %v4537_v11 }
0x2708   :  { %v6207_v2 = vpop.eup %6206 }
0x2709   :  { %v4647_v10 = vsel %vm521_vm12, %v6207_v2, 0.0 }
0x270a   :  { %4648 = vadd.xlane.f32.xlu1 %v4647_v10 }
0x2710   :  { %4322 = vrot.lane.b32.xlu0 %v7545_v4, %s7827_s14  ;;  %s5233_s14 = sld [smem:[#allocation8 + $0x9]] }
0x2714   :  { %4543 = vrot.lane.b32.xlu0 %v7545_v4, %s7831_s13  ;;  %s5241_s13 = sld [smem:[#allocation8 + $0xd]] }
0x2715   :  { %v4317_v40 = vpop.xlane.xlu1 %4316 }
0x2716   :  { %6208 = vrcp.f32 %v4317_v40 }
0x2719   :  { %v4434_v20 = vpop.permute.xlu1 %4433 }
0x271a   :  { %v4439_v49 = vand.u32 %v4434_v20, %v6691_v59  ;;  %v6248_v20 = vld [vmem:[%s7839_s6] ss:$0 sm:$0xff] }
0x271b   :  { %4653 = vrot.lane.b32.xlu1 %v7545_v4, %s7809_s12  ;;  %s5164_s12 = sld [smem:[#allocation8 + $0x1]] }
0x2720   :  { %v6209_v55 = vpop.eup %6208 }
0x2721   :  { %v4319_v21 = vmul.f32 %v6209_v55, %v6201_v24 }
0x2723   :  { %v4320_v12 = vpack.c.bf16 %v4319_v21, %v4319_v21 }
0x2787   :  { %v4429_v19 = vpop.xlane.xlu0 %4428 }
0x2788   :  { %6210 = vrcp.f32 %v4429_v19 }
0x278b   :  { %v4323_v8 = vpop.permute.xlu0 %4322 }
0x278c   :  { %v4328_v15 = vand.u32 %v4323_v8, %v6691_v59 }
0x278e   :  { %5878 = vmatpush3.bf16.msra.mxu1 %v4328_v15 }
0x278f   :  { %v4539_v25 = vpop.xlane.xlu1 %4538  ;;  %5889 = vmatprep.subr.bf16.mxu1 %v6358_v3  ;;  %v4544_v26 = vpop.permute.xlu0 %4543 }
0x2790   :  { %6212 = vrcp.f32 %v4539_v25  ;;  %v4549_v45 = vand.u32 %v4544_v26, %v6691_v59 }
0x2791   :  { %5880 = vmatmul.mubr.msk.bf16.vlgmr.msra.gmra.mrb[124].mxu1 %vm521_vm12, %v4320_v12 }
0x2792   :  { %v6211_v4 = vpop.eup %6210  ;;  %5890 = vmatpush3.bf16.msra.mxu1 %v4439_v49  ;;  %5891 = vmatprep.mubr.msk.bf16.mxu1 %vm6359_vm0, %v6358_v3 }
0x2793   :  { %v4431_v61 = vmul.f32 %v6211_v4, %v6203_v58  ;;  %5901 = vmatprep.subr.bf16.mxu1 %v6358_v3 }
0x2795   :  { %v4432_v50 = vpack.c.bf16 %v4431_v61, %v4431_v61 }
0x2797   :  { %v4649_v27 = vpop.xlane.xlu1 %4648 }
0x2798   :  { %6214 = vrcp.f32 %v4649_v27 }
0x2799   :  { %5892 = vmatmul.mubr.msk.bf16.vlgmr.msra.gmra.mrb[128].mxu1 %vm521_vm12, %v4432_v50 }
0x279a   :  { %v6213_v63 = vpop.eup %6212  ;;  %5902 = vmatpush3.bf16.msra.mxu1 %v4549_v45  ;;  %5903 = vmatprep.mubr.msk.bf16.mxu1 %vm6359_vm0, %v6358_v3  ;;  %v7664_v45 = vand.u32 127, %v515_v22  ;;  %v2622_v22 = vstv %s5170_s7 }
0x279b   :  { %v4541_v43 = vmul.f32 %v6213_v63, %v6205_v29  ;;  %5913 = vmatprep.subr.bf16.mxu1 %v6358_v3  ;;  %v4654_v48 = vpop.permute.xlu1 %4653  ;;  %v2602_v63 = vstv %s2601_s28 }
0x279c   :  { %v4659_v36 = vand.u32 %v4654_v48, %v6691_v59  ;;  %v2612_v48 = vstv %s5166_s1  ;;  %vm2623_vm1 = vcmp.eq.s32.totalorder %v7664_v45, %v2622_v22 }
0x279d   :  { %v4542_v57 = vpack.c.bf16 %v4541_v43, %v4541_v43  ;;  %v2607_v43 = vstv %s5164_s12 }
0x27a1   :  { %5904 = vmatmul.mubr.msk.bf16.vlgmr.msra.gmra.mrb[132].mxu1 %vm521_vm12, %v4542_v57 }
0x27a2   :  { %v6215_v39 = vpop.eup %6214  ;;  %5914 = vmatpush3.bf16.msra.mxu1 %v4659_v36  ;;  %5915 = vmatprep.mubr.msk.bf16.mxu1 %vm6359_vm0, %v6358_v3 }
0x27a3   :  { %v4651_v6 = vmul.f32 %v6215_v39, %v6207_v2  ;;  %5927 = vmatprep.subr.bf16.mxu1 %v6358_v3 }
0x27a5   :  { %v4652_v52 = vpack.c.bf16 %v4651_v6, %v4651_v6  ;;  %v2617_v6 = vstv %s5168_s2 }
0x27a9   :  { %5916 = vmatmul.mubr.msk.bf16.vlgmr.msra.gmra.mrb[136].mxu1 %vm521_vm12, %v4652_v52  ;;  %vm2608_vm12 = vcmp.eq.s32.totalorder %v7664_v45, %v2607_v43  ;;  %v4964_v43 = vstv %s5245_s26 }
0x27aa   :  { %5928 = vmatpush3.bf16.msra.mxu1 %v7095_v14  ;;  %5931 = vmatprep.mubr.msk.bf16.mxu1 %vm6359_vm0, %v6358_v3  ;;  %v5165_v39 = vsel %vm2608_vm12, 1.0, %v6358_v3 }
0x27ab   :  { %5929 = vmatprep.subr.bf16.mxu1 %v6358_v3 }
0x27ae   :  { %5930 = vmatpush3.bf16.msra.mxu1 %v7100_v41 }
0x27af   :  { %5947 = vmatprep.subr.bf16.mxu1 %v6358_v3 }
0x2864   :  { %v4364_v59 = vpop.f32.mrb[124].mxu1 }
0x2865   :  { %v5881_v17 = vpop.f32.mrb[125].mxu1 }
0x2866   :  { %v4367_v9 = vpop.f32.mrb[126].mxu1 }
0x2867   :  { %v5882_v60 = vpop.f32.mrb[127].mxu1 }
0x286c   :  { %v4475_v1 = vpop.f32.mrb[128].mxu1 }
0x286d   :  { %4702 = vrot.lane.b32.xlu0 %v4475_v1, %s7816_s5  ;;  %v5893_v37 = vpop.f32.mrb[129].mxu1 }
0x286e   :  { %v4478_v0 = vpop.f32.mrb[130].mxu1 }
0x286f   :  { %v5894_v7 = vpop.f32.mrb[131].mxu1  ;;  %v2627_v0 = vstv %s5172_s11 }
0x2870   :  { %vm2628_vm13 = vcmp.eq.s32.totalorder %v7664_v45, %v2627_v0 }
0x2874   :  { %v4585_v14 = vpop.f32.mrb[132].mxu1 }
0x2875   :  { %4706 = vrot.lane.b32.xlu1 %v4585_v14, %s7817_s16  ;;  %v5905_v28 = vpop.f32.mrb[133].mxu1  ;;  %s5176_s16 = sld [smem:[#allocation8 + $0x7]] }
0x2876   :  { %v4588_v24 = vpop.f32.mrb[134].mxu1  ;;  %v5171_v28 = vsel %vm2623_vm1, 1.0, %v6358_v3 }
0x2877   :  { %v5906_v18 = vpop.f32.mrb[135].mxu1  ;;  %v2632_v24 = vstv %s5174_s15 }
0x287c   :  { %v4695_v42 = vpop.f32.mrb[136].mxu1 }
0x287d   :  { %4710 = vrot.lane.b32.xlu0 %v4695_v42, %s7819_s0  ;;  %v5917_v41 = vpop.f32.mrb[137].mxu1  ;;  %s7842_s0 = sld [smem:[#allocation27_spill]]  ;;  %v5173_v42 = vsel %vm2628_vm13, 1.0, %v6358_v3 }
0x287e   :  { %v4698_v56 = vpop.f32.mrb[138].mxu1  ;;  %v2637_v41 = vstv %s5176_s16 }
0x287f   :  { %v5918_v35 = vpop.f32.mrb[139].mxu1 }
0x28df   :  { %v4703_v23 = vpop.permute.xlu0 %4702 }
0x28e0   :  { %v4713_v31 = vsel %vm467_vm11, %v4364_v59, %v4703_v23  ;;  %vm2603_vm11 = vcmp.eq.s32.totalorder %v7664_v45, %v2602_v63 }
0x28e1   :  { %v5163_v36 = vsel %vm2603_vm11, 1.0, %v6358_v3  ;;  %vm7843_vm11 = vcmask 523264  }
0x28e2   :  { %v2641_v9 = vsel %vm370_vm2, %v5163_v36, %v5165_v39  ;;  %vm7844_vm12 = vmmov %vm7843_vm11 }
0x28e7   :  { %v4707_v16 = vpop.permute.xlu1 %4706 }
0x28e8   :  { %v4714_v58 = vsel %vm998_vm14, %v4713_v31, %v4707_v16  ;;  %vm2613_vm14 = vcmp.eq.s32.totalorder %v7664_v45, %v2612_v48 }
0x28e9   :  { %v5167_v17 = vsel %vm2613_vm14, 1.0, %v6358_v3  ;;  %vm7845_vm14 = vmmov %vm7843_vm11 }
0x28ea   :  { %v2642_v7 = vsel %vm372_vm3, %v2641_v9, %v5167_v17 }
0x28ef   :  { %v4711_v51 = vpop.permute.xlu0 %4710 }
0x28f0   :  { %v4715_v5 = vsel %vm1001_vm15, %v4714_v58, %v4711_v51  ;;  %vm2618_vm15 = vcmp.eq.s32.totalorder %v7664_v45, %v2617_v6  ;;  %v6249_v58 = vld [vmem:[%s7842_s0] ss:$0 sm:$0xff] }
0x28f1   :  { %v4716_v13 = vpack.c.bf16 %v4715_v5, %v4715_v5  ;;  %v5169_v37 = vsel %vm2618_vm15, 1.0, %v6358_v3  ;;  %vm7846_vm15 = vmmov %vm7843_vm11 }
0x28f2   :  { %v2643_v18 = vsel %vm374_vm4, %v2642_v7, %v5169_v37 }
0x28f3   :  { %5924 = vmatmul.mubr.msk.bf16.vlgmr.msra.gmra.mrb[140].mxu0 %vm393_vm9, %v4716_v13  ;;  %v2644_v56 = vsel %vm376_vm5, %v2643_v18, %v5171_v28 }
0x28f4   :  { %5936 = vmatpush3.bf16.msra.mxu0 %v7108_v30  ;;  %5943 = vmatprep.mubr.msk.bf16.mxu0 %vm6359_vm0, %v6358_v3  ;;  %v2645_v16 = vsel %vm378_vm6, %v2644_v56, %v5173_v42 }
0x28f5   :  { %5937 = vmatprep.subr.bf16.mxu0 %v6358_v3 }
0x28f8   :  { %5938 = vmatpush3.bf16.msra.mxu0 %v7112_v33 }
0x28f9   :  { %5939 = vmatprep.subr.bf16.mxu0 %v6358_v3 }
0x28fc   :  { %5940 = vmatpush3.bf16.msra.mxu0 %v7118_v44 }
0x28fd   :  { %5941 = vmatprep.subr.bf16.mxu0 %v6358_v3 }
0x2900   :  { %5942 = vmatpush3.bf16.msra.mxu0 %v7130_v54 }
0x29c6   :  { %v4754_v62 = vpop.f32.mrb[140].mxu0 }
0x29c7   :  { %v4760_v29 = vadd.f32 %v4754_v62, %v7540_v53  ;;  %v5925_v30 = vpop.f32.mrb[141].mxu0 }
0x29c8   :  { %v4757_v11 = vpop.f32.mrb[142].mxu0 }
0x29c9   :  { %v5926_v2 = vpop.f32.mrb[143].mxu0  ;;  %v4761_v10 = vmul.f32 %v4760_v29, %v4760_v29 }
0x29cb   :  { %v4762_v40 = vsel %vm393_vm9, %v4761_v10, 0.0 }
0x29cc   :  { %4763 = vadd.xlane.f32.xlu1 %v4762_v40 }
0x2a59   :  { %v4764_v33 = vpop.xlane.xlu1 %4763 }
0x2a5a   :  { %v4765_v19 = vmul.f32 0.03125, %v4764_v33 }
0x2a5c   :  { %v4766_v55 = vadd.f32 1e-06, %v4765_v19 }
0x2a5e   :  { %6216 = vrsqrt.f32 %v4766_v55 }
0x2a68   :  { %v6217_v44 = vpop.eup %6216 }
0x2a69   :  { %v4768_v21 = vmul.f32 %v6217_v44, %v4760_v29 }
0x2a6b   :  { %v4769_v8 = vmul.f32 %v6248_v20, %v4768_v21  ;;  %v4929_v21 = vstv %s5231_s3  ;;  %v4934_v20 = vstv %s5233_s14 }
0x2a6c   :  { %vm4935_vm1 = vcmp.eq.s32.totalorder %v7664_v45, %v4934_v20 }
0x2a6d   :  { %v4770_v15 = vpack.c.bf16 %v4769_v8, %v4769_v8  ;;  %v4939_v8 = vstv %s5235_s27 }
0x2a6e   :  { %vm4940_vm13 = vcmp.eq.s32.totalorder %v7664_v45, %v4939_v8 }
0x2a6f   :  { %5932 = vmatmul.mubr.msk.bf16.vlgmr.msra.gmra.mrb[140].mxu1 %vm393_vm9, %v4770_v15 }
0x2a70   :  { %5948 = vmatpush3.bf16.xpose.msra.mxu1 %v7174_v38  ;;  %5955 = vmatprep.mubr.msk.bf16.mxu1 %vm6359_vm0, %v6358_v3  ;;  %vm7841_vm0 = vmmov %vm7840_vm10 }
0x2a71   :  { %5949 = vmatprep.subr.bf16.mxu1 %v6358_v3 }
0x2a78   :  { %5950 = vmatpush3.bf16.xpose.msra.mxu1 %v7191_v32 }
0x2a79   :  { %5951 = vmatprep.subr.bf16.mxu1 %v6358_v3 }
0x2a80   :  { %5952 = vmatpush3.bf16.xpose.msra.mxu1 %v7198_v46 }
0x2a81   :  { %5953 = vmatprep.subr.bf16.mxu1 %v6358_v3 }
0x2a88   :  { %5954 = vmatpush3.bf16.xpose.msra.mxu1 %v7205_v47  ;;  %v2587_v47 = vsel %vm7841_vm0, %v7219_v34, -inf  ;;  %vm2638_vm0 = vcmp.eq.s32.totalorder %v7664_v45, %v2637_v41 }
0x2a89   :  { %v5177_v5 = vsel %vm2638_vm0, 1.0, %v6358_v3 }
0x2b42   :  { %v4808_v54 = vpop.f32.mrb[140].mxu1 }
0x2b43   :  { %v4814_v53 = vmax.f32 %v4808_v54, 0.0  ;;  %v5933_v25 = vpop.f32.mrb[141].mxu1 }
0x2b44   :  { %v4811_v12 = vpop.f32.mrb[142].mxu1  ;;  %v4944_v25 = vstv %s5237_s19 }
0x2b45   :  { %v4815_v38 = vpack.c.bf16 %v4814_v53, %v4814_v53  ;;  %v5934_v49 = vpop.f32.mrb[143].mxu1  ;;  %v5234_v53 = vsel %vm4935_vm1, 1.0, %v6358_v3 }
0x2b47   :  { %5944 = vmatmul.mubr.msk.bf16.vlgmr.msra.gmra.mrb[144].mxu0 %vm7840_vm10, %v4815_v38  ;;  %vm2633_vm10 = vcmp.eq.s32.totalorder %v7664_v45, %v2632_v24  ;;  %v5236_v38 = vsel %vm4940_vm13, 1.0, %v6358_v3 }
0x2b48   :  { %v5175_v23 = vsel %vm2633_vm10, 1.0, %v6358_v3  ;;  %vm4945_vm10 = vcmp.eq.s32.totalorder %v7664_v45, %v4944_v25 }
0x2b49   :  { %v2646_v13 = vsel %vm380_vm7, %v2645_v16, %v5175_v23 }
0x2b4a   :  { %v2647_v11 = vsel %vm382_vm8, %v2646_v13, %v5177_v5 }
0x2b4b   :  { %v2648_v10 = vsel %vm7844_vm12, %v2647_v11, 0.0  ;;  %vm4965_vm12 = vcmp.eq.s32.totalorder %v7664_v45, %v4964_v43 }
0x2c1a   :  { %v4853_v4 = vpop.f32.mrb[144].mxu0 }
0x2c1b   :  { %v4859_v61 = vadd.f32 %v4853_v4, %v4760_v29  ;;  %v5945_v26 = vpop.f32.mrb[145].mxu0  ;;  %v4949_v4 = vstv %s5239_s18 }
0x2c1c   :  { %v4856_v32 = vpop.f32.mrb[146].mxu0  ;;  %v5238_v26 = vsel %vm4945_vm10, 1.0, %v6358_v3  ;;  %vm4950_vm0 = vcmp.eq.s32.totalorder %v7664_v45, %v4949_v4 }
0x2c1d   :  { %v4860_v27 = vmul.f32 %v4859_v61, %v4859_v61  ;;  %v5946_v50 = vpop.f32.mrb[147].mxu0  ;;  %v4954_v32 = vstv %s5241_s13 }
0x2c1e   :  { %v5240_v50 = vsel %vm4950_vm0, 1.0, %v6358_v3 }
0x2c1f   :  { %v4861_v46 = vsel %vm393_vm9, %v4860_v27, 0.0 }
0x2c20   :  { %4862 = vadd.xlane.f32.xlu0 %v4861_v46  ;;  %v4959_v46 = vstv %s5243_s22 }
0x2c24   :  { %2588 = vmax.xlane.f32.xlu0 %v2587_v47 }
0x2cad   :  { %v4863_v57 = vpop.xlane.xlu0 %4862 }
0x2cae   :  { %v4864_v52 = vmul.f32 0.03125, %v4863_v57 }
0x2cb0   :  { %v4865_v59 = vadd.f32 1e-06, %v4864_v52  ;;  %v2651_v52 = vmul.f32 %v2647_v11, %v7219_v34 }
0x2cb1   :  { %v7674_v60 = vpop.xlane.xlu0 %2588 }
0x2cb2   :  { %6218 = vrsqrt.f32 %v4865_v59  ;;  %v2590_v1 = vsub.f32 %v7219_v34, %v7674_v60  ;;  %v5246_v59 = vsel %vm4965_vm12, 1.0, %v6358_v3 }
0x2cb4   :  { %v2591_v14 = vmul.f32 1.442695, %v2590_v1 }
0x2cb6   :  { %6220 = vpow2.f32 %v2591_v14 }
0x2cbc   :  { %v6219_v35 = vpop.eup %6218 }
0x2cbd   :  { %v4867_v31 = vmul.f32 %v6219_v35, %v4859_v61 }
0x2cbf   :  { %v4868_v51 = vmul.f32 %v6249_v58, %v4867_v31 }
0x2cc0   :  { %v6221_v62 = vpop.eup %6220 }
0x2cc1   :  { %v2593_v29 = vsel %vm7843_vm11, %v6221_v62, 0.0  ;;  %v4869_v30 = vmul.f32 0.17677669, %v4868_v51  ;;  %vm4955_vm11 = vcmp.eq.s32.totalorder %v7664_v45, %v4954_v32 }
0x2cc2   :  { %2594 = vadd.xlane.f32.xlu0 %v2593_v29  ;;  %v5242_v63 = vsel %vm4955_vm11, 1.0, %v6358_v3 }
0x2cc3   :  { %v4870_v2 = vpack.c.bf16 %v4869_v30, %v4869_v30 }
0x2cc5   :  { %5956 = vmatmul.mubr.msk.bf16.vlgmr.msra.gmra.mrb[144].mxu1 %vm393_vm9, %v4870_v2  ;;  %vm4930_vm9 = vcmp.eq.s32.totalorder %v7664_v45, %v4929_v21 }
0x2cc6   :  { %2649 = vadd.xlane.f32.xlu0 %v2648_v10  ;;  %v5232_v54 = vsel %vm4930_vm9, 1.0, %v6358_v3 }
0x2cc7   :  { %v4968_v61 = vsel %vm370_vm2, %v5232_v54, %v5234_v53  ;;  %vm4960_vm2 = vcmp.eq.s32.totalorder %v7664_v45, %v4959_v46 }
0x2cc8   :  { %v4969_v27 = vsel %vm372_vm3, %v4968_v61, %v5236_v38  ;;  %v5244_v36 = vsel %vm4960_vm2, 1.0, %v6358_v3  ;;  %vm7847_vm3 = vmmov %vm7845_vm14 }
0x2cc9   :  { %v4970_v47 = vsel %vm374_vm4, %v4969_v27, %v5238_v26  ;;  %vm2657_vm4 = vcmask 7168  }
0x2cca   :  { %v4971_v48 = vsel %vm376_vm5, %v4970_v47, %v5240_v50  ;;  %vm7849_vm5 = vmmov %vm7847_vm3 }
0x2ccb   :  { %v4972_v39 = vsel %vm378_vm6, %v4971_v48, %v5242_v63  ;;  %vm7850_vm6 = vmmov %vm7847_vm3 }
0x2ccc   :  { %v4973_v17 = vsel %vm380_vm7, %v4972_v39, %v5244_v36 }
0x2ccd   :  { %v4974_v37 = vsel %vm382_vm8, %v4973_v17, %v5246_v59 }
0x2cce   :  { %v4975_v56 = vsel %vm7850_vm6, %v4974_v37, 0.0 }
0x2d4f   :  { %v2595_v22 = vpop.xlane.xlu0 %2594 }
0x2d53   :  { %v2650_v1 = vpop.xlane.xlu0 %2649 }
0x2d54   :  { %v2669_v45 = vsel %vm2657_vm4, %v2650_v1, 0.0 }
0x2d98   :  { %v4908_v40 = vpop.f32.mrb[144].mxu1 }
0x2d99   :  { %4915 = vst.msk [vmem:[#allocation9 + $0x8] sm:$0xff] %vm7845_vm14, %v4908_v40  ;;  %v5957_v33 = vpop.f32.mrb[145].mxu1  ;;  %v4916_v19 = vsel %vm7846_vm15, %v4908_v40, -inf  ;;  %vm7848_vm14 = vmmov %vm7847_vm3  ;;  %v4978_v0 = vmul.f32 %v4974_v37, %v4908_v40 }
0x2d9a   :  { %4917 = vmax.xlane.f32.xlu1 %v4916_v19  ;;  %v4911_v55 = vpop.f32.mrb[146].mxu1  ;;  %v2652_v9 = vsel %vm7848_vm14, %v2651_v52, 0.0 }
0x2d9b   :  { %v5958_v44 = vpop.f32.mrb[147].mxu1  ;;  %v4979_v7 = vsel %vm7849_vm5, %v4978_v0, 0.0 }
0x2e27   :  { %v7702_v15 = vpop.xlane.xlu1 %4917 }
0x2e28   :  { %v4919_v12 = vsub.f32 %v4908_v40, %v7702_v15 }
0x2e2a   :  { %v4920_v49 = vmul.f32 1.442695, %v4919_v12 }
0x2e2c   :  { %6222 = vpow2.f32 %v4920_v49 }
0x2e2d   :  { %6224 = vlog2.f32 %v2595_v22 }
0x2e36   :  { %v6223_v57 = vpop.eup %6222 }
0x2e37   :  { %v4922_v6 = vsel %vm7847_vm3, %v6223_v57, 0.0  ;;  %v6225_v34 = vpop.eup %6224 }
0x2e38   :  { %4923 = vadd.xlane.f32.xlu1 %v4922_v6  ;;  %v2597_v14 = vmul.f32 0.6931472, %v6225_v34 }
0x2e3a   :  { %v2598_v3 = vadd.f32 %v2597_v14, %v7674_v60 }
0x2e3c   :  { %2653 = vadd.xlane.f32.xlu1 %v2652_v9  ;;  %v2655_v24 = vmul.f32 %v2650_v1, %v2598_v3 }
0x2e40   :  { %2670 = vadd.xlane.f32.xlu1 %v2669_v45 }
0x2e44   :  { %4980 = vadd.xlane.f32.xlu1 %v4979_v7 }
0x2ec5   :  { %v4924_v28 = vpop.xlane.xlu1 %4923 }
0x2ec6   :  { %6226 = vlog2.f32 %v4924_v28 }
0x2ec9   :  { %v2654_v18 = vpop.xlane.xlu1 %2653 }
0x2eca   :  { %v2656_v42 = vsub.f32 %v2655_v24, %v2654_v18 }
0x2ecc   :  { %v2658_v41 = vsel %vm2657_vm4, %v2656_v42, 0.0 }
0x2ecd   :  { %2659 = vadd.xlane.f32.xlu0 %v2658_v41  ;;  %v2671_v35 = vpop.xlane.xlu1 %2670 }
0x2ece   :  { %v2672_v23 = vrot.slane %v2671_v35, 4 }
0x2ed0   :  { %v6227_v16 = vpop.eup %6226  ;;  %v2673_v31 = vadd.f32 %v2672_v23, %v2671_v35 }
0x2ed1   :  { %4976 = vadd.xlane.f32.xlu0 %v4975_v56  ;;  %v4926_v58 = vmul.f32 0.6931472, %v6227_v16  ;;  %v4981_v40 = vpop.xlane.xlu1 %4980 }
0x2ed2   :  { %v2674_v51 = vrot.slane %v2673_v31, 2 }
0x2ed3   :  { %v4927_v62 = vadd.f32 %v4926_v58, %v7702_v15 }
0x2ed4   :  { %v2675_v30 = vadd.f32 %v2674_v51, %v2673_v31 }
0x2ed6   :  { %v2676_v55 = vrot.slane %v2675_v30, 1 }
0x2ed8   :  { %v2677_v8 = vadd.f32 %v2676_v55, %v2675_v30 }
0x2f5a   :  { %v2660_v5 = vpop.xlane.xlu0 %2659 }
0x2f5b   :  { %v2661_v13 = vrot.slane %v2660_v5, 4 }
0x2f5d   :  { %v2662_v60 = vadd.f32 %v2661_v13, %v2660_v5 }
0x2f5e   :  { %v4977_v29 = vpop.xlane.xlu0 %4976 }
0x2f5f   :  { %v2663_v11 = vrot.slane %v2662_v60, 2  ;;  %v4982_v2 = vmul.f32 %v4977_v29, %v4927_v62  ;;  %v4995_v10 = vsel %vm2657_vm4, %v4977_v29, 0.0 }
0x2f60   :  { %4996 = vadd.xlane.f32.xlu1 %v4995_v10 }
0x2f61   :  { %v4983_v33 = vsub.f32 %v4982_v2, %v4981_v40  ;;  %v2664_v19 = vadd.f32 %v2663_v11, %v2662_v60 }
0x2f63   :  { %v4984_v44 = vsel %vm2657_vm4, %v4983_v33, 0.0  ;;  %v2665_v21 = vrot.slane %v2664_v19, 1 }
0x2f64   :  { %4985 = vadd.xlane.f32.xlu0 %v4984_v44 }
0x2f65   :  { %v2666_v20 = vadd.f32 %v2665_v21, %v2664_v19 }
0x2f67   :  { %5959 = vpush %v2666_v20 }
0x2f68   :  { %5961 = vpush %v2677_v8 }
0x2fed   :  { %v4997_v15 = vpop.xlane.xlu1 %4996 }
0x2fee   :  { %v4998_v54 = vrot.slane %v4997_v15, 4 }
0x2ff0   :  { %v4999_v53 = vadd.f32 %v4998_v54, %v4997_v15 }
0x2ff1   :  { %v4986_v25 = vpop.xlane.xlu0 %4985 }
0x2ff2   :  { %v5000_v12 = vrot.slane %v4999_v53, 2  ;;  %v4987_v38 = vrot.slane %v4986_v25, 4 }
0x2ff4   :  { %v4988_v49 = vadd.f32 %v4987_v38, %v4986_v25  ;;  %v5001_v4 = vadd.f32 %v5000_v12, %v4999_v53 }
0x2ff5   :  { %6297 = shalt.err (!%p6294_p5)
}
0x2ff6   :  { %s7851_s30 = sld [smem:[#allocation28_spill]] }
0x2ffc   :  { %s6298_s23 = scalar_lea.hbm %s7851_s30, 256 }
0x2ffd   :  { %p6299_p6 = scmp.ne.s32.totalorder %s7851_s30, %s6298_s23  ;;  %p6302_p7 = scmp.lt.u32.totalorder %s6298_s23, %s7851_s30 }
0x2fff   :  { %p6304_p8 = pnand %p6302_p7, %p6299_p6 }
0x3001   :  { %6307 = shalt.err (!%p6304_p8)
}
0x3002   :  { %s6376_s21 = smov 128   ;;  %v4989_v61 = vrot.slane %v4988_v49, 2  ;;  %v5002_v32 = vrot.slane %v5001_v4, 1  ;;  %s7852_s4 = sld [smem:[#allocation29_spill]] }
0x3003   :  { %5024 = dma.vmem_to_hbm [thread:$0]  %s5019_s9, 256, %s7851_s30, [#allocation3], %s6376_s21, %s6376_s21, %s7816_s5  }
0x3004   :  { %v4990_v26 = vadd.f32 %v4989_v61, %v4988_v49  ;;  %v5003_v46 = vadd.f32 %v5002_v32, %v5001_v4  ;;  %s5960_s17 = spop %5959  ;;  %s6377_s6 = smov 1.0  }
0x3005   :  { %s5962_s8 = spop %5961 }
0x3006   :  { %v4991_v27 = vrot.slane %v4990_v26, 1 }
0x3008   :  { %v4992_v50 = vadd.f32 %v4991_v27, %v4990_v26  ;;  %s6308_s2 = scalar_lea.hbm %s7852_s4, 16 }
0x3009   :  { %p6309_p9 = scmp.ne.s32.totalorder %s7852_s4, %s6308_s2  ;;  %p6312_p10 = scmp.lt.u32.totalorder %s6308_s2, %s7852_s4 }
0x300a   :  { %5963 = vpush %v4992_v50 }
0x300b   :  { %5965 = vpush %v5003_v46  ;;  %p6314_p11 = pnand %p6312_p10, %p6309_p9 }
0x303b   :  { %s5964_s29 = spop %5963 }
0x303c   :  { %s5966_s25 = spop %5965  ;;  %s4994_s5 = sadd.f32 %s5964_s29, %s5960_s17 }
0x303d   :  { %s5005_s20 = sadd.f32 %s5966_s25, %s5962_s8 }
0x303f   :  { %s5006_s28 = smax.f32 %s6377_s6, %s5005_s20 }
0x3040   :  { %v5007_v47 = vstv %s5006_s28 }
0x3041   :  { %6228 = vrcp.f32 %v5007_v47 }
0x304b   :  { %v6229_v63 = vpop.eup %6228 }
0x304c   :  { %5967 = vpush %v6229_v63 }
0x307d   :  { %s5968_s12 = spop %5967 }
0x307e   :  { %s5010_s1 = smul.f32 %s5968_s12, %s4994_s5 }
0x3080   :  { %5012 = sst [smem:[#allocation10]] %s5010_s1 }
0x3081   :  { %6317 = shalt.err (!%p6314_p11)
}
0x3082   :  { %s6378_s7 = smov [#allocation10]  }
0x3083   :  { %5032 = dma.smem_to_hbm %s6378_s7, 16, %s7852_s4, [#allocation4]  }
0x3084   :  { %6322 = dma.done.wait [#allocation3], 256  }
0x3085   :  { %6323 = vsyncadd [#allocation3], 4294967040 }
0x3086   :  { %6324 = dma.done.wait [#allocation4], 16  }
0x3087   :  { %6325 = vsyncadd [#allocation4], 4294967280 }
0x3088   :  { %5039 = sfence }
0x3089   :  { %5040 = vsyncpa [#allocation3], 1 }
0x308a   :  { %5041 = vsyncpa [#allocation4], 1 }
0x308b   :  { %5042 = vsyncpa [#allocation5], 1 }
0x308c   :  { %5043 = vsyncpa [#allocation7], 1 }

</bundles_post_ra>
